<compile_context>
chip_gen: v7x
topology: tpu7x:2x2x1
jax: 0.10.0
libtpu: 0.0.40
codegen_flags: <defaults>
</compile_context>

<pallas_src>
import functools

import numpy as np
import jax
import jax.numpy as jnp
from jax.experimental import pallas as pl
from jax.experimental.pallas import tpu as pltpu


# ----------------------------------------------------------------------------
# Single fused kernel: attention pooling -> fc1 -> BiLSTM -> head.
# All arrays are full-block VMEM residents (total < 3 MiB); no grid.
#
# Layout conventions:
#   hid_ref     : (B*L, H)          flattened BERT hidden states (batch-major rows)
#   maskbig_ref : (B*T, B*L)        block-diagonal segment mask, rows TIME-major (t*B+b)
#   valid_ref   : (B*T, 1)          1.0 for real clause rows, same row order
#   w1t_ref     : (H, 256)          fc1 weight^T, cols 200..255 zero
#   wih*_ref    : (256, 512)        stacked-gate (i,f,g,o) W_ih^T per direction, zero padded
#   whh*_ref    : (128, 512)        stacked-gate W_hh^T per direction, zero padded
#   bias*_ref   : (1, 512)          b_ih + b_hh per direction, zero padded
#   waT*/wbT*   : (128, 2)          fc weight split: first/rest clause x fwd/bwd half
#   out_ref     : (T-1, B, 2)       time-major logits (transposed to (B, T-1, 2) outside)
# ----------------------------------------------------------------------------
def fused_network_kernel(
    hid_ref, maskbig_ref, valid_ref,
    w5_ref, w1t_ref, b1_ref,
    wihf_ref, wihb_ref, whhf_ref, whhb_ref, biasf_ref, biasb_ref,
    waTf_ref, waTb_ref, wbTf_ref, wbTb_ref, fcb_ref,
    out_ref, *, B, T):
    f32 = jnp.float32
    hid = hid_ref[...]                      # (B*L, H)
    mask = maskbig_ref[...]                 # (B*T, B*L)
    BL = hid.shape[0]
    Hp = whhf_ref.shape[0]                  # 128 (lane-padded LSTM hidden)

    # ---- clause attention pooling: fc5 score -> masked softmax -> weighted sum ----
    # fc5 score per token via VPU multiply + lane reduce (avoids an N=1 MXU matmul).
    scores = jnp.sum(hid * w5_ref[...], axis=-1, keepdims=True)        # (B*L, 1)
    s_row = jnp.reshape(scores, (1, BL))                               # (1, B*L)
    logits = jnp.where(mask > 0, s_row, f32(-1e30))                    # (B*T, B*L)
    m = jnp.max(logits, axis=-1, keepdims=True)
    e = jnp.exp(logits - m) * mask
    denom = jnp.maximum(jnp.sum(e, axis=-1, keepdims=True), f32(1e-30))
    w = e / denom                                                      # (B*T, B*L)

    pooled = jnp.dot(w, hid, preferred_element_type=f32) * valid_ref[...]   # (B*T, H)

    # ---- fc1 (768 -> 200, lane-padded to 256) ----
    x = jnp.dot(pooled, w1t_ref[...], preferred_element_type=f32) + b1_ref[...]   # (B*T, 256)

    # ---- BiLSTM: hoisted input projection, gates stacked along the lane dim ----
    gx_f = jnp.dot(x, wihf_ref[...], preferred_element_type=f32) + biasf_ref[...]  # (B*T, 512)
    gx_b = jnp.dot(x, wihb_ref[...], preferred_element_type=f32) + biasb_ref[...]  # (B*T, 512)

    whh_f = whhf_ref[...]
    whh_b = whhb_ref[...]

    def lstm_step(gx_t, h, c, whh):
        gates = gx_t + jnp.dot(h, whh, preferred_element_type=f32)     # (B, 512)
        i = jax.nn.sigmoid(gates[:, 0:Hp])
        f = jax.nn.sigmoid(gates[:, Hp:2 * Hp])
        g = jnp.tanh(gates[:, 2 * Hp:3 * Hp])
        o = jax.nn.sigmoid(gates[:, 3 * Hp:4 * Hp])
        c_new = f * c + i * g
        h_new = o * jnp.tanh(c_new)
        return h_new, c_new

    h_f = jnp.zeros((B, Hp), f32); c_f = jnp.zeros((B, Hp), f32)
    h_b = jnp.zeros((B, Hp), f32); c_b = jnp.zeros((B, Hp), f32)
    hs_f = [None] * T
    hs_b = [None] * T
    # T is small and static -> fully unrolled; fwd and bwd interleaved for ILP so the
    # MXU latency of one direction hides under the VPU/EUP work of the other.
    for k in range(T):
        tf = k
        tb = T - 1 - k
        h_f, c_f = lstm_step(gx_f[tf * B:(tf + 1) * B, :], h_f, c_f, whh_f)
        h_b, c_b = lstm_step(gx_b[tb * B:(tb + 1) * B, :], h_b, c_b, whh_b)
        hs_f[tf] = h_f
        hs_b[tb] = h_b

    # ---- head: cat(h[:,0:1,:].expand, h[:,1:,:], dim=2) @ fc(400->2) ----
    base = (jnp.dot(hs_f[0], waTf_ref[...], preferred_element_type=f32)
            + jnp.dot(hs_b[0], waTb_ref[...], preferred_element_type=f32)
            + fcb_ref[...])                                            # (B, 2)
    for t in range(1, T):
        pt = (jnp.dot(hs_f[t], wbTf_ref[...], preferred_element_type=f32)
              + jnp.dot(hs_b[t], wbTb_ref[...], preferred_element_type=f32))
        out_ref[t - 1] = base + pt                                     # (B, 2) time-major row


def fused_forward(hid_flat, mask_big, valid_tm, pp, *, B, T):
    out_tm = pl.pallas_call(
        functools.partial(fused_network_kernel, B=B, T=T),
        out_shape=jax.ShapeDtypeStruct((T - 1, B, 2), jnp.float32),
        compiler_params=pltpu.CompilerParams(vmem_limit_bytes=32 * 1024 * 1024),
    )(hid_flat, mask_big, valid_tm,
      pp["w5_row"], pp["w1t"], pp["b1"],
      pp["wih_f"], pp["wih_b"], pp["whh_f"], pp["whh_b"],
      pp["bias_f"], pp["bias_b"],
      pp["waT_f"], pp["waT_b"], pp["wbT_f"], pp["wbT_b"], pp["fcb"])
    # (T-1, B, 2) -> (B, T-1, 2): 24-float layout fixup, negligible.
    return jnp.transpose(out_tm, (1, 0, 2))


# ----------------------------------------------------------------------------
# Host-side parameter packing: zero-pad to lane-dense widths (100->128, 200->256,
# gate width 400->512).  Zero padding keeps the math exactly equivalent.
# ----------------------------------------------------------------------------
def pad_params(p, *, Hh, Hp, D1, D1p):
    H = p["w1t"].shape[0]
    w5_row = np.asarray(p["w5"], np.float32).reshape(1, H)

    w1t = np.zeros((H, D1p), np.float32); w1t[:, :D1] = np.asarray(p["w1t"])
    b1 = np.zeros((1, D1p), np.float32); b1[:, :D1] = np.asarray(p["b1"])

    wih = np.zeros((2, D1p, 4 * Hp), np.float32)
    whh = np.zeros((2, Hp, 4 * Hp), np.float32)
    bias = np.zeros((2, 1, 4 * Hp), np.float32)
    wih_t = np.asarray(p["wih_t"]); whh_t = np.asarray(p["whh_t"]); lb = np.asarray(p["lstm_b"])
    for d in range(2):
        for g in range(4):                       # PyTorch gate order: i, f, g, o
            wih[d, :D1, g * Hp:g * Hp + Hh] = wih_t[d, g]
            whh[d, :Hh, g * Hp:g * Hp + Hh] = whh_t[d, g]
            bias[d, 0, g * Hp:g * Hp + Hh] = lb[d, g, 0]

    def pad_head(wslice):
        out = np.zeros((Hp, 2), np.float32)
        out[:Hh] = wslice
        return out

    waT = np.asarray(p["waT"]); wbT = np.asarray(p["wbT"])
    return {
        "w5_row": jnp.asarray(w5_row),
        "w1t": jnp.asarray(w1t), "b1": jnp.asarray(b1),
        "wih_f": jnp.asarray(wih[0]), "wih_b": jnp.asarray(wih[1]),
        "whh_f": jnp.asarray(whh[0]), "whh_b": jnp.asarray(whh[1]),
        "bias_f": jnp.asarray(bias[0]), "bias_b": jnp.asarray(bias[1]),
        "waT_f": jnp.asarray(pad_head(waT[:Hh])), "waT_b": jnp.asarray(pad_head(waT[Hh:2 * Hh])),
        "wbT_f": jnp.asarray(pad_head(wbT[:Hh])), "wbT_b": jnp.asarray(pad_head(wbT[Hh:2 * Hh])),
        "fcb": jnp.asarray(np.asarray(p["fcb"], np.float32)),
    }


# ----------------------------------------------------------------------------
# Glue: segment boundaries for batched_index_select (mirrors the PyTorch loop,
# including the `break` on a zero clause index).
# ----------------------------------------------------------------------------
def make_segments(clause, L):
    B, J = clause.shape
    T = J + 1
    start = np.zeros((B, T), np.int32)
    end = np.zeros((B, T), np.int32)
    valid = np.zeros((B, T), np.float32)
    for i in range(B):
        for j in range(T):
            if j == T - 1:
                start[i, j] = clause[i, j - 1]; end[i, j] = L; valid[i, j] = 1.0
            elif clause[i, j] != 0:
                s = 0 if j == 0 else int(clause[i, j - 1])
                start[i, j] = s; end[i, j] = int(clause[i, j]); valid[i, j] = 1.0
            else:
                start[i, j] = int(clause[i, j - 1]); end[i, j] = L; valid[i, j] = 1.0
                break
    return start, end, valid


# ----------------------------------------------------------------------------
# Pure-JAX reference (unpadded parameters) for verification
# ----------------------------------------------------------------------------
def reference_forward(hidden, mask, valid3, p):
    B, L, H = hidden.shape
    T = mask.shape[1]
    scores = hidden @ p["w5"]                                         # (B,L,1)
    logits = jnp.where(mask > 0, scores[:, :, 0][:, None, :], -1e30)  # (B,T,L)
    m = logits.max(-1, keepdims=True)
    e = jnp.exp(logits - m) * mask
    w = e / jnp.maximum(e.sum(-1, keepdims=True), 1e-30)
    pooled = jnp.einsum("btl,blh->bth", w, hidden) * valid3
    x = pooled @ p["w1t"] + p["b1"]                                   # (B,T,200)
    Hh = p["whh_t"].shape[-1]

    def run_dir(d, order):
        h = jnp.zeros((B, Hh)); c = jnp.zeros((B, Hh))
        outs = [None] * T
        for t in order:
            xt = x[:, t, :]
            g = [xt @ p["wih_t"][d, k] + h @ p["whh_t"][d, k] + p["lstm_b"][d, k]
                 for k in range(4)]
            i = jax.nn.sigmoid(g[0]); f = jax.nn.sigmoid(g[1])
            gg = jnp.tanh(g[2]); o = jax.nn.sigmoid(g[3])
            c = f * c + i * gg
            h = o * jnp.tanh(c)
            outs[t] = h
        return jnp.stack(outs, axis=1)

    out_f = run_dir(0, range(T))
    out_b = run_dir(1, range(T - 1, -1, -1))
    hcat = jnp.concatenate([out_f, out_b], axis=-1)                   # (B,T,200)
    first = hcat[:, 0:1, :]
    rest = hcat[:, 1:, :]
    return first @ p["waT"] + rest @ p["wbT"] + p["fcb"]


if __name__ == "__main__":
    B, L, H = 2, 32, 768      # batch, BERT seq length, BERT hidden
    J = 3                     # number of clause markers -> T = J + 1 sentences
    T = J + 1
    D1, Hh = 200, 100         # fc1 out, LSTM hidden (logical sizes)
    Hp, D1p = 128, 256        # lane-padded LSTM hidden / fc1 width

    key = jax.random.PRNGKey(0)
    ks = jax.random.split(key, 10)
    scale = 0.05

    # Stand-in for BERT last_hidden_state.
    hidden = jax.random.normal(ks[0], (B, L, H), jnp.float32)
    clause = np.array([[5, 12, 20], [4, 10, 0]], np.int32)   # bert_clause_b

    # Deterministic parameters (shapes from the module's __init__).
    params = {
        "w5":     jax.random.normal(ks[1], (H, 1), jnp.float32) * scale,          # fc5 (768->1)
        "w1t":    jax.random.normal(ks[2], (H, D1), jnp.float32) * scale,         # fc1 weight^T
        "b1":     jax.random.normal(ks[3], (1, D1), jnp.float32) * scale,         # fc1 bias
        "wih_t":  jax.random.normal(ks[4], (2, 4, D1, Hh), jnp.float32) * scale,  # LSTM W_ih^T
        "whh_t":  jax.random.normal(ks[5], (2, 4, Hh, Hh), jnp.float32) * scale,  # LSTM W_hh^T
        "lstm_b": jax.random.normal(ks[6], (2, 4, 1, Hh), jnp.float32) * scale,   # b_ih + b_hh
        "waT":    jax.random.normal(ks[7], (D1, 2), jnp.float32) * scale,         # fc W[:, :200]^T
        "wbT":    jax.random.normal(ks[8], (D1, 2), jnp.float32) * scale,         # fc W[:, 200:]^T
        "fcb":    jax.random.normal(ks[9], (1, 2), jnp.float32) * scale,          # fc bias
    }

    # Segment masks for the clause attention pooling (index glue, plain numpy).
    start, end, valid = make_segments(clause, L)
    pos = np.arange(L)
    mask_np = ((pos[None, None, :] >= start[:, :, None])
               & (pos[None, None, :] < end[:, :, None])
               & (valid[:, :, None] > 0)).astype(np.float32)          # (B, T, L)

    # Block-diagonal, time-major mask/valid for the single fused kernel.
    mask_big = np.zeros((B * T, B * L), np.float32)
    valid_tm = np.zeros((B * T, 1), np.float32)
    for b in range(B):
        for t in range(T):
            mask_big[t * B + b, b * L:(b + 1) * L] = mask_np[b, t]
            valid_tm[t * B + b, 0] = valid[b, t]

    pp = pad_params(params, Hh=Hh, Hp=Hp, D1=D1, D1p=D1p)
    hid_flat = hidden.reshape(B * L, H)

    # ---- Single fused Pallas kernel ----
    fwd = jax.jit(functools.partial(fused_forward, B=B, T=T))
    pred = jax.block_until_ready(
        fwd(hid_flat, jnp.asarray(mask_big), jnp.asarray(valid_tm), pp))   # (B, T-1, 2)

    # ---- Verify against pure-JAX reference ----
    ref = jax.block_until_ready(
        reference_forward(hidden, jnp.asarray(mask_np),
                          jnp.asarray(valid)[:, :, None], params))
    assert pred.shape == (B, T - 1, 2), pred.shape
    assert bool(jnp.all(jnp.isfinite(pred)))
    max_err = float(jnp.max(jnp.abs(pred - ref)))
    assert max_err < 1e-2, f"mismatch vs reference: {max_err}"

    print("KERNEL_OK")
</pallas_src>

<mosaic_0001>
module attributes {stable_mosaic.version = 11 : i64} {
  func.func @fused_network_kernel(%arg0: memref<64x768xf32, #tpu.memory_space<vmem>>, %arg1: memref<8x64xf32, #tpu.memory_space<vmem>>, %arg2: memref<8x1xf32, #tpu.memory_space<vmem>>, %arg3: memref<1x768xf32, #tpu.memory_space<vmem>>, %arg4: memref<768x256xf32, #tpu.memory_space<vmem>>, %arg5: memref<1x256xf32, #tpu.memory_space<vmem>>, %arg6: memref<256x512xf32, #tpu.memory_space<vmem>>, %arg7: memref<256x512xf32, #tpu.memory_space<vmem>>, %arg8: memref<128x512xf32, #tpu.memory_space<vmem>>, %arg9: memref<128x512xf32, #tpu.memory_space<vmem>>, %arg10: memref<1x512xf32, #tpu.memory_space<vmem>>, %arg11: memref<1x512xf32, #tpu.memory_space<vmem>>, %arg12: memref<128x2xf32, #tpu.memory_space<vmem>>, %arg13: memref<128x2xf32, #tpu.memory_space<vmem>>, %arg14: memref<128x2xf32, #tpu.memory_space<vmem>>, %arg15: memref<128x2xf32, #tpu.memory_space<vmem>>, %arg16: memref<1x2xf32, #tpu.memory_space<vmem>>, %arg17: memref<3x2x2xf32, #tpu.memory_space<vmem>>) attributes {dimension_semantics = [], scalar_prefetch = 0 : i64, scratch_operands = 0 : i64, tpu.core_type = #tpu.core_type<tc>} {
    %c0 = arith.constant 0 : index
    %c0_0 = arith.constant 0 : index
    %0 = vector.load %arg0[%c0, %c0_0] : memref<64x768xf32, #tpu.memory_space<vmem>>, vector<64x768xf32>
    %c0_1 = arith.constant 0 : index
    %c0_2 = arith.constant 0 : index
    %1 = vector.load %arg1[%c0_1, %c0_2] : memref<8x64xf32, #tpu.memory_space<vmem>>, vector<8x64xf32>
    %c0_3 = arith.constant 0 : index
    %c0_4 = arith.constant 0 : index
    %2 = vector.load %arg3[%c0_3, %c0_4] : memref<1x768xf32, #tpu.memory_space<vmem>>, vector<1x768xf32>
    %3 = vector.broadcast %2 : vector<1x768xf32> to vector<64x768xf32>
    %4 = arith.mulf %0, %3 : vector<64x768xf32>
    %cst = arith.constant dense<0.000000e+00> : vector<64xf32>
    %5 = vector.multi_reduction <add>, %4, %cst [1] : vector<64x768xf32> to vector<64xf32>
    %6 = vector.shape_cast %5 : vector<64xf32> to vector<64x1xf32>
    %7 = vector.shape_cast %6 : vector<64x1xf32> to vector<1x64xf32>
    %cst_5 = arith.constant 0.000000e+00 : f32
    %8 = vector.broadcast %cst_5 : f32 to vector<8x64xf32>
    %9 = arith.cmpf ogt, %1, %8 : vector<8x64xf32>
    %cst_6 = arith.constant -1.000000e+30 : f32
    %10 = vector.shape_cast %7 : vector<1x64xf32> to vector<1x64xf32>
    %11 = vector.broadcast %10 : vector<1x64xf32> to vector<8x64xf32>
    %12 = vector.broadcast %cst_6 : f32 to vector<8x64xf32>
    %13 = arith.select %9, %11, %12 : vector<8x64xi1>, vector<8x64xf32>
    %cst_7 = arith.constant dense<0xFF800000> : vector<8xf32>
    %14 = vector.multi_reduction <maximumf>, %13, %cst_7 [1] : vector<8x64xf32> to vector<8xf32>
    %15 = vector.shape_cast %14 : vector<8xf32> to vector<8x1xf32>
    %16 = vector.broadcast %15 : vector<8x1xf32> to vector<8x64xf32>
    %17 = arith.subf %13, %16 : vector<8x64xf32>
    %18 = math.exp %17 : vector<8x64xf32>
    %19 = arith.mulf %18, %1 : vector<8x64xf32>
    %cst_8 = arith.constant dense<0.000000e+00> : vector<8xf32>
    %20 = vector.multi_reduction <add>, %19, %cst_8 [1] : vector<8x64xf32> to vector<8xf32>
    %21 = vector.shape_cast %20 : vector<8xf32> to vector<8x1xf32>
    %cst_9 = arith.constant 1.000000e-30 : f32
    %22 = vector.broadcast %cst_9 : f32 to vector<8x1xf32>
    %23 = arith.maximumf %21, %22 : vector<8x1xf32>
    %24 = vector.broadcast %23 : vector<8x1xf32> to vector<8x64xf32>
    %25 = arith.divf %19, %24 : vector<8x64xf32>
    %cst_10 = arith.constant dense<0.000000e+00> : vector<8x768xf32>
    %26 = tpu.matmul %25, %0, %cst_10 {dimension_numbers = #tpu.dot_dimension_numbers<[1], [0], [0], [1], [0, 0, 1, 1], [], []>} : vector<8x64xf32>, vector<64x768xf32>, vector<8x768xf32> -> vector<8x768xf32>
    %c0_11 = arith.constant 0 : index
    %c0_12 = arith.constant 0 : index
    %27 = vector.load %arg2[%c0_11, %c0_12] : memref<8x1xf32, #tpu.memory_space<vmem>>, vector<8x1xf32>
    %28 = vector.broadcast %27 : vector<8x1xf32> to vector<8x768xf32>
    %29 = arith.mulf %26, %28 : vector<8x768xf32>
    %c0_13 = arith.constant 0 : index
    %c0_14 = arith.constant 0 : index
    %30 = vector.load %arg4[%c0_13, %c0_14] : memref<768x256xf32, #tpu.memory_space<vmem>>, vector<768x256xf32>
    %cst_15 = arith.constant dense<0.000000e+00> : vector<8x256xf32>
    %31 = tpu.matmul %29, %30, %cst_15 {dimension_numbers = #tpu.dot_dimension_numbers<[1], [0], [0], [1], [0, 0, 1, 1], [], []>} : vector<8x768xf32>, vector<768x256xf32>, vector<8x256xf32> -> vector<8x256xf32>
    %c0_16 = arith.constant 0 : index
    %c0_17 = arith.constant 0 : index
    %32 = vector.load %arg5[%c0_16, %c0_17] : memref<1x256xf32, #tpu.memory_space<vmem>>, vector<1x256xf32>
    %33 = vector.broadcast %32 : vector<1x256xf32> to vector<8x256xf32>
    %34 = arith.addf %31, %33 : vector<8x256xf32>
    %c0_18 = arith.constant 0 : index
    %c0_19 = arith.constant 0 : index
    %35 = vector.load %arg6[%c0_18, %c0_19] : memref<256x512xf32, #tpu.memory_space<vmem>>, vector<256x512xf32>
    %cst_20 = arith.constant dense<0.000000e+00> : vector<8x512xf32>
    %36 = tpu.matmul %34, %35, %cst_20 {dimension_numbers = #tpu.dot_dimension_numbers<[1], [0], [0], [1], [0, 0, 1, 1], [], []>} : vector<8x256xf32>, vector<256x512xf32>, vector<8x512xf32> -> vector<8x512xf32>
    %c0_21 = arith.constant 0 : index
    %c0_22 = arith.constant 0 : index
    %37 = vector.load %arg10[%c0_21, %c0_22] : memref<1x512xf32, #tpu.memory_space<vmem>>, vector<1x512xf32>
    %38 = vector.broadcast %37 : vector<1x512xf32> to vector<8x512xf32>
    %39 = arith.addf %36, %38 : vector<8x512xf32>
    %c0_23 = arith.constant 0 : index
    %c0_24 = arith.constant 0 : index
    %40 = vector.load %arg7[%c0_23, %c0_24] : memref<256x512xf32, #tpu.memory_space<vmem>>, vector<256x512xf32>
    %cst_25 = arith.constant dense<0.000000e+00> : vector<8x512xf32>
    %41 = tpu.matmul %34, %40, %cst_25 {dimension_numbers = #tpu.dot_dimension_numbers<[1], [0], [0], [1], [0, 0, 1, 1], [], []>} : vector<8x256xf32>, vector<256x512xf32>, vector<8x512xf32> -> vector<8x512xf32>
    %c0_26 = arith.constant 0 : index
    %c0_27 = arith.constant 0 : index
    %42 = vector.load %arg11[%c0_26, %c0_27] : memref<1x512xf32, #tpu.memory_space<vmem>>, vector<1x512xf32>
    %43 = vector.broadcast %42 : vector<1x512xf32> to vector<8x512xf32>
    %44 = arith.addf %41, %43 : vector<8x512xf32>
    %c0_28 = arith.constant 0 : index
    %c0_29 = arith.constant 0 : index
    %45 = vector.load %arg8[%c0_28, %c0_29] : memref<128x512xf32, #tpu.memory_space<vmem>>, vector<128x512xf32>
    %c0_30 = arith.constant 0 : index
    %c0_31 = arith.constant 0 : index
    %46 = vector.load %arg9[%c0_30, %c0_31] : memref<128x512xf32, #tpu.memory_space<vmem>>, vector<128x512xf32>
    %cst_32 = arith.constant 0.000000e+00 : f32
    %47 = vector.broadcast %cst_32 : f32 to vector<2x128xf32>
    %cst_33 = arith.constant 0.000000e+00 : f32
    %48 = vector.broadcast %cst_33 : f32 to vector<2x128xf32>
    %cst_34 = arith.constant 0.000000e+00 : f32
    %49 = vector.broadcast %cst_34 : f32 to vector<2x128xf32>
    %cst_35 = arith.constant 0.000000e+00 : f32
    %50 = vector.broadcast %cst_35 : f32 to vector<2x128xf32>
    %51 = vector.extract_strided_slice %39 {offsets = [0, 0], sizes = [2, 512], strides = [1, 1]} : vector<8x512xf32> to vector<2x512xf32>
    %cst_36 = arith.constant dense<0.000000e+00> : vector<2x512xf32>
    %52 = tpu.matmul %47, %45, %cst_36 {dimension_numbers = #tpu.dot_dimension_numbers<[1], [0], [0], [1], [0, 0, 1, 1], [], []>} : vector<2x128xf32>, vector<128x512xf32>, vector<2x512xf32> -> vector<2x512xf32>
    %53 = arith.addf %51, %52 : vector<2x512xf32>
    %54 = vector.extract_strided_slice %53 {offsets = [0, 0], sizes = [2, 128], strides = [1, 1]} : vector<2x512xf32> to vector<2x128xf32>
    %55 = arith.negf %54 : vector<2x128xf32>
    %56 = math.exp %55 : vector<2x128xf32>
    %cst_37 = arith.constant 1.000000e+00 : f32
    %57 = vector.broadcast %cst_37 : f32 to vector<2x128xf32>
    %58 = arith.addf %57, %56 : vector<2x128xf32>
    %59 = arith.divf %57, %58 : vector<2x128xf32>
    %60 = vector.extract_strided_slice %53 {offsets = [0, 128], sizes = [2, 128], strides = [1, 1]} : vector<2x512xf32> to vector<2x128xf32>
    %61 = arith.negf %60 : vector<2x128xf32>
    %62 = math.exp %61 : vector<2x128xf32>
    %cst_38 = arith.constant 1.000000e+00 : f32
    %63 = vector.broadcast %cst_38 : f32 to vector<2x128xf32>
    %64 = arith.addf %63, %62 : vector<2x128xf32>
    %65 = arith.divf %63, %64 : vector<2x128xf32>
    %66 = vector.extract_strided_slice %53 {offsets = [0, 256], sizes = [2, 128], strides = [1, 1]} : vector<2x512xf32> to vector<2x128xf32>
    %67 = math.tanh %66 : vector<2x128xf32>
    %68 = vector.extract_strided_slice %53 {offsets = [0, 384], sizes = [2, 128], strides = [1, 1]} : vector<2x512xf32> to vector<2x128xf32>
    %69 = arith.negf %68 : vector<2x128xf32>
    %70 = math.exp %69 : vector<2x128xf32>
    %cst_39 = arith.constant 1.000000e+00 : f32
    %71 = vector.broadcast %cst_39 : f32 to vector<2x128xf32>
    %72 = arith.addf %71, %70 : vector<2x128xf32>
    %73 = arith.divf %71, %72 : vector<2x128xf32>
    %74 = arith.mulf %65, %48 : vector<2x128xf32>
    %75 = arith.mulf %59, %67 : vector<2x128xf32>
    %76 = arith.addf %74, %75 : vector<2x128xf32>
    %77 = math.tanh %76 : vector<2x128xf32>
    %78 = arith.mulf %73, %77 : vector<2x128xf32>
    %79 = vector.extract_strided_slice %44 {offsets = [6, 0], sizes = [2, 512], strides = [1, 1]} : vector<8x512xf32> to vector<2x512xf32>
    %cst_40 = arith.constant dense<0.000000e+00> : vector<2x512xf32>
    %80 = tpu.matmul %49, %46, %cst_40 {dimension_numbers = #tpu.dot_dimension_numbers<[1], [0], [0], [1], [0, 0, 1, 1], [], []>} : vector<2x128xf32>, vector<128x512xf32>, vector<2x512xf32> -> vector<2x512xf32>
    %81 = arith.addf %79, %80 : vector<2x512xf32>
    %82 = vector.extract_strided_slice %81 {offsets = [0, 0], sizes = [2, 128], strides = [1, 1]} : vector<2x512xf32> to vector<2x128xf32>
    %83 = arith.negf %82 : vector<2x128xf32>
    %84 = math.exp %83 : vector<2x128xf32>
    %cst_41 = arith.constant 1.000000e+00 : f32
    %85 = vector.broadcast %cst_41 : f32 to vector<2x128xf32>
    %86 = arith.addf %85, %84 : vector<2x128xf32>
    %87 = arith.divf %85, %86 : vector<2x128xf32>
    %88 = vector.extract_strided_slice %81 {offsets = [0, 128], sizes = [2, 128], strides = [1, 1]} : vector<2x512xf32> to vector<2x128xf32>
    %89 = arith.negf %88 : vector<2x128xf32>
    %90 = math.exp %89 : vector<2x128xf32>
    %cst_42 = arith.constant 1.000000e+00 : f32
    %91 = vector.broadcast %cst_42 : f32 to vector<2x128xf32>
    %92 = arith.addf %91, %90 : vector<2x128xf32>
    %93 = arith.divf %91, %92 : vector<2x128xf32>
    %94 = vector.extract_strided_slice %81 {offsets = [0, 256], sizes = [2, 128], strides = [1, 1]} : vector<2x512xf32> to vector<2x128xf32>
    %95 = math.tanh %94 : vector<2x128xf32>
    %96 = vector.extract_strided_slice %81 {offsets = [0, 384], sizes = [2, 128], strides = [1, 1]} : vector<2x512xf32> to vector<2x128xf32>
    %97 = arith.negf %96 : vector<2x128xf32>
    %98 = math.exp %97 : vector<2x128xf32>
    %cst_43 = arith.constant 1.000000e+00 : f32
    %99 = vector.broadcast %cst_43 : f32 to vector<2x128xf32>
    %100 = arith.addf %99, %98 : vector<2x128xf32>
    %101 = arith.divf %99, %100 : vector<2x128xf32>
    %102 = arith.mulf %93, %50 : vector<2x128xf32>
    %103 = arith.mulf %87, %95 : vector<2x128xf32>
    %104 = arith.addf %102, %103 : vector<2x128xf32>
    %105 = math.tanh %104 : vector<2x128xf32>
    %106 = arith.mulf %101, %105 : vector<2x128xf32>
    %107 = vector.extract_strided_slice %39 {offsets = [2, 0], sizes = [2, 512], strides = [1, 1]} : vector<8x512xf32> to vector<2x512xf32>
    %cst_44 = arith.constant dense<0.000000e+00> : vector<2x512xf32>
    %108 = tpu.matmul %78, %45, %cst_44 {dimension_numbers = #tpu.dot_dimension_numbers<[1], [0], [0], [1], [0, 0, 1, 1], [], []>} : vector<2x128xf32>, vector<128x512xf32>, vector<2x512xf32> -> vector<2x512xf32>
    %109 = arith.addf %107, %108 : vector<2x512xf32>
    %110 = vector.extract_strided_slice %109 {offsets = [0, 0], sizes = [2, 128], strides = [1, 1]} : vector<2x512xf32> to vector<2x128xf32>
    %111 = arith.negf %110 : vector<2x128xf32>
    %112 = math.exp %111 : vector<2x128xf32>
    %cst_45 = arith.constant 1.000000e+00 : f32
    %113 = vector.broadcast %cst_45 : f32 to vector<2x128xf32>
    %114 = arith.addf %113, %112 : vector<2x128xf32>
    %115 = arith.divf %113, %114 : vector<2x128xf32>
    %116 = vector.extract_strided_slice %109 {offsets = [0, 128], sizes = [2, 128], strides = [1, 1]} : vector<2x512xf32> to vector<2x128xf32>
    %117 = arith.negf %116 : vector<2x128xf32>
    %118 = math.exp %117 : vector<2x128xf32>
    %cst_46 = arith.constant 1.000000e+00 : f32
    %119 = vector.broadcast %cst_46 : f32 to vector<2x128xf32>
    %120 = arith.addf %119, %118 : vector<2x128xf32>
    %121 = arith.divf %119, %120 : vector<2x128xf32>
    %122 = vector.extract_strided_slice %109 {offsets = [0, 256], sizes = [2, 128], strides = [1, 1]} : vector<2x512xf32> to vector<2x128xf32>
    %123 = math.tanh %122 : vector<2x128xf32>
    %124 = vector.extract_strided_slice %109 {offsets = [0, 384], sizes = [2, 128], strides = [1, 1]} : vector<2x512xf32> to vector<2x128xf32>
    %125 = arith.negf %124 : vector<2x128xf32>
    %126 = math.exp %125 : vector<2x128xf32>
    %cst_47 = arith.constant 1.000000e+00 : f32
    %127 = vector.broadcast %cst_47 : f32 to vector<2x128xf32>
    %128 = arith.addf %127, %126 : vector<2x128xf32>
    %129 = arith.divf %127, %128 : vector<2x128xf32>
    %130 = arith.mulf %121, %76 : vector<2x128xf32>
    %131 = arith.mulf %115, %123 : vector<2x128xf32>
    %132 = arith.addf %130, %131 : vector<2x128xf32>
    %133 = math.tanh %132 : vector<2x128xf32>
    %134 = arith.mulf %129, %133 : vector<2x128xf32>
    %135 = vector.extract_strided_slice %44 {offsets = [4, 0], sizes = [2, 512], strides = [1, 1]} : vector<8x512xf32> to vector<2x512xf32>
    %cst_48 = arith.constant dense<0.000000e+00> : vector<2x512xf32>
    %136 = tpu.matmul %106, %46, %cst_48 {dimension_numbers = #tpu.dot_dimension_numbers<[1], [0], [0], [1], [0, 0, 1, 1], [], []>} : vector<2x128xf32>, vector<128x512xf32>, vector<2x512xf32> -> vector<2x512xf32>
    %137 = arith.addf %135, %136 : vector<2x512xf32>
    %138 = vector.extract_strided_slice %137 {offsets = [0, 0], sizes = [2, 128], strides = [1, 1]} : vector<2x512xf32> to vector<2x128xf32>
    %139 = arith.negf %138 : vector<2x128xf32>
    %140 = math.exp %139 : vector<2x128xf32>
    %cst_49 = arith.constant 1.000000e+00 : f32
    %141 = vector.broadcast %cst_49 : f32 to vector<2x128xf32>
    %142 = arith.addf %141, %140 : vector<2x128xf32>
    %143 = arith.divf %141, %142 : vector<2x128xf32>
    %144 = vector.extract_strided_slice %137 {offsets = [0, 128], sizes = [2, 128], strides = [1, 1]} : vector<2x512xf32> to vector<2x128xf32>
    %145 = arith.negf %144 : vector<2x128xf32>
    %146 = math.exp %145 : vector<2x128xf32>
    %cst_50 = arith.constant 1.000000e+00 : f32
    %147 = vector.broadcast %cst_50 : f32 to vector<2x128xf32>
    %148 = arith.addf %147, %146 : vector<2x128xf32>
    %149 = arith.divf %147, %148 : vector<2x128xf32>
    %150 = vector.extract_strided_slice %137 {offsets = [0, 256], sizes = [2, 128], strides = [1, 1]} : vector<2x512xf32> to vector<2x128xf32>
    %151 = math.tanh %150 : vector<2x128xf32>
    %152 = vector.extract_strided_slice %137 {offsets = [0, 384], sizes = [2, 128], strides = [1, 1]} : vector<2x512xf32> to vector<2x128xf32>
    %153 = arith.negf %152 : vector<2x128xf32>
    %154 = math.exp %153 : vector<2x128xf32>
    %cst_51 = arith.constant 1.000000e+00 : f32
    %155 = vector.broadcast %cst_51 : f32 to vector<2x128xf32>
    %156 = arith.addf %155, %154 : vector<2x128xf32>
    %157 = arith.divf %155, %156 : vector<2x128xf32>
    %158 = arith.mulf %149, %104 : vector<2x128xf32>
    %159 = arith.mulf %143, %151 : vector<2x128xf32>
    %160 = arith.addf %158, %159 : vector<2x128xf32>
    %161 = math.tanh %160 : vector<2x128xf32>
    %162 = arith.mulf %157, %161 : vector<2x128xf32>
    %163 = vector.extract_strided_slice %39 {offsets = [4, 0], sizes = [2, 512], strides = [1, 1]} : vector<8x512xf32> to vector<2x512xf32>
    %cst_52 = arith.constant dense<0.000000e+00> : vector<2x512xf32>
    %164 = tpu.matmul %134, %45, %cst_52 {dimension_numbers = #tpu.dot_dimension_numbers<[1], [0], [0], [1], [0, 0, 1, 1], [], []>} : vector<2x128xf32>, vector<128x512xf32>, vector<2x512xf32> -> vector<2x512xf32>
    %165 = arith.addf %163, %164 : vector<2x512xf32>
    %166 = vector.extract_strided_slice %165 {offsets = [0, 0], sizes = [2, 128], strides = [1, 1]} : vector<2x512xf32> to vector<2x128xf32>
    %167 = arith.negf %166 : vector<2x128xf32>
    %168 = math.exp %167 : vector<2x128xf32>
    %cst_53 = arith.constant 1.000000e+00 : f32
    %169 = vector.broadcast %cst_53 : f32 to vector<2x128xf32>
    %170 = arith.addf %169, %168 : vector<2x128xf32>
    %171 = arith.divf %169, %170 : vector<2x128xf32>
    %172 = vector.extract_strided_slice %165 {offsets = [0, 128], sizes = [2, 128], strides = [1, 1]} : vector<2x512xf32> to vector<2x128xf32>
    %173 = arith.negf %172 : vector<2x128xf32>
    %174 = math.exp %173 : vector<2x128xf32>
    %cst_54 = arith.constant 1.000000e+00 : f32
    %175 = vector.broadcast %cst_54 : f32 to vector<2x128xf32>
    %176 = arith.addf %175, %174 : vector<2x128xf32>
    %177 = arith.divf %175, %176 : vector<2x128xf32>
    %178 = vector.extract_strided_slice %165 {offsets = [0, 256], sizes = [2, 128], strides = [1, 1]} : vector<2x512xf32> to vector<2x128xf32>
    %179 = math.tanh %178 : vector<2x128xf32>
    %180 = vector.extract_strided_slice %165 {offsets = [0, 384], sizes = [2, 128], strides = [1, 1]} : vector<2x512xf32> to vector<2x128xf32>
    %181 = arith.negf %180 : vector<2x128xf32>
    %182 = math.exp %181 : vector<2x128xf32>
    %cst_55 = arith.constant 1.000000e+00 : f32
    %183 = vector.broadcast %cst_55 : f32 to vector<2x128xf32>
    %184 = arith.addf %183, %182 : vector<2x128xf32>
    %185 = arith.divf %183, %184 : vector<2x128xf32>
    %186 = arith.mulf %177, %132 : vector<2x128xf32>
    %187 = arith.mulf %171, %179 : vector<2x128xf32>
    %188 = arith.addf %186, %187 : vector<2x128xf32>
    %189 = math.tanh %188 : vector<2x128xf32>
    %190 = arith.mulf %185, %189 : vector<2x128xf32>
    %191 = vector.extract_strided_slice %44 {offsets = [2, 0], sizes = [2, 512], strides = [1, 1]} : vector<8x512xf32> to vector<2x512xf32>
    %cst_56 = arith.constant dense<0.000000e+00> : vector<2x512xf32>
    %192 = tpu.matmul %162, %46, %cst_56 {dimension_numbers = #tpu.dot_dimension_numbers<[1], [0], [0], [1], [0, 0, 1, 1], [], []>} : vector<2x128xf32>, vector<128x512xf32>, vector<2x512xf32> -> vector<2x512xf32>
    %193 = arith.addf %191, %192 : vector<2x512xf32>
    %194 = vector.extract_strided_slice %193 {offsets = [0, 0], sizes = [2, 128], strides = [1, 1]} : vector<2x512xf32> to vector<2x128xf32>
    %195 = arith.negf %194 : vector<2x128xf32>
    %196 = math.exp %195 : vector<2x128xf32>
    %cst_57 = arith.constant 1.000000e+00 : f32
    %197 = vector.broadcast %cst_57 : f32 to vector<2x128xf32>
    %198 = arith.addf %197, %196 : vector<2x128xf32>
    %199 = arith.divf %197, %198 : vector<2x128xf32>
    %200 = vector.extract_strided_slice %193 {offsets = [0, 128], sizes = [2, 128], strides = [1, 1]} : vector<2x512xf32> to vector<2x128xf32>
    %201 = arith.negf %200 : vector<2x128xf32>
    %202 = math.exp %201 : vector<2x128xf32>
    %cst_58 = arith.constant 1.000000e+00 : f32
    %203 = vector.broadcast %cst_58 : f32 to vector<2x128xf32>
    %204 = arith.addf %203, %202 : vector<2x128xf32>
    %205 = arith.divf %203, %204 : vector<2x128xf32>
    %206 = vector.extract_strided_slice %193 {offsets = [0, 256], sizes = [2, 128], strides = [1, 1]} : vector<2x512xf32> to vector<2x128xf32>
    %207 = math.tanh %206 : vector<2x128xf32>
    %208 = vector.extract_strided_slice %193 {offsets = [0, 384], sizes = [2, 128], strides = [1, 1]} : vector<2x512xf32> to vector<2x128xf32>
    %209 = arith.negf %208 : vector<2x128xf32>
    %210 = math.exp %209 : vector<2x128xf32>
    %cst_59 = arith.constant 1.000000e+00 : f32
    %211 = vector.broadcast %cst_59 : f32 to vector<2x128xf32>
    %212 = arith.addf %211, %210 : vector<2x128xf32>
    %213 = arith.divf %211, %212 : vector<2x128xf32>
    %214 = arith.mulf %205, %160 : vector<2x128xf32>
    %215 = arith.mulf %199, %207 : vector<2x128xf32>
    %216 = arith.addf %214, %215 : vector<2x128xf32>
    %217 = math.tanh %216 : vector<2x128xf32>
    %218 = arith.mulf %213, %217 : vector<2x128xf32>
    %219 = vector.extract_strided_slice %39 {offsets = [6, 0], sizes = [2, 512], strides = [1, 1]} : vector<8x512xf32> to vector<2x512xf32>
    %cst_60 = arith.constant dense<0.000000e+00> : vector<2x512xf32>
    %220 = tpu.matmul %190, %45, %cst_60 {dimension_numbers = #tpu.dot_dimension_numbers<[1], [0], [0], [1], [0, 0, 1, 1], [], []>} : vector<2x128xf32>, vector<128x512xf32>, vector<2x512xf32> -> vector<2x512xf32>
    %221 = arith.addf %219, %220 : vector<2x512xf32>
    %222 = vector.extract_strided_slice %221 {offsets = [0, 0], sizes = [2, 128], strides = [1, 1]} : vector<2x512xf32> to vector<2x128xf32>
    %223 = arith.negf %222 : vector<2x128xf32>
    %224 = math.exp %223 : vector<2x128xf32>
    %cst_61 = arith.constant 1.000000e+00 : f32
    %225 = vector.broadcast %cst_61 : f32 to vector<2x128xf32>
    %226 = arith.addf %225, %224 : vector<2x128xf32>
    %227 = arith.divf %225, %226 : vector<2x128xf32>
    %228 = vector.extract_strided_slice %221 {offsets = [0, 128], sizes = [2, 128], strides = [1, 1]} : vector<2x512xf32> to vector<2x128xf32>
    %229 = arith.negf %228 : vector<2x128xf32>
    %230 = math.exp %229 : vector<2x128xf32>
    %cst_62 = arith.constant 1.000000e+00 : f32
    %231 = vector.broadcast %cst_62 : f32 to vector<2x128xf32>
    %232 = arith.addf %231, %230 : vector<2x128xf32>
    %233 = arith.divf %231, %232 : vector<2x128xf32>
    %234 = vector.extract_strided_slice %221 {offsets = [0, 256], sizes = [2, 128], strides = [1, 1]} : vector<2x512xf32> to vector<2x128xf32>
    %235 = math.tanh %234 : vector<2x128xf32>
    %236 = vector.extract_strided_slice %221 {offsets = [0, 384], sizes = [2, 128], strides = [1, 1]} : vector<2x512xf32> to vector<2x128xf32>
    %237 = arith.negf %236 : vector<2x128xf32>
    %238 = math.exp %237 : vector<2x128xf32>
    %cst_63 = arith.constant 1.000000e+00 : f32
    %239 = vector.broadcast %cst_63 : f32 to vector<2x128xf32>
    %240 = arith.addf %239, %238 : vector<2x128xf32>
    %241 = arith.divf %239, %240 : vector<2x128xf32>
    %242 = arith.mulf %233, %188 : vector<2x128xf32>
    %243 = arith.mulf %227, %235 : vector<2x128xf32>
    %244 = arith.addf %242, %243 : vector<2x128xf32>
    %245 = math.tanh %244 : vector<2x128xf32>
    %246 = arith.mulf %241, %245 : vector<2x128xf32>
    %247 = vector.extract_strided_slice %44 {offsets = [0, 0], sizes = [2, 512], strides = [1, 1]} : vector<8x512xf32> to vector<2x512xf32>
    %cst_64 = arith.constant dense<0.000000e+00> : vector<2x512xf32>
    %248 = tpu.matmul %218, %46, %cst_64 {dimension_numbers = #tpu.dot_dimension_numbers<[1], [0], [0], [1], [0, 0, 1, 1], [], []>} : vector<2x128xf32>, vector<128x512xf32>, vector<2x512xf32> -> vector<2x512xf32>
    %249 = arith.addf %247, %248 : vector<2x512xf32>
    %250 = vector.extract_strided_slice %249 {offsets = [0, 0], sizes = [2, 128], strides = [1, 1]} : vector<2x512xf32> to vector<2x128xf32>
    %251 = arith.negf %250 : vector<2x128xf32>
    %252 = math.exp %251 : vector<2x128xf32>
    %cst_65 = arith.constant 1.000000e+00 : f32
    %253 = vector.broadcast %cst_65 : f32 to vector<2x128xf32>
    %254 = arith.addf %253, %252 : vector<2x128xf32>
    %255 = arith.divf %253, %254 : vector<2x128xf32>
    %256 = vector.extract_strided_slice %249 {offsets = [0, 128], sizes = [2, 128], strides = [1, 1]} : vector<2x512xf32> to vector<2x128xf32>
    %257 = arith.negf %256 : vector<2x128xf32>
    %258 = math.exp %257 : vector<2x128xf32>
    %cst_66 = arith.constant 1.000000e+00 : f32
    %259 = vector.broadcast %cst_66 : f32 to vector<2x128xf32>
    %260 = arith.addf %259, %258 : vector<2x128xf32>
    %261 = arith.divf %259, %260 : vector<2x128xf32>
    %262 = vector.extract_strided_slice %249 {offsets = [0, 256], sizes = [2, 128], strides = [1, 1]} : vector<2x512xf32> to vector<2x128xf32>
    %263 = math.tanh %262 : vector<2x128xf32>
    %264 = vector.extract_strided_slice %249 {offsets = [0, 384], sizes = [2, 128], strides = [1, 1]} : vector<2x512xf32> to vector<2x128xf32>
    %265 = arith.negf %264 : vector<2x128xf32>
    %266 = math.exp %265 : vector<2x128xf32>
    %cst_67 = arith.constant 1.000000e+00 : f32
    %267 = vector.broadcast %cst_67 : f32 to vector<2x128xf32>
    %268 = arith.addf %267, %266 : vector<2x128xf32>
    %269 = arith.divf %267, %268 : vector<2x128xf32>
    %270 = arith.mulf %261, %216 : vector<2x128xf32>
    %271 = arith.mulf %255, %263 : vector<2x128xf32>
    %272 = arith.addf %270, %271 : vector<2x128xf32>
    %273 = math.tanh %272 : vector<2x128xf32>
    %274 = arith.mulf %269, %273 : vector<2x128xf32>
    %c0_68 = arith.constant 0 : index
    %c0_69 = arith.constant 0 : index
    %275 = vector.load %arg12[%c0_68, %c0_69] : memref<128x2xf32, #tpu.memory_space<vmem>>, vector<128x2xf32>
    %cst_70 = arith.constant dense<0.000000e+00> : vector<2x2xf32>
    %276 = tpu.matmul %78, %275, %cst_70 {dimension_numbers = #tpu.dot_dimension_numbers<[1], [0], [0], [1], [0, 0, 1, 1], [], []>} : vector<2x128xf32>, vector<128x2xf32>, vector<2x2xf32> -> vector<2x2xf32>
    %c0_71 = arith.constant 0 : index
    %c0_72 = arith.constant 0 : index
    %277 = vector.load %arg13[%c0_71, %c0_72] : memref<128x2xf32, #tpu.memory_space<vmem>>, vector<128x2xf32>
    %cst_73 = arith.constant dense<0.000000e+00> : vector<2x2xf32>
    %278 = tpu.matmul %274, %277, %cst_73 {dimension_numbers = #tpu.dot_dimension_numbers<[1], [0], [0], [1], [0, 0, 1, 1], [], []>} : vector<2x128xf32>, vector<128x2xf32>, vector<2x2xf32> -> vector<2x2xf32>
    %279 = arith.addf %276, %278 : vector<2x2xf32>
    %c0_74 = arith.constant 0 : index
    %c0_75 = arith.constant 0 : index
    %280 = vector.load %arg16[%c0_74, %c0_75] : memref<1x2xf32, #tpu.memory_space<vmem>>, vector<1x2xf32>
    %281 = vector.broadcast %280 : vector<1x2xf32> to vector<2x2xf32>
    %282 = arith.addf %279, %281 : vector<2x2xf32>
    %c0_76 = arith.constant 0 : index
    %c0_77 = arith.constant 0 : index
    %283 = vector.load %arg14[%c0_76, %c0_77] : memref<128x2xf32, #tpu.memory_space<vmem>>, vector<128x2xf32>
    %cst_78 = arith.constant dense<0.000000e+00> : vector<2x2xf32>
    %284 = tpu.matmul %134, %283, %cst_78 {dimension_numbers = #tpu.dot_dimension_numbers<[1], [0], [0], [1], [0, 0, 1, 1], [], []>} : vector<2x128xf32>, vector<128x2xf32>, vector<2x2xf32> -> vector<2x2xf32>
    %c0_79 = arith.constant 0 : index
    %c0_80 = arith.constant 0 : index
    %285 = vector.load %arg15[%c0_79, %c0_80] : memref<128x2xf32, #tpu.memory_space<vmem>>, vector<128x2xf32>
    %cst_81 = arith.constant dense<0.000000e+00> : vector<2x2xf32>
    %286 = tpu.matmul %218, %285, %cst_81 {dimension_numbers = #tpu.dot_dimension_numbers<[1], [0], [0], [1], [0, 0, 1, 1], [], []>} : vector<2x128xf32>, vector<128x2xf32>, vector<2x2xf32> -> vector<2x2xf32>
    %287 = arith.addf %284, %286 : vector<2x2xf32>
    %288 = arith.addf %282, %287 : vector<2x2xf32>
    %c0_82 = arith.constant 0 : index
    %c0_83 = arith.constant 0 : index
    %c0_84 = arith.constant 0 : index
    %289 = vector.load %arg17[%c0_82, %c0_83, %c0_84] : memref<3x2x2xf32, #tpu.memory_space<vmem>>, vector<1x2x2xf32>
    %290 = vector.shape_cast %289 : vector<1x2x2xf32> to vector<2x2xf32>
    %291 = vector.shape_cast %288 : vector<2x2xf32> to vector<1x2x2xf32>
    tpu.vector_store %arg17[%c0_82, %c0_83, %c0_84], %291 {strides = array<i32>} : memref<3x2x2xf32, #tpu.memory_space<vmem>>, vector<1x2x2xf32>,
    %c0_85 = arith.constant 0 : index
    %c0_86 = arith.constant 0 : index
    %292 = vector.load %arg14[%c0_85, %c0_86] : memref<128x2xf32, #tpu.memory_space<vmem>>, vector<128x2xf32>
    %cst_87 = arith.constant dense<0.000000e+00> : vector<2x2xf32>
    %293 = tpu.matmul %190, %292, %cst_87 {dimension_numbers = #tpu.dot_dimension_numbers<[1], [0], [0], [1], [0, 0, 1, 1], [], []>} : vector<2x128xf32>, vector<128x2xf32>, vector<2x2xf32> -> vector<2x2xf32>
    %c0_88 = arith.constant 0 : index
    %c0_89 = arith.constant 0 : index
    %294 = vector.load %arg15[%c0_88, %c0_89] : memref<128x2xf32, #tpu.memory_space<vmem>>, vector<128x2xf32>
    %cst_90 = arith.constant dense<0.000000e+00> : vector<2x2xf32>
    %295 = tpu.matmul %162, %294, %cst_90 {dimension_numbers = #tpu.dot_dimension_numbers<[1], [0], [0], [1], [0, 0, 1, 1], [], []>} : vector<2x128xf32>, vector<128x2xf32>, vector<2x2xf32> -> vector<2x2xf32>
    %296 = arith.addf %293, %295 : vector<2x2xf32>
    %297 = arith.addf %282, %296 : vector<2x2xf32>
    %c1 = arith.constant 1 : index
    %c0_91 = arith.constant 0 : index
    %c0_92 = arith.constant 0 : index
    %298 = vector.load %arg17[%c1, %c0_91, %c0_92] : memref<3x2x2xf32, #tpu.memory_space<vmem>>, vector<1x2x2xf32>
    %299 = vector.shape_cast %298 : vector<1x2x2xf32> to vector<2x2xf32>
    %300 = vector.shape_cast %297 : vector<2x2xf32> to vector<1x2x2xf32>
    tpu.vector_store %arg17[%c1, %c0_91, %c0_92], %300 {strides = array<i32>} : memref<3x2x2xf32, #tpu.memory_space<vmem>>, vector<1x2x2xf32>,
    %c0_93 = arith.constant 0 : index
    %c0_94 = arith.constant 0 : index
    %301 = vector.load %arg14[%c0_93, %c0_94] : memref<128x2xf32, #tpu.memory_space<vmem>>, vector<128x2xf32>
    %cst_95 = arith.constant dense<0.000000e+00> : vector<2x2xf32>
    %302 = tpu.matmul %246, %301, %cst_95 {dimension_numbers = #tpu.dot_dimension_numbers<[1], [0], [0], [1], [0, 0, 1, 1], [], []>} : vector<2x128xf32>, vector<128x2xf32>, vector<2x2xf32> -> vector<2x2xf32>
    %c0_96 = arith.constant 0 : index
    %c0_97 = arith.constant 0 : index
    %303 = vector.load %arg15[%c0_96, %c0_97] : memref<128x2xf32, #tpu.memory_space<vmem>>, vector<128x2xf32>
    %cst_98 = arith.constant dense<0.000000e+00> : vector<2x2xf32>
    %304 = tpu.matmul %106, %303, %cst_98 {dimension_numbers = #tpu.dot_dimension_numbers<[1], [0], [0], [1], [0, 0, 1, 1], [], []>} : vector<2x128xf32>, vector<128x2xf32>, vector<2x2xf32> -> vector<2x2xf32>
    %305 = arith.addf %302, %304 : vector<2x2xf32>
    %306 = arith.addf %282, %305 : vector<2x2xf32>
    %c2 = arith.constant 2 : index
    %c0_99 = arith.constant 0 : index
    %c0_100 = arith.constant 0 : index
    %307 = vector.load %arg17[%c2, %c0_99, %c0_100] : memref<3x2x2xf32, #tpu.memory_space<vmem>>, vector<1x2x2xf32>
    %308 = vector.shape_cast %307 : vector<1x2x2xf32> to vector<2x2xf32>
    %309 = vector.shape_cast %306 : vector<2x2xf32> to vector<1x2x2xf32>
    tpu.vector_store %arg17[%c2, %c0_99, %c0_100], %309 {strides = array<i32>} : memref<3x2x2xf32, #tpu.memory_space<vmem>>, vector<1x2x2xf32>,
    return
  }
}

</mosaic_0001>

<bundles_post_ra>
// kernel: fused_forward.1
= control target key start
LH: loop header
LB: loop body
LE: loop exit
PB: predicated region body
PF: predicated region fallthrough
CT: control target
= control target key end

     0   :  { %s7423_s0 = inlined_call_operand.hbm [shape: f32[64,768], index: 0, kind: input, shape index: {}]   ;;  %s7424_s1 = inlined_call_operand.vmem [shape: f32[8,64], index: 1, kind: input, shape index: {}]   ;;  %s7425_s2 = inlined_call_operand.vmem [shape: f32[8,1], index: 2, kind: input, shape index: {}]   ;;  %s7426_s3 = inlined_call_operand.vmem [shape: f32[1,768], index: 3, kind: input, shape index: {}]   ;;  %s7427_s4 = inlined_call_operand.hbm [shape: f32[768,256], index: 4, kind: input, shape index: {}]   ;;  %s7428_s5 = inlined_call_operand.vmem [shape: f32[1,256], index: 5, kind: input, shape index: {}]   ;;  %s7429_s6 = inlined_call_operand.hbm [shape: f32[256,512], index: 6, kind: input, shape index: {}]   ;;  %s7430_s7 = inlined_call_operand.hbm [shape: f32[256,512], index: 7, kind: input, shape index: {}]   ;;  %s7431_s8 = inlined_call_operand.vmem [shape: f32[128,512], index: 8, kind: input, shape index: {}]   ;;  %s7432_s9 = inlined_call_operand.hbm [shape: f32[128,512], index: 9, kind: input, shape index: {}]   ;;  %s7433_s10 = inlined_call_operand.vmem [shape: f32[1,512], index: 10, kind: input, shape index: {}]   ;;  %s7434_s11 = inlined_call_operand.vmem [shape: f32[1,512], index: 11, kind: input, shape index: {}]   ;;  %s7435_s12 = inlined_call_operand.vmem [shape: f32[128,2], index: 12, kind: input, shape index: {}]   ;;  %s7436_s13 = inlined_call_operand.vmem [shape: f32[128,2], index: 13, kind: input, shape index: {}]   ;;  %s7437_s14 = inlined_call_operand.vmem [shape: f32[128,2], index: 14, kind: input, shape index: {}]   ;;  %s7438_s15 = inlined_call_operand.vmem [shape: f32[128,2], index: 15, kind: input, shape index: {}]   ;;  %s7439_s16 = inlined_call_operand.vmem [shape: f32[1,2], index: 16, kind: input, shape index: {}]   ;;  %s7440_s17 = inlined_call_operand.vmem [shape: f32[3,2,2], index: 17, kind: output, shape index: {}]  }
   0x1   :  { %7535 = sst [smem:[#allocation48_spill]] %s7423_s0 }
   0x2   :  { %7536 = sst [smem:[#allocation49_spill]] %s7424_s1 }
   0x3   :  { %7537 = sst [smem:[#allocation50_spill]] %s7440_s17 }
   0x4   :  { %22 = vsyncpa [#allocation3], 0 }
   0x5   :  { %23 = vsyncpa [#allocation5], 0 }
   0x6   :  { %24 = vsyncpa [#allocation8], 0  ;;  %s5854_s24 = smov [#allocation4]   ;;  %s5738_s28 = scalar_lea.hbm %s7427_s4, 24576 }
   0x7   :  { %s48_s25 = sshll.u32 %s5854_s24, 4  ;;  %p5739_p0 = scmp.ne.s32.totalorder %s7427_s4, %s5738_s28  ;;  %s49_s25 = int_to_ptr.vmem [resolvable:$true] %s48_s25 }
   0x8   :  { %p5742_p1 = scmp.lt.u32.totalorder %s5738_s28, %s7427_s4 }
   0xa   :  { %p5744_p2 = pnand %p5742_p1, %p5739_p0 }
   0xc   :  { %5747 = shalt.err (!%p5744_p2)
}
   0xd   :  { %s5748_s19 = scalar_lea.vmem %s49_s25, 24576  ;;  %p5753_p4 = scmp.lt.s32.totalorder %s49_s25, %s49_s25 }
   0xe   :  { %p5749_p3 = scmp.ne.s32.totalorder %s49_s25, %s5748_s19  ;;  %p5754_p5 = scmp.lt.s32.totalorder %s5748_s19, %s5748_s19 }
  0x10   :  { %p5755_p6 = por %p5754_p5, %p5753_p4 }
  0x12   :  { %p5756_p7 = pnand %p5755_p6, %p5749_p3 }
  0x14   :  { %5759 = shalt.err (!%p5756_p7)
}
  0x15   :  { %s5855_s1 = smov 256   ;;  %s5856_s20 = smov 16  }
  0x16   :  { %54 = dma.hbm_to_vmem [thread:$0]  %s7427_s4, 24576, %s49_s25, [#allocation5], %s5855_s1, %s5855_s1, %s5856_s20  }
  0x17   :  { %s5857_s23 = smov [#allocation7]   ;;  %s5858_s26 = smov [#allocation2]  }
  0x18   :  { %s74_s24 = sshll.u32 %s5857_s23, 4  ;;  %s30_s27 = sshll.u32 %s5858_s26, 4  ;;  %s75_s24 = int_to_ptr.vmem [resolvable:$true] %s74_s24  ;;  %s31_s27 = int_to_ptr.vmem [resolvable:$true] %s30_s27 }
  0x19   :  { %s5760_s0 = scalar_lea.hbm %s7430_s7, 16384 }
  0x1a   :  { %p5761_p8 = scmp.ne.s32.totalorder %s7430_s7, %s5760_s0  ;;  %p5764_p9 = scmp.lt.u32.totalorder %s5760_s0, %s7430_s7 }
  0x1c   :  { %p5766_p10 = pnand %p5764_p9, %p5761_p8 }
  0x1e   :  { %5769 = shalt.err (!%p5766_p10)
}
  0x1f   :  { %s5770_s4 = scalar_lea.vmem %s75_s24, 16384  ;;  %p5775_p12 = scmp.lt.s32.totalorder %s75_s24, %s75_s24 }
  0x20   :  { %p5771_p11 = scmp.ne.s32.totalorder %s75_s24, %s5770_s4  ;;  %p5776_p13 = scmp.lt.s32.totalorder %s5770_s4, %s5770_s4 }
  0x22   :  { %p5777_p0 = por %p5776_p13, %p5775_p12 }
  0x24   :  { %p5778_p1 = pnand %p5777_p0, %p5771_p11 }
  0x26   :  { %5781 = shalt.err (!%p5778_p1)
}
  0x27   :  { %s7443_s25 = smov 512   ;;  %s5860_s1 = smov 32  }
  0x28   :  { %80 = dma.hbm_to_vmem [thread:$0]  %s7430_s7, 16384, %s75_s24, [#allocation8], %s7443_s25, %s7443_s25, %s5860_s1  }
  0x29   :  { %s7538_s23 = sld [smem:[#allocation48_spill]] }
  0x2f   :  { %s5782_s26 = scalar_lea.hbm %s7538_s23, 6144 }
  0x30   :  { %p5783_p2 = scmp.ne.s32.totalorder %s7538_s23, %s5782_s26  ;;  %p5786_p3 = scmp.lt.u32.totalorder %s5782_s26, %s7538_s23 }
  0x32   :  { %p5788_p4 = pnand %p5786_p3, %p5783_p2 }
  0x34   :  { %5791 = shalt.err (!%p5788_p4)
}
  0x35   :  { %s5792_s18 = scalar_lea.vmem %s31_s27, 6144  ;;  %p5797_p6 = scmp.lt.s32.totalorder %s31_s27, %s31_s27 }
  0x36   :  { %p5793_p5 = scmp.ne.s32.totalorder %s31_s27, %s5792_s18  ;;  %p5798_p7 = scmp.lt.s32.totalorder %s5792_s18, %s5792_s18 }
  0x38   :  { %p5799_p8 = por %p5798_p7, %p5797_p6 }
  0x3a   :  { %p5800_p9 = pnand %p5799_p8, %p5793_p5 }
  0x3c   :  { %5803 = shalt.err (!%p5800_p9)
}
  0x3d   :  { %s5861_s7 = smov 768   ;;  %s5862_s24 = smov 48  }
  0x3e   :  { %36 = dma.hbm_to_vmem [thread:$0]  %s7538_s23, 6144, %s31_s27, [#allocation3], %s5861_s7, %s5861_s7, %s5862_s24  }
  0x3f   :  { %s5863_s20 = smov [#allocation6]   ;;  %s5864_s17 = smov [#allocation9]  }
  0x40   :  { %s62_s21 = sshll.u32 %s5863_s20, 4  ;;  %s88_s22 = sshll.u32 %s5864_s17, 4  ;;  %s63_s21 = int_to_ptr.vmem [resolvable:$true] %s62_s21  ;;  %s89_s22 = int_to_ptr.vmem [resolvable:$true] %s88_s22 }
  0x41   :  { %s5804_s29 = scalar_lea.hbm %s7429_s6, 16384 }
  0x42   :  { %p5805_p10 = scmp.ne.s32.totalorder %s7429_s6, %s5804_s29  ;;  %p5808_p11 = scmp.lt.u32.totalorder %s5804_s29, %s7429_s6 }
  0x44   :  { %p5810_p12 = pnand %p5808_p11, %p5805_p10 }
  0x46   :  { %5813 = shalt.err (!%p5810_p12)
}
  0x47   :  { %s5814_s27 = scalar_lea.vmem %s63_s21, 16384  ;;  %p5819_p0 = scmp.lt.s32.totalorder %s63_s21, %s63_s21 }
  0x48   :  { %p5815_p13 = scmp.ne.s32.totalorder %s63_s21, %s5814_s27  ;;  %p5820_p1 = scmp.lt.s32.totalorder %s5814_s27, %s5814_s27 }
  0x4a   :  { %p5821_p2 = por %p5820_p1, %p5819_p0 }
  0x4c   :  { %p5822_p3 = pnand %p5821_p2, %p5815_p13 }
  0x4e   :  { %5825 = shalt.err (!%p5822_p3)
}
  0x4f   :  { %s7539_s23 = smov 512   ;;  %s5826_s4 = scalar_lea.hbm %s7432_s9, 8192 }
  0x50   :  { %68 = dma.hbm_to_vmem [thread:$0]  %s7429_s6, 16384, %s63_s21, [#allocation5], %s7539_s23, %s7539_s23, %s5860_s1  }
  0x51   :  { %p5827_p4 = scmp.ne.s32.totalorder %s7432_s9, %s5826_s4  ;;  %p5830_p5 = scmp.lt.u32.totalorder %s5826_s4, %s7432_s9 }
  0x53   :  { %p5832_p6 = pnand %p5830_p5, %p5827_p4 }
  0x55   :  { %5835 = shalt.err (!%p5832_p6)
}
  0x56   :  { %s5836_s29 = scalar_lea.vmem %s89_s22, 8192  ;;  %p5841_p8 = scmp.lt.s32.totalorder %s89_s22, %s89_s22 }
  0x57   :  { %p5837_p7 = scmp.ne.s32.totalorder %s89_s22, %s5836_s29  ;;  %p5842_p9 = scmp.lt.s32.totalorder %s5836_s29, %s5836_s29 }
  0x59   :  { %p5843_p10 = por %p5842_p9, %p5841_p8 }
  0x5b   :  { %p5844_p11 = pnand %p5843_p10, %p5837_p7 }
  0x5d   :  { %5847 = shalt.err (!%p5844_p11)
}
  0x5e   :  { %94 = dma.hbm_to_vmem [thread:$0]  %s7432_s9, 8192, %s89_s22, [#allocation8], %s7539_s23, %s7539_s23, %s5860_s1  }
  0x5f   :  { %5848 = dma.done.wait [#allocation3], 6144  }
  0x60   :  { %5849 = vsyncadd [#allocation3], 4294961152 }
  0x61   :  { %5850 = dma.done.wait [#allocation5], 40960  }
  0x62   :  { %5851 = vsyncadd [#allocation5], 4294926336 }
  0x63   :  { %5852 = dma.done.wait [#allocation8], 24576  }
  0x64   :  { %5853 = vsyncadd [#allocation8], 4294942720  ;;  %v175_v0 = vlaneseq  ;;  %v6048_v10 = vld [vmem:[#allocation2] sm:$0xff]  ;;  %v6050_v11 = vld [vmem:[#allocation2 + $0x8] sm:$0xff]  ;;  %vm329_vm0 = vcmask 130112   ;;  %vm336_vm1 = vcmask 195712  }
  0x65   :  { %v6052_v12 = vld [vmem:[#allocation2 + $0x10] sm:$0xff]  ;;  %v6054_v13 = vld [vmem:[#allocation2 + $0x18] sm:$0xff]  ;;  %v6056_v14 = vld [vmem:[#allocation2 + $0x20] sm:$0xff]  ;;  %vm343_vm2 = vcmask 261312   ;;  %vm350_vm3 = vcmask 326912   ;;  %vm357_vm4 = vcmask 392512  }
  0x66   :  { %v6028_v1 = vshrl.u32 %v175_v0, 7  ;;  %v6030_v2 = vand.u32 127, %v175_v0  ;;  %7544 = vst [vmem:[#allocation17_spill] sm:$0xff] %v6056_v14  ;;  %v173_v15 = vld [vmem:[%s7426_s3] sm:$0x3f]  ;;  %v6061_v16 = vld [vmem:[#allocation2 + $0x50] sm:$0xff] }
  0x67   :  { %7545 = vst [vmem:[#allocation18_spill] sm:$0xff] %v6061_v16  ;;  %v6075_v21 = vld [vmem:[#allocation2 + $0x60] sm:$0xff]  ;;  %v6077_v22 = vld [vmem:[#allocation2 + $0x68] sm:$0xff]  ;;  %v6087_v27 = vld [vmem:[#allocation2 + $0x70] sm:$0xff]  ;;  %s7557_s0 = sld [smem:[#allocation49_spill]]  ;;  %vm364_vm5 = vcmask 458112  }
  0x68   :  { %v6035_v4 = vsub.s32 0, %v6028_v1  ;;  %v6038_v5 = vsub.s32 1, %v6028_v1  ;;  %v6041_v6 = vsub.s32 2, %v6028_v1  ;;  %v6044_v7 = vsub.s32 3, %v6028_v1  ;;  %v6079_v23 = vld [vmem:[#allocation2 + $0x28] sm:$0xff]  ;;  %v6095_v31 = vld [vmem:[#allocation2 + $0x78] sm:$0xff] }
  0x69   :  { %v193_v8 = vsub.s32 4, %v6028_v1  ;;  %v197_v9 = vsub.s32 5, %v6028_v1  ;;  %v6097_v32 = vld [vmem:[#allocation2 + $0x80] sm:$0xff]  ;;  %v6099_v33 = vld [vmem:[#allocation2 + $0x30] sm:$0xff]  ;;  %v6103_v35 = vld [vmem:[#allocation2 + $0x88] sm:$0xff]  ;;  %vm371_vm6 = vcmask 523712  }
  0x6a   :  { %7540 = vst [vmem:[#allocation13_spill] sm:$0xff] %v6035_v4  ;;  %7541 = vst [vmem:[#allocation14_spill] sm:$0xff] %v6038_v5  ;;  %v6064_v17 = vrot.slane %v173_v15, %v6035_v4  ;;  %v6067_v18 = vrot.slane %v173_v15, %v6038_v5  ;;  %v6070_v19 = vrot.slane %v173_v15, %v6041_v6  ;;  %v6109_v38 = vld [vmem:[#allocation2 + $0x38] sm:$0xff]  ;;  %v6111_v39 = vld [vmem:[#allocation2 + $0x40] sm:$0xff]  ;;  %vm387_vm8 = vcmask 523264   ;;  %s7675_s26 = sld [smem:[#allocation50_spill]] }
  0x6b   :  { %7542 = vst [vmem:[#allocation15_spill] sm:$0xff] %v6041_v6  ;;  %7543 = vst [vmem:[#allocation16_spill] sm:$0xff] %v6044_v7  ;;  %v6073_v20 = vrot.slane %v173_v15, %v6044_v7  ;;  %v6081_v24 = vrot.slane %v173_v15, %v193_v8  ;;  %v6083_v25 = vrot.slane %v173_v15, %v197_v9  ;;  %v6117_v43 = vld [vmem:[#allocation2 + $0xb0] sm:$0xff]  ;;  %v6121_v45 = vld [vmem:[#allocation2 + $0x48] sm:$0xff]  ;;  %vm5868_vm9 = vmmov 0  }
  0x6c   :  { %v205_v28 = vmul.f32 %v6064_v17, %v6048_v10  ;;  %v206_v29 = vmul.f32 %v6067_v18, %v6050_v11  ;;  %v207_v30 = vmul.f32 %v6070_v19, %v6052_v12  ;;  %7546 = vst [vmem:[#allocation19_spill] sm:$0xff] %v6097_v32  ;;  %7547 = vst [vmem:[#allocation20_spill] sm:$0xff] %v6103_v35  ;;  %v6123_v46 = vld [vmem:[#allocation2 + $0x90] sm:$0xff]  ;;  %v6131_v51 = vld [vmem:[#allocation2 + $0x98] sm:$0xff]  ;;  %vm3576_vm10 = vcmask 9216  }
  0x6d   :  { %v208_v34 = vmul.f32 %v6073_v20, %v6054_v13  ;;  %v217_v36 = vmul.f32 %v6064_v17, %v6075_v21  ;;  %v218_v37 = vmul.f32 %v6067_v18, %v6077_v22  ;;  %v209_v40 = vmul.f32 %v6081_v24, %v6056_v14  ;;  %7548 = vst [vmem:[#allocation21_spill] sm:$0xff] %v6117_v43  ;;  %v6133_v52 = vld [vmem:[#allocation2 + $0xa0] sm:$0xff]  ;;  %v6137_v55 = vld [vmem:[#allocation2 + $0x58] sm:$0xff]  ;;  %v6143_v58 = vld [vmem:[#allocation2 + $0xa8] sm:$0xff] }
  0x6e   :  { %v210_v41 = vmul.f32 %v6083_v25, %v6079_v23  ;;  %v253_v42 = vadd.f32 %v206_v29, %v205_v28  ;;  %v219_v44 = vmul.f32 %v6070_v19, %v6087_v27  ;;  %v220_v47 = vmul.f32 %v6073_v20, %v6095_v31  ;;  %7549 = vst [vmem:[#allocation22_spill] sm:$0xff] %v6137_v55  ;;  %v6151_v63 = vld [vmem:[#allocation2 + $0xc0] sm:$0xff]  ;;  %v6157_v28 = vld [vmem:[#allocation2 + $0xc8] sm:$0xff]  ;;  %v6159_v29 = vld [vmem:[#allocation2 + $0xd0] sm:$0xff] }
  0x6f   :  { %v267_v48 = vadd.f32 %v218_v37, %v217_v36  ;;  %v211_v50 = vmul.f32 %v6064_v17, %v6099_v33  ;;  %v221_v54 = vmul.f32 %v6081_v24, %v6097_v32  ;;  %v212_v56 = vmul.f32 %v6067_v18, %v6109_v38  ;;  %v6195_v32 = vld [vmem:[#allocation2 + $0x120] sm:$0xff]  ;;  %v6217_v14 = vld [vmem:[#allocation2 + $0x150] sm:$0xff] }
  0x70   :  { %v254_v53 = vadd.f32 %v253_v42, %v207_v30  ;;  %v213_v57 = vmul.f32 %v6070_v19, %v6111_v39  ;;  %v222_v59 = vmul.f32 %v6083_v25, %v6103_v35  ;;  %v214_v61 = vmul.f32 %v6073_v20, %v6121_v45  ;;  %v6165_v42 = vld [vmem:[#allocation2 + $0xb8] sm:$0xff] }
  0x71   :  { %v268_v60 = vadd.f32 %v267_v48, %v219_v44  ;;  %v223_v62 = vmul.f32 %v6064_v17, %v6123_v46  ;;  %v260_v8 = vadd.f32 %v212_v56, %v211_v50  ;;  %v224_v9 = vmul.f32 %v6067_v18, %v6131_v51  ;;  %7550 = vst [vmem:[#allocation23_spill] sm:$0xff] %v6165_v42 }
  0x72   :  { %v255_v0 = vadd.f32 %v254_v53, %v208_v34  ;;  %v225_v15 = vmul.f32 %v6070_v19, %v6133_v52  ;;  %v215_v36 = vmul.f32 %v6081_v24, %v6061_v16  ;;  %v216_v37 = vmul.f32 %v6083_v25, %v6137_v55  ;;  %v6169_v53 = vld [vmem:[#allocation2 + $0xd8] sm:$0xff]  ;;  %v6225_v16 = vld [vmem:[#allocation2 + $0x140] sm:$0xff] }
  0x73   :  { %v269_v30 = vadd.f32 %v268_v60, %v220_v47  ;;  %v226_v34 = vmul.f32 %v6073_v20, %v6143_v58  ;;  %v261_v48 = vadd.f32 %v260_v8, %v213_v57  ;;  %v274_v50 = vadd.f32 %v224_v9, %v223_v62  ;;  %v6173_v47 = vld [vmem:[#allocation2 + $0xf0] sm:$0xff]  ;;  %v6183_v57 = vld [vmem:[#allocation2 + $0x100] sm:$0xff]  ;;  %7555 = vst [vmem:[#allocation28_spill] sm:$0xff] %v6225_v16 }
  0x74   :  { %v256_v44 = vadd.f32 %v255_v0, %v209_v40  ;;  %v229_v56 = vmul.f32 %v6064_v17, %v6151_v63  ;;  %v227_v49 = vmul.f32 %v6081_v24, %v6117_v43  ;;  %v230_v26 = vmul.f32 %v6067_v18, %v6157_v28  ;;  %v6181_v40 = vld [vmem:[#allocation2 + $0xf8] sm:$0xff] }
  0x75   :  { %v270_v60 = vadd.f32 %v269_v30, %v221_v54  ;;  %v231_v3 = vmul.f32 %v6070_v19, %v6159_v29  ;;  %v262_v0 = vadd.f32 %v261_v48, %v214_v61  ;;  %v228_v8 = vmul.f32 %v6083_v25, %v6165_v42  ;;  %v6187_v54 = vld [vmem:[#allocation2 + $0xe0] sm:$0xff]  ;;  %v6189_v30 = vld [vmem:[#allocation2 + $0x108] sm:$0xff] }
  0x76   :  { %v257_v62 = vadd.f32 %v256_v44, %v210_v41  ;;  %v275_v9 = vadd.f32 %v274_v50, %v225_v15  ;;  %7551 = vst [vmem:[#allocation24_spill] sm:$0xff] %v6187_v54  ;;  %v232_v6 = vmul.f32 %v6073_v20, %v6169_v53  ;;  %v281_v4 = vadd.f32 %v230_v26, %v229_v56  ;;  %v6197_v44 = vld [vmem:[#allocation2 + $0xe8] sm:$0xff]  ;;  %v6205_v50 = vld [vmem:[#allocation2 + $0x130] sm:$0xff] }
  0x77   :  { %v271_v7 = vadd.f32 %v270_v60, %v222_v59  ;;  %v235_v5 = vmul.f32 %v6064_v17, %v6173_v47  ;;  %v263_v41 = vadd.f32 %v262_v0, %v215_v36  ;;  %7552 = vst [vmem:[#allocation25_spill] sm:$0xff] %v6197_v44  ;;  %v236_v15 = vmul.f32 %v6067_v18, %v6181_v40  ;;  %v6203_v48 = vld [vmem:[#allocation2 + $0x128] sm:$0xff]  ;;  %v6209_v60 = vld [vmem:[#allocation2 + $0x110] sm:$0xff] }
  0x78   :  { %258 = vadd.xlane.f32.xlu0 %v257_v62  ;;  %v276_v61 = vadd.f32 %v275_v9, %v226_v34  ;;  %v237_v59 = vmul.f32 %v6070_v19, %v6183_v57  ;;  %v233_v26 = vmul.f32 %v6081_v24, %v6187_v54  ;;  %v282_v56 = vadd.f32 %v281_v4, %v231_v3  ;;  %v6213_v34 = vld [vmem:[#allocation2 + $0x138] sm:$0xff] }
  0x79   :  { %272 = vadd.xlane.f32.xlu1 %v271_v7  ;;  %7553 = vst [vmem:[#allocation26_spill] sm:$0xff] %v6209_v60  ;;  %v238_v36 = vmul.f32 %v6073_v20, %v6189_v30  ;;  %v264_v62 = vadd.f32 %v263_v41, %v216_v37  ;;  %v288_v9 = vadd.f32 %v236_v15, %v235_v5  ;;  %v6219_v7 = vld [vmem:[#allocation2 + $0x158] sm:$0xff] }
  0x7a   :  { %v277_v0 = vadd.f32 %v276_v61, %v227_v49  ;;  %v241_v43 = vmul.f32 %v6064_v17, %v6195_v32  ;;  %v234_v3 = vmul.f32 %v6083_v25, %v6197_v44  ;;  %v283_v4 = vadd.f32 %v282_v56, %v232_v6  ;;  %v6223_v54 = vld [vmem:[#allocation2 + $0x118] sm:$0xff]  ;;  %v6231_v49 = vld [vmem:[#allocation2 + $0x160] sm:$0xff]  ;;  %v6237_v56 = vld [vmem:[#allocation2 + $0x168] sm:$0xff] }
  0x7b   :  { %7554 = vst [vmem:[#allocation27_spill] sm:$0xff] %v6223_v54  ;;  %v242_v37 = vmul.f32 %v6067_v18, %v6203_v48  ;;  %v243_v5 = vmul.f32 %v6070_v19, %v6205_v50  ;;  %v239_v61 = vmul.f32 %v6081_v24, %v6209_v60  ;;  %v289_v15 = vadd.f32 %v288_v9, %v237_v59  ;;  %v6249_v9 = vld [vmem:[#allocation2 + $0x170] sm:$0xff] }
  0x7c   :  { %265 = vadd.xlane.f32.xlu0 %v264_v62  ;;  %v278_v41 = vadd.f32 %v277_v0, %v228_v8  ;;  %v244_v6 = vmul.f32 %v6073_v20, %v6213_v34  ;;  %v284_v44 = vadd.f32 %v283_v4, %v233_v26  ;;  %v247_v35 = vmul.f32 %v6064_v17, %v6217_v14  ;;  %v6245_v0 = vld [vmem:[#allocation2 + $0x148] sm:$0xff] }
  0x7d   :  { %v295_v42 = vadd.f32 %v242_v37, %v241_v43  ;;  %v248_v55 = vmul.f32 %v6067_v18, %v6219_v7  ;;  %v240_v8 = vmul.f32 %v6083_v25, %v6223_v54  ;;  %v290_v62 = vadd.f32 %v289_v15, %v238_v36 }
  0x7e   :  { %279 = vadd.xlane.f32.xlu1 %v278_v41  ;;  %v245_v59 = vmul.f32 %v6081_v24, %v6225_v16  ;;  %v249_v43 = vmul.f32 %v6070_v19, %v6231_v49  ;;  %v285_v26 = vadd.f32 %v284_v44, %v234_v3  ;;  %v250_v18 = vmul.f32 %v6073_v20, %v6237_v56  ;;  %v6255_v41 = vld [vmem:[#allocation2 + $0x178] sm:$0xff] }
  0x7f   :  { %v296_v17 = vadd.f32 %v295_v42, %v243_v5  ;;  %v302_v4 = vadd.f32 %v248_v55, %v247_v35  ;;  %v291_v37 = vadd.f32 %v290_v62, %v239_v61  ;;  %v246_v36 = vmul.f32 %v6083_v25, %v6245_v0 }
  0x80   :  { %286 = vadd.xlane.f32.xlu0 %v285_v26  ;;  %v251_v16 = vmul.f32 %v6081_v24, %v6249_v9  ;;  %v252_v42 = vmul.f32 %v6083_v25, %v6255_v41  ;;  %v331_v55 = vadd.s32 4294967280, %v6030_v2  ;;  %v324_v5 = vadd.s32 4294967288, %v6030_v2 }
  0x81   :  { %v297_v15 = vadd.f32 %v296_v17, %v244_v6  ;;  %v303_v60 = vadd.f32 %v302_v4, %v249_v43  ;;  %v292_v54 = vadd.f32 %v291_v37, %v240_v8  ;;  %v338_v6 = vadd.s32 4294967272, %v6030_v2 }
  0x82   :  { %v334_v61 = vsub.s32 %v331_v55, %v6028_v1  ;;  %v327_v24 = vsub.s32 %v324_v5, %v6028_v1  ;;  %v345_v25 = vadd.s32 4294967264, %v6030_v2  ;;  %v359_v62 = vadd.s32 4294967248, %v6030_v2 }
  0x83   :  { %v298_v19 = vadd.f32 %v297_v15, %v245_v59  ;;  %v304_v44 = vadd.f32 %v303_v60, %v250_v18  ;;  %293 = vadd.xlane.f32.xlu1 %v292_v54  ;;  %v341_v8 = vsub.s32 %v338_v6, %v6028_v1  ;;  %v352_v54 = vadd.s32 4294967256, %v6030_v2 }
  0x84   :  { %v366_v59 = vadd.s32 4294967240, %v6030_v2  ;;  %v362_v43 = vsub.s32 %v359_v62, %v6028_v1  ;;  %v7556_v37 = vsub.s32 %v6030_v2, %v6028_v1 }
  0x85   :  { %v299_v20 = vadd.f32 %v298_v19, %v246_v36  ;;  %v305_v35 = vadd.f32 %v304_v44, %v251_v16  ;;  %v348_v16 = vsub.s32 %v345_v25, %v6028_v1  ;;  %v355_v60 = vsub.s32 %v352_v54, %v6028_v1 }
  0x86   :  { %v369_v26 = vsub.s32 %v366_v59, %v6028_v1  ;;  %v172_v1 = vld [vmem:[%s7557_s0] sm:$0xff] }
  0x87   :  { %300 = vadd.xlane.f32.xlu0 %v299_v20  ;;  %v306_v3 = vadd.f32 %v305_v35, %v252_v42  ;;  %vm309_vm7 = vcmp.gt.f32.partialorder %v172_v1, 0.0 }
  0x89   :  { %307 = vadd.xlane.f32.xlu1 %v306_v3 }
 0x105   :  { %v259_v17 = vpop.xlane.xlu0 %258 }
 0x106   :  { %v273_v18 = vpop.xlane.xlu1 %272  ;;  %v323_v36 = vrot.slane %v259_v17, %v7556_v37 }
 0x107   :  { %v335_v19 = vrot.slane %v273_v18, %v334_v61 }
 0x109   :  { %v266_v4 = vpop.xlane.xlu0 %265 }
 0x10a   :  { %v328_v15 = vrot.slane %v266_v4, %v327_v24  ;;  %v4386_v4 = vpack.c.bf16 %v6099_v33, %v6048_v10  ;;  %v4388_v10 = vpack.c.bf16 %v6131_v51, %v6077_v22  ;;  %v4404_v33 = vpack.c.bf16 %v6143_v58, %v6095_v31 }
 0x10b   :  { %v280_v42 = vpop.xlane.xlu1 %279  ;;  %v4394_v22 = vpack.c.bf16 %v6173_v47, %v6151_v63  ;;  %v4396_v31 = vpack.c.bf16 %v6219_v7, %v6203_v48  ;;  %v4414_v51 = vpack.c.bf16 %v6231_v49, %v6205_v50  ;;  %v617_v63 = vld [vmem:[%s7425_s2] sm:$0xff]  ;;  %v7560_v7 = vld [vmem:[#allocation23_spill] sm:$0xff] }
 0x10c   :  { %v330_v44 = vsel %vm329_vm0, %v328_v15, %v323_v36  ;;  %v342_v20 = vrot.slane %v280_v42, %v341_v8 }
 0x10d   :  { %v337_v35 = vsel %vm336_vm1, %v335_v19, %v330_v44  ;;  %v287_v3 = vpop.xlane.xlu0 %286 }
 0x10e   :  { %v344_v55 = vsel %vm343_vm2, %v342_v20, %v337_v35  ;;  %v349_v5 = vrot.slane %v287_v3, %v348_v16  ;;  %v633_v20 = vld [vmem:[#allocation4 + $0x20] sm:$0xff]  ;;  %v635_v35 = vld [vmem:[#allocation4 + $0x30] sm:$0xff]  ;;  %v640_v3 = vld [vmem:[#allocation4 + $0x58] sm:$0xff] }
 0x110   :  { %v351_v6 = vsel %vm350_vm3, %v349_v5, %v344_v55  ;;  %v294_v25 = vpop.xlane.xlu1 %293  ;;  %v638_v55 = vld [vmem:[#allocation4 + $0x48] sm:$0xff] }
 0x111   :  { %v356_v54 = vrot.slane %v294_v25, %v355_v60  ;;  %v4384_v60 = vpack.c.bf16 %v6109_v38, %v6050_v11  ;;  %v4402_v11 = vpack.c.bf16 %v6111_v39, %v6052_v12  ;;  %v4406_v38 = vpack.c.bf16 %v6133_v52, %v6087_v27  ;;  %v7558_v52 = vld [vmem:[#allocation22_spill] sm:$0xff] }
 0x112   :  { %v4408_v12 = vpack.c.bf16 %v6189_v30, %v6169_v53  ;;  %v4412_v27 = vpack.c.bf16 %v6237_v56, %v6213_v34  ;;  %v7471_v39 = vmov 0.0   ;;  %v4416_v58 = vpack.c.bf16 %v7558_v52, %v6079_v23  ;;  %v631_v23 = vld [vmem:[#allocation4 + $0x10] sm:$0xff]  ;;  %v636_v30 = vld [vmem:[#allocation4 + $0x38] sm:$0xff]  ;;  %v7561_v5 = vld [vmem:[#allocation18_spill] sm:$0xff] }
 0x113   :  { %v358_v62 = vsel %vm357_vm4, %v356_v54, %v351_v6  ;;  %4385 = vmatprep.subr.bf16.mxu0 %v4384_v60  ;;  %468 = vmatprep.mubr.f32.mxu0 %v7471_v39  ;;  %v5866_v53 = vmov 0   ;;  %v7559_v34 = vld [vmem:[#allocation20_spill] sm:$0xff]  ;;  %v7562_v6 = vld [vmem:[#allocation17_spill] sm:$0xff] }
 0x114   :  { %v301_v59 = vpop.xlane.xlu0 %300  ;;  %4387 = vmatpush1.bf16.msra.mxu0 %v4386_v4  ;;  %539 = vmatprep.mubr.f32.mxu1 %v7471_v39  ;;  %v4420_v49 = vpack.c.bf16 %v7560_v7, %v7559_v34  ;;  %v7563_v25 = vpack.c.bf16 %v7561_v5, %v7562_v6  ;;  %v7564_v54 = vld [vmem:[#allocation25_spill] sm:$0xff]  ;;  %v7569_v4 = vld [vmem:[#allocation24_spill] sm:$0xff]  ;;  %v663_v34 = vld [vmem:[#allocation4 + $0x110] sm:$0xff] }
 0x115   :  { %v363_v2 = vrot.slane %v301_v59, %v362_v43  ;;  %v4400_v43 = vpack.c.bf16 %v6121_v45, %v6054_v13  ;;  %v4390_v13 = vpack.c.bf16 %v6123_v46, %v6075_v21  ;;  %4389 = vmatprep.subr.bf16.mxu0 %v4388_v10  ;;  %v4392_v45 = vpack.c.bf16 %v6181_v40, %v6157_v28  ;;  %v630_v28 = vld [vmem:[#allocation4 + $0x8] sm:$0xff]  ;;  %v629_v40 = vld [vmem:[#allocation4] sm:$0xff]  ;;  %v648_v10 = vld [vmem:[#allocation4 + $0x98] sm:$0xff] }
 0x116   :  { %v308_v61 = vpop.xlane.xlu1 %307  ;;  %v4410_v21 = vpack.c.bf16 %v6183_v57, %v6159_v29  ;;  %v4398_v46 = vpack.c.bf16 %v6217_v14, %v6195_v32  ;;  %v632_v29 = vld [vmem:[#allocation4 + $0x18] sm:$0xff]  ;;  %5605 = vset.pattern.permute.xlu0 %v5866_v53  ;;  %v634_v57 = vld [vmem:[#allocation4 + $0x28] sm:$0xff]  ;;  %v4434_v56 = vpack.c.bf16 %v631_v23, %v629_v40  ;;  %v659_v40 = vld [vmem:[#allocation4 + $0xf0] sm:$0xff] }
 0x117   :  { %v370_v24 = vrot.slane %v308_v61, %v369_v26  ;;  %v365_v8 = vsel %vm364_vm5, %v363_v2, %v358_v62  ;;  %4401 = vmatprep.subr.bf16.mxu1 %v4400_v43  ;;  %v4432_v14 = vpack.c.bf16 %v632_v29, %v630_v28  ;;  %v4436_v44 = vpack.c.bf16 %v636_v30, %v634_v57  ;;  %v7565_v62 = vld [vmem:[#allocation27_spill] sm:$0xff]  ;;  %v637_v61 = vld [vmem:[#allocation4 + $0x40] sm:$0xff]  ;;  %v7570_v43 = vld [vmem:[#allocation26_spill] sm:$0xff] }
 0x118   :  { %4403 = vmatpush1.bf16.msra.mxu1 %v4402_v11  ;;  %4391 = vmatpush1.bf16.msra.mxu0 %v4390_v13  ;;  %v4424_v59 = vpack.c.bf16 %v7565_v62, %v7564_v54  ;;  %v4440_v2 = vpack.c.bf16 %v640_v3, %v638_v55  ;;  %v646_v11 = vld [vmem:[#allocation4 + $0x88] sm:$0xff]  ;;  %v7571_v13 = vld [vmem:[#allocation28_spill] sm:$0xff]  ;;  %v655_v28 = vld [vmem:[#allocation4 + $0xd0] sm:$0xff] }
 0x119   :  { %v372_v17 = vsel %vm371_vm6, %v370_v24, %v365_v8  ;;  %4405 = vmatprep.subr.bf16.mxu1 %v4404_v33  ;;  %4393 = vmatprep.subr.bf16.mxu0 %v4392_v45  ;;  %v639_v24 = vld [vmem:[#allocation4 + $0x50] sm:$0xff]  ;;  %v642_v8 = vld [vmem:[#allocation4 + $0x68] sm:$0xff]  ;;  %v4430_v33 = vpack.c.bf16 %v6249_v9, %v7571_v13  ;;  %v4448_v45 = vpack.c.bf16 %v648_v10, %v646_v11  ;;  %v656_v9 = vld [vmem:[#allocation4 + $0xd8] sm:$0xff] }
 0x11a   :  { %v386_v16 = vsel %vm309_vm7, %v372_v17, -1e+30  ;;  %v644_v17 = vld [vmem:[#allocation4 + $0x78] sm:$0xff]  ;;  %v658_v29 = vld [vmem:[#allocation4 + $0xe8] sm:$0xff]  ;;  %v671_v54 = vld [vmem:[#allocation4 + $0x150] sm:$0xff] }
 0x11b   :  { %v388_v18 = vsel %vm387_vm8, %v386_v16, -inf  ;;  %v660_v53 = vld [vmem:[#allocation4 + $0xf8] sm:$0xff]  ;;  %v662_v23 = vld [vmem:[#allocation4 + $0x108] sm:$0xff] }
 0x11c   :  { %389 = vmax.xlane.f32.xlu0 %v388_v18  ;;  %4407 = vmatpush1.bf16.msra.mxu1 %v4406_v38  ;;  %v7567_v18 = vld [vmem:[#allocation19_spill] sm:$0xff]  ;;  %v664_v57 = vld [vmem:[#allocation4 + $0x118] sm:$0xff]  ;;  %v666_v7 = vld [vmem:[#allocation4 + $0x128] sm:$0xff] }
 0x11d   :  { %4409 = vmatprep.subr.bf16.mxu1 %v4408_v12  ;;  %4395 = vmatpush1.bf16.msra.mxu0 %v4394_v22  ;;  %v645_v12 = vld [vmem:[#allocation4 + $0x80] sm:$0xff]  ;;  %v647_v22 = vld [vmem:[#allocation4 + $0x90] sm:$0xff]  ;;  %v670_v55 = vld [vmem:[#allocation4 + $0x148] sm:$0xff] }
 0x11e   :  { %4397 = vmatprep.subr.bf16.mxu0 %v4396_v31  ;;  %v672_v3 = vld [vmem:[#allocation4 + $0x158] sm:$0xff]  ;;  %v674_v62 = vld [vmem:[#allocation4 + $0x168] sm:$0xff] }
 0x11f   :  { %v4472_v6 = vpack.c.bf16 %v672_v3, %v670_v55  ;;  %v688_v11 = vld [vmem:[#allocation4 + $0x1d8] sm:$0xff]  ;;  %v701_v55 = vld [vmem:[#allocation4 + $0x240] sm:$0xff]  ;;  %v703_v3 = vld [vmem:[#allocation4 + $0x250] sm:$0xff] }
 0x120   :  { %4411 = vmatpush1.bf16.msra.mxu1 %v4410_v21  ;;  %v4450_v21 = vpack.c.bf16 %v647_v22, %v645_v12  ;;  %v690_v12 = vld [vmem:[#allocation4 + $0x1e8] sm:$0xff]  ;;  %v692_v22 = vld [vmem:[#allocation4 + $0x1f8] sm:$0xff] }
 0x121   :  { %4413 = vmatprep.subr.bf16.mxu1 %v4412_v27  ;;  %4399 = vmatpush1.bf16.msra.mxu0 %v4398_v46  ;;  %v649_v27 = vld [vmem:[#allocation4 + $0xa0] sm:$0xff]  ;;  %v651_v46 = vld [vmem:[#allocation4 + $0xb0] sm:$0xff] }
 0x122   :  { %4417 = vmatprep.subr.bf16.mxu0 %v4416_v58  ;;  %v4454_v52 = vpack.c.bf16 %v651_v46, %v649_v27  ;;  %v694_v27 = vld [vmem:[#allocation4 + $0x208] sm:$0xff]  ;;  %v696_v46 = vld [vmem:[#allocation4 + $0x218] sm:$0xff] }
 0x124   :  { %4415 = vmatpush1.bf16.msra.mxu1 %v4414_v51  ;;  %v654_v51 = vld [vmem:[#allocation4 + $0xc8] sm:$0xff] }
 0x125   :  { %4433 = vmatprep.subr.bf16.mxu1 %v4432_v14  ;;  %v4456_v58 = vpack.c.bf16 %v656_v9, %v654_v51  ;;  %v4496_v51 = vpack.c.bf16 %v696_v46, %v694_v27  ;;  %v716_v27 = vld [vmem:[#allocation4 + $0x2b8] sm:$0xff] }
 0x132   :  { %620 = vperm.xlu0 %5605, %v617_v63   ;;  %v653_v63 = vld [vmem:[#allocation4 + $0xc0] sm:$0xff] }
 0x133   :  { %v4458_v14 = vpack.c.bf16 %v655_v28, %v653_v63 }
 0x1a9   :  { %v390_v26 = vpop.xlane.xlu0 %389 }
 0x1aa   :  { %v391_v37 = vsub.f32 %v386_v16, %v390_v26  ;;  %v7566_v16 = vld [vmem:[#allocation21_spill] sm:$0xff]  ;;  %v4426_v26 = vpack.c.bf16 %v7570_v43, %v7569_v4  ;;  %v679_v4 = vld [vmem:[#allocation4 + $0x190] sm:$0xff]  ;;  %v682_v43 = vld [vmem:[#allocation4 + $0x1a8] sm:$0xff] }
 0x1ab   :  { %v7568_v60 = vpack.c.bf16 %v7566_v16, %v7567_v18 }
 0x1ac   :  { %v392_v36 = vmul.f32 1.442695, %v391_v37  ;;  %v4428_v37 = vpack.c.bf16 %v6255_v41, %v6245_v0  ;;  %v650_v0 = vld [vmem:[#allocation4 + $0xa8] sm:$0xff]  ;;  %v652_v41 = vld [vmem:[#allocation4 + $0xb8] sm:$0xff] }
 0x1ad   :  { %v4452_v31 = vpack.c.bf16 %v652_v41, %v650_v0  ;;  %v4492_v0 = vpack.c.bf16 %v692_v22, %v690_v12  ;;  %v689_v41 = vld [vmem:[#allocation4 + $0x1e0] sm:$0xff]  ;;  %v711_v22 = vld [vmem:[#allocation4 + $0x290] sm:$0xff] }
 0x1ae   :  { %5606 = vpow2.f32 %v392_v36  ;;  %v4442_v36 = vpack.c.bf16 %v639_v24, %v637_v61  ;;  %v673_v61 = vld [vmem:[#allocation4 + $0x160] sm:$0xff]  ;;  %v675_v24 = vld [vmem:[#allocation4 + $0x170] sm:$0xff] }
 0x1af   :  { %v4478_v16 = vpack.c.bf16 %v675_v24, %v673_v61  ;;  %v1054_v61 = vld [vmem:[#allocation6 + $0x40] sm:$0xff] }
 0x1b0   :  { %v1058_v24 = vld [vmem:[#allocation6 + $0x60] sm:$0xff] }
 0x1b1   :  { %v6344_v9 = vpop.permute.xlu0 %620  ;;  %v709_v12 = vld [vmem:[#allocation4 + $0x280] sm:$0xff] }
 0x1b8   :  { %v5607_v15 = vpop.eup %5606 }
 0x1b9   :  { %v394_v19 = vmul.f32 %v5607_v15, %v172_v1  ;;  %v4438_v1 = vpack.c.bf16 %v635_v35, %v633_v20  ;;  %v4444_v15 = vpack.c.bf16 %v644_v17, %v642_v8  ;;  %v665_v20 = vld [vmem:[#allocation4 + $0x120] sm:$0xff]  ;;  %v667_v35 = vld [vmem:[#allocation4 + $0x130] sm:$0xff]  ;;  %v678_v8 = vld [vmem:[#allocation4 + $0x188] sm:$0xff] }
 0x1ba   :  { %v4470_v5 = vpack.c.bf16 %v667_v35, %v665_v20  ;;  %v680_v17 = vld [vmem:[#allocation4 + $0x198] sm:$0xff]  ;;  %v1046_v20 = vld [vmem:[#allocation6] sm:$0xff] }
 0x1bb   :  { %v395_v42 = vsel %vm387_vm8, %v394_v19, 0.0  ;;  %v4480_v18 = vpack.c.bf16 %v680_v17, %v678_v8  ;;  %v4630_v17 = vpack.c.bf16 %v1058_v24, %v1054_v61  ;;  %v723_v61 = vld [vmem:[#allocation4 + $0x2f0] sm:$0xff] }
 0x1bc   :  { %396 = vadd.xlane.f32.xlu1 %v395_v42  ;;  %v643_v42 = vld [vmem:[#allocation4 + $0x70] sm:$0xff] }
 0x249   :  { %v397_v32 = vpop.xlane.xlu1 %396 }
 0x24a   :  { %v398_v47 = vmax.f32 %v397_v32, 1e-30  ;;  %v4460_v32 = vpack.c.bf16 %v660_v53, %v658_v29  ;;  %v698_v29 = vld [vmem:[#allocation4 + $0x228] sm:$0xff]  ;;  %v700_v53 = vld [vmem:[#allocation4 + $0x238] sm:$0xff] }
 0x24c   :  { %5608 = vrcp.f32 %v398_v47  ;;  %v657_v47 = vld [vmem:[#allocation4 + $0xe0] sm:$0xff] }
 0x24d   :  { %v4462_v30 = vpack.c.bf16 %v659_v40, %v657_v47 }
 0x256   :  { %v5609_v48 = vpop.eup %5608 }
 0x257   :  { %v400_v50 = vmul.f32 %v5609_v48, %v394_v19  ;;  %v641_v19 = vld [vmem:[#allocation4 + $0x60] sm:$0xff]  ;;  %v4464_v48 = vpack.c.bf16 %v664_v57, %v662_v23 }
 0x258   :  { %v4446_v38 = vpack.c.bf16 %v643_v42, %v641_v19  ;;  %v683_v19 = vld [vmem:[#allocation4 + $0x1b0] sm:$0xff]  ;;  %v686_v42 = vld [vmem:[#allocation4 + $0x1c8] sm:$0xff] }
 0x259   :  { %3938 = vmatmul.mubr.msk.f32.vlgmr.msra.gmra.mrb[0].mxu0 %vm387_vm8, %v400_v50  ;;  %3939 = vmatmul.mubr.msk.f32.vlgmr.msra.gmra.mrb[0].mxu1 %vm387_vm8, %v400_v50  ;;  %v4488_v13 = vpack.c.bf16 %v688_v11, %v686_v42  ;;  %v712_v42 = vld [vmem:[#allocation4 + $0x298] sm:$0xff] }
 0x25a   :  { %4419 = vmatpush1.bf16.msra.mxu0 %v7563_v25  ;;  %610 = vmatprep.mubr.f32.mxu0 %v7471_v39  ;;  %v669_v25 = vld [vmem:[#allocation4 + $0x140] sm:$0xff] }
 0x25b   :  { %4421 = vmatprep.subr.bf16.mxu0 %v4420_v49  ;;  %4435 = vmatpush1.bf16.msra.mxu1 %v4434_v56  ;;  %v668_v49 = vld [vmem:[#allocation4 + $0x138] sm:$0xff] }
 0x25c   :  { %4437 = vmatprep.subr.bf16.mxu1 %v4436_v44  ;;  %v4468_v44 = vpack.c.bf16 %v668_v49, %v666_v7  ;;  %v702_v7 = vld [vmem:[#allocation4 + $0x248] sm:$0xff]  ;;  %v704_v49 = vld [vmem:[#allocation4 + $0x258] sm:$0xff] }
 0x25e   :  { %4423 = vmatpush1.bf16.msra.mxu0 %v7568_v60  ;;  %v677_v60 = vld [vmem:[#allocation4 + $0x180] sm:$0xff] }
 0x25f   :  { %4425 = vmatprep.subr.bf16.mxu0 %v4424_v59  ;;  %4439 = vmatpush1.bf16.msra.mxu1 %v4438_v1  ;;  %v676_v59 = vld [vmem:[#allocation4 + $0x178] sm:$0xff]  ;;  %v4474_v1 = vpack.c.bf16 %v671_v54, %v669_v25  ;;  %v4504_v25 = vpack.c.bf16 %v704_v49, %v702_v7  ;;  %v706_v54 = vld [vmem:[#allocation4 + $0x268] sm:$0xff]  ;;  %v1086_v49 = vld [vmem:[#allocation6 + $0x140] sm:$0xff] }
 0x260   :  { %4441 = vmatprep.subr.bf16.mxu1 %v4440_v2  ;;  %v4476_v2 = vpack.c.bf16 %v676_v59, %v674_v62  ;;  %v708_v62 = vld [vmem:[#allocation4 + $0x278] sm:$0xff]  ;;  %v1091_v7 = vld [vmem:[#allocation6 + $0x168] sm:$0xff] }
 0x262   :  { %4427 = vmatpush1.bf16.msra.mxu0 %v4426_v26  ;;  %v684_v26 = vld [vmem:[#allocation4 + $0x1b8] sm:$0xff] }
 0x263   :  { %4429 = vmatprep.subr.bf16.mxu0 %v4428_v37  ;;  %4443 = vmatpush1.bf16.msra.mxu1 %v4442_v36  ;;  %v4482_v37 = vpack.c.bf16 %v679_v4, %v677_v60  ;;  %v4484_v36 = vpack.c.bf16 %v684_v26, %v682_v43  ;;  %v1063_v60 = vld [vmem:[#allocation6 + $0x88] sm:$0xff]  ;;  %v4508_v43 = vpack.c.bf16 %v708_v62, %v706_v54  ;;  %v707_v26 = vld [vmem:[#allocation4 + $0x270] sm:$0xff] }
 0x264   :  { %4445 = vmatprep.subr.bf16.mxu1 %v4444_v15  ;;  %v681_v15 = vld [vmem:[#allocation4 + $0x1a0] sm:$0xff]  ;;  %v1067_v4 = vld [vmem:[#allocation6 + $0xa8] sm:$0xff] }
 0x265   :  { %v4486_v10 = vpack.c.bf16 %v683_v19, %v681_v15  ;;  %v1066_v15 = vld [vmem:[#allocation6 + $0xa0] sm:$0xff]  ;;  %v710_v19 = vld [vmem:[#allocation4 + $0x288] sm:$0xff] }
 0x266   :  { %4431 = vmatpush1.bf16.msra.mxu0 %v4430_v33  ;;  %v685_v33 = vld [vmem:[#allocation4 + $0x1c0] sm:$0xff]  ;;  %v1095_v54 = vld [vmem:[#allocation6 + $0x188] sm:$0xff] }
 0x267   :  { %4447 = vmatpush1.bf16.msra.mxu1 %v4446_v38  ;;  %v687_v38 = vld [vmem:[#allocation4 + $0x1d0] sm:$0xff]  ;;  %v1099_v62 = vld [vmem:[#allocation6 + $0x1a8] sm:$0xff] }
 0x268   :  { %4449 = vmatprep.subr.bf16.mxu1 %v4448_v45  ;;  %v4490_v45 = vpack.c.bf16 %v687_v38, %v685_v33  ;;  %v1075_v33 = vld [vmem:[#allocation6 + $0xe8] sm:$0xff]  ;;  %v1070_v38 = vld [vmem:[#allocation6 + $0xc0] sm:$0xff]  ;;  %v4648_v24 = vpack.c.bf16 %v1099_v62, %v1095_v54 }
 0x269   :  { %3940 = vmatmul.mubr.msk.f32.vlgmr.msra.gmra.mrb[2].mxu0 %vm387_vm8, %v400_v50  ;;  %v661_v50 = vld [vmem:[#allocation4 + $0x100] sm:$0xff]  ;;  %v1135_v54 = vld [vmem:[#allocation6 + $0x2c8] sm:$0xff] }
 0x26a   :  { %v4466_v56 = vpack.c.bf16 %v663_v34, %v661_v50  ;;  %v699_v50 = vld [vmem:[#allocation4 + $0x230] sm:$0xff]  ;;  %v1139_v62 = vld [vmem:[#allocation6 + $0x2e8] sm:$0xff] }
 0x26b   :  { %4451 = vmatpush1.bf16.msra.mxu1 %v4450_v21  ;;  %v691_v21 = vld [vmem:[#allocation4 + $0x1f0] sm:$0xff] }
 0x26c   :  { %4453 = vmatprep.subr.bf16.mxu1 %v4452_v31  ;;  %v4494_v31 = vpack.c.bf16 %v691_v21, %v689_v41  ;;  %v1074_v41 = vld [vmem:[#allocation6 + $0xe0] sm:$0xff] }
 0x26f   :  { %4455 = vmatpush1.bf16.msra.mxu1 %v4454_v52  ;;  %v693_v52 = vld [vmem:[#allocation4 + $0x200] sm:$0xff] }
 0x270   :  { %4457 = vmatprep.subr.bf16.mxu1 %v4456_v58  ;;  %v695_v58 = vld [vmem:[#allocation4 + $0x210] sm:$0xff] }
 0x271   :  { %v4498_v23 = vpack.c.bf16 %v695_v58, %v693_v52  ;;  %v4638_v52 = vpack.c.bf16 %v1074_v41, %v1070_v38  ;;  %v1111_v38 = vld [vmem:[#allocation6 + $0x208] sm:$0xff]  ;;  %v731_v41 = vld [vmem:[#allocation4 + $0x330] sm:$0xff] }
 0x273   :  { %4459 = vmatpush1.bf16.msra.mxu1 %v4458_v14 }
 0x274   :  { %4461 = vmatprep.subr.bf16.mxu1 %v4460_v32 }
 0x277   :  { %4463 = vmatpush1.bf16.msra.mxu1 %v4462_v30  ;;  %v4500_v30 = vpack.c.bf16 %v700_v53, %v698_v29  ;;  %v1083_v29 = vld [vmem:[#allocation6 + $0x128] sm:$0xff]  ;;  %v1078_v53 = vld [vmem:[#allocation6 + $0x100] sm:$0xff] }
 0x278   :  { %4465 = vmatprep.subr.bf16.mxu1 %v4464_v48  ;;  %v697_v48 = vld [vmem:[#allocation4 + $0x220] sm:$0xff] }
 0x279   :  { %v4502_v35 = vpack.c.bf16 %v699_v50, %v697_v48  ;;  %v720_v48 = vld [vmem:[#allocation4 + $0x2d8] sm:$0xff] }
 0x27b   :  { %4467 = vmatpush1.bf16.msra.mxu1 %v4466_v56  ;;  %v1047_v56 = vld [vmem:[#allocation6 + $0x8] sm:$0xff] }
 0x27c   :  { %4469 = vmatprep.subr.bf16.mxu1 %v4468_v44  ;;  %v1051_v44 = vld [vmem:[#allocation6 + $0x28] sm:$0xff] }
 0x27f   :  { %4471 = vmatpush1.bf16.msra.mxu1 %v4470_v5  ;;  %v4624_v5 = vpack.c.bf16 %v1051_v44, %v1047_v56  ;;  %v717_v44 = vld [vmem:[#allocation4 + $0x2c0] sm:$0xff] }
 0x280   :  { %4473 = vmatprep.subr.bf16.mxu1 %v4472_v6  ;;  %v1050_v6 = vld [vmem:[#allocation6 + $0x20] sm:$0xff] }
 0x281   :  { %v4626_v59 = vpack.c.bf16 %v1050_v6, %v1046_v20  ;;  %4625 = vmatprep.subr.bf16.mxu0 %v4624_v5  ;;  %v719_v20 = vld [vmem:[#allocation4 + $0x2d0] sm:$0xff]  ;;  %v724_v5 = vld [vmem:[#allocation4 + $0x2f8] sm:$0xff] }
 0x283   :  { %4475 = vmatpush1.bf16.msra.mxu1 %v4474_v1  ;;  %v1055_v1 = vld [vmem:[#allocation6 + $0x48] sm:$0xff]  ;;  %4627 = vmatpush1.bf16.msra.mxu0 %v4626_v59  ;;  %v1094_v59 = vld [vmem:[#allocation6 + $0x180] sm:$0xff] }
 0x284   :  { %4477 = vmatprep.subr.bf16.mxu1 %v4476_v2  ;;  %v1059_v2 = vld [vmem:[#allocation6 + $0x68] sm:$0xff] }
 0x285   :  { %v4628_v8 = vpack.c.bf16 %v1059_v2, %v1055_v1  ;;  %v721_v2 = vld [vmem:[#allocation4 + $0x2e0] sm:$0xff] }
 0x287   :  { %4479 = vmatpush1.bf16.msra.mxu1 %v4478_v16  ;;  %v4506_v16 = vpack.c.bf16 %v703_v3, %v701_v55  ;;  %4629 = vmatprep.subr.bf16.mxu0 %v4628_v8  ;;  %v1090_v55 = vld [vmem:[#allocation6 + $0x160] sm:$0xff]  ;;  %v722_v3 = vld [vmem:[#allocation4 + $0x2e8] sm:$0xff] }
 0x288   :  { %4481 = vmatprep.subr.bf16.mxu1 %v4480_v18  ;;  %v705_v18 = vld [vmem:[#allocation4 + $0x260] sm:$0xff]  ;;  %4631 = vmatpush1.bf16.msra.mxu0 %v4630_v17  ;;  %v4646_v6 = vpack.c.bf16 %v1090_v55, %v1086_v49  ;;  %v4524_v1 = vpack.c.bf16 %v724_v5, %v722_v3  ;;  %v726_v17 = vld [vmem:[#allocation4 + $0x308] sm:$0xff]  ;;  %v744_v5 = vld [vmem:[#allocation4 + $0x398] sm:$0xff] }
 0x289   :  { %v1098_v8 = vld [vmem:[#allocation6 + $0x1a0] sm:$0xff]  ;;  %v742_v3 = vld [vmem:[#allocation4 + $0x388] sm:$0xff] }
 0x28a   :  { %v1126_v49 = vld [vmem:[#allocation6 + $0x280] sm:$0xff] }
 0x28b   :  { %4483 = vmatpush1.bf16.msra.mxu1 %v4482_v37  ;;  %v4632_v37 = vpack.c.bf16 %v1067_v4, %v1063_v60  ;;  %v4526_v60 = vpack.c.bf16 %v723_v61, %v721_v2  ;;  %v1103_v4 = vld [vmem:[#allocation6 + $0x1c8] sm:$0xff]  ;;  %v1130_v55 = vld [vmem:[#allocation6 + $0x2a0] sm:$0xff]  ;;  %v743_v61 = vld [vmem:[#allocation4 + $0x390] sm:$0xff] }
 0x28c   :  { %4485 = vmatprep.subr.bf16.mxu1 %v4484_v36  ;;  %v1062_v36 = vld [vmem:[#allocation6 + $0x80] sm:$0xff] }
 0x28d   :  { %v4634_v11 = vpack.c.bf16 %v1066_v15, %v1062_v36  ;;  %4633 = vmatprep.subr.bf16.mxu0 %v4632_v37  ;;  %v725_v36 = vld [vmem:[#allocation4 + $0x300] sm:$0xff]  ;;  %v727_v15 = vld [vmem:[#allocation4 + $0x310] sm:$0xff] }
 0x28e   :  { %v741_v2 = vld [vmem:[#allocation4 + $0x380] sm:$0xff] }
 0x28f   :  { %4487 = vmatpush1.bf16.msra.mxu1 %v4486_v10  ;;  %v4510_v10 = vpack.c.bf16 %v707_v26, %v705_v18  ;;  %4635 = vmatpush1.bf16.msra.mxu0 %v4634_v11  ;;  %v4650_v18 = vpack.c.bf16 %v1098_v8, %v1094_v59  ;;  %v1102_v26 = vld [vmem:[#allocation6 + $0x1c0] sm:$0xff]  ;;  %v730_v11 = vld [vmem:[#allocation4 + $0x328] sm:$0xff] }
 0x290   :  { %4489 = vmatprep.subr.bf16.mxu1 %v4488_v13  ;;  %v1071_v13 = vld [vmem:[#allocation6 + $0xc8] sm:$0xff]  ;;  %v1134_v59 = vld [vmem:[#allocation6 + $0x2c0] sm:$0xff] }
 0x291   :  { %v1138_v8 = vld [vmem:[#allocation6 + $0x2e0] sm:$0xff] }
 0x293   :  { %4491 = vmatpush1.bf16.msra.mxu1 %v4490_v45  ;;  %v4512_v45 = vpack.c.bf16 %v712_v42, %v710_v19  ;;  %v1106_v42 = vld [vmem:[#allocation6 + $0x1e0] sm:$0xff] }
 0x294   :  { %4493 = vmatprep.subr.bf16.mxu1 %v4492_v0  ;;  %v4636_v0 = vpack.c.bf16 %v1075_v33, %v1071_v13  ;;  %v4654_v13 = vpack.c.bf16 %v1106_v42, %v1102_v26  ;;  %v4530_v33 = vpack.c.bf16 %v727_v15, %v725_v36  ;;  %v1142_v26 = vld [vmem:[#allocation6 + $0x300] sm:$0xff]  ;;  %v747_v15 = vld [vmem:[#allocation4 + $0x3b0] sm:$0xff] }
 0x295   :  { %v745_v36 = vld [vmem:[#allocation4 + $0x3a0] sm:$0xff] }
 0x296   :  { %4637 = vmatprep.subr.bf16.mxu0 %v4636_v0  ;;  %v729_v0 = vld [vmem:[#allocation4 + $0x320] sm:$0xff] }
 0x297   :  { %4495 = vmatpush1.bf16.msra.mxu1 %v4494_v31  ;;  %v714_v31 = vld [vmem:[#allocation4 + $0x2a8] sm:$0xff]  ;;  %4639 = vmatpush1.bf16.msra.mxu0 %v4638_v52  ;;  %v1146_v42 = vld [vmem:[#allocation6 + $0x320] sm:$0xff] }
 0x298   :  { %4497 = vmatprep.subr.bf16.mxu1 %v4496_v51 }
 0x32c   :  { %v470_v63 = vpop.f32.mrb[0].mxu0  ;;  %v541_v28 = vpop.f32.mrb[0].mxu1 }
 0x32d   :  { %v472_v14 = vpop.f32.mrb[1].mxu0  ;;  %v543_v32 = vpop.f32.mrb[1].mxu1  ;;  %v6347_v47 = vmul.f32 %v6344_v9, %v541_v28  ;;  %v623_v57 = vmul.f32 %v6344_v9, %v470_v63  ;;  %v4514_v63 = vpack.c.bf16 %v711_v22, %v709_v12  ;;  %v1079_v28 = vld [vmem:[#allocation6 + $0x108] sm:$0xff]  ;;  %v1110_v12 = vld [vmem:[#allocation6 + $0x200] sm:$0xff] }
 0x32e   :  { %v624_v40 = vmul.f32 %v6344_v9, %v472_v14  ;;  %v626_v34 = vmul.f32 %v6344_v9, %v543_v32  ;;  %v4516_v14 = vpack.c.bf16 %v716_v27, %v714_v31  ;;  %v713_v32 = vld [vmem:[#allocation4 + $0x2a0] sm:$0xff]  ;;  %v734_v27 = vld [vmem:[#allocation4 + $0x348] sm:$0xff] }
 0x32f   :  { %v1114_v31 = vld [vmem:[#allocation6 + $0x220] sm:$0xff] }
 0x330   :  { %897 = vmatprep.mubr.f32.mxu1 %v624_v40  ;;  %v715_v40 = vld [vmem:[#allocation4 + $0x2b0] sm:$0xff]  ;;  %v4658_v52 = vpack.c.bf16 %v1114_v31, %v1110_v12  ;;  %v1150_v12 = vld [vmem:[#allocation6 + $0x340] sm:$0xff] }
 0x331   :  { %898 = vmatmul.mubr.f32.vlgmr.msra.gmra.mrb[2].mxu1 %v623_v57  ;;  %v1082_v57 = vld [vmem:[#allocation6 + $0x120] sm:$0xff] }
 0x332   :  { %4499 = vmatpush1.bf16.msra.mxu1 %v4498_v23  ;;  %968 = vmatprep.mubr.f32.mxu1 %v626_v34  ;;  %v4640_v23 = vpack.c.bf16 %v1083_v29, %v1079_v28  ;;  %v4642_v50 = vpack.c.bf16 %v1082_v57, %v1078_v53  ;;  %v4518_v34 = vpack.c.bf16 %v715_v40, %v713_v32  ;;  %v1119_v28 = vld [vmem:[#allocation6 + $0x248] sm:$0xff]  ;;  %v1118_v53 = vld [vmem:[#allocation6 + $0x240] sm:$0xff]  ;;  %v735_v40 = vld [vmem:[#allocation4 + $0x350] sm:$0xff] }
 0x333   :  { %4501 = vmatprep.subr.bf16.mxu1 %v4500_v30  ;;  %v718_v30 = vld [vmem:[#allocation4 + $0x2c8] sm:$0xff]  ;;  %v733_v32 = vld [vmem:[#allocation4 + $0x340] sm:$0xff] }
 0x334   :  { %4641 = vmatprep.subr.bf16.mxu0 %v4640_v23  ;;  %v4520_v56 = vpack.c.bf16 %v720_v48, %v718_v30  ;;  %v1123_v29 = vld [vmem:[#allocation6 + $0x268] sm:$0xff]  ;;  %v1122_v57 = vld [vmem:[#allocation6 + $0x260] sm:$0xff]  ;;  %v740_v48 = vld [vmem:[#allocation4 + $0x378] sm:$0xff] }
 0x335   :  { %4643 = vmatpush1.bf16.msra.mxu0 %v4642_v50  ;;  %v4660_v23 = vpack.c.bf16 %v1123_v29, %v1119_v28  ;;  %v738_v30 = vld [vmem:[#allocation4 + $0x368] sm:$0xff]  ;;  %v4662_v50 = vpack.c.bf16 %v1122_v57, %v1118_v53  ;;  %v1154_v31 = vld [vmem:[#allocation6 + $0x360] sm:$0xff] }
 0x336   :  { %4503 = vmatpush1.bf16.msra.mxu1 %v4502_v35  ;;  %v1159_v28 = vld [vmem:[#allocation6 + $0x388] sm:$0xff]  ;;  %v1158_v53 = vld [vmem:[#allocation6 + $0x380] sm:$0xff] }
 0x337   :  { %4505 = vmatprep.subr.bf16.mxu1 %v4504_v25  ;;  %v4522_v25 = vpack.c.bf16 %v719_v20, %v717_v44  ;;  %v737_v44 = vld [vmem:[#allocation4 + $0x360] sm:$0xff]  ;;  %v739_v20 = vld [vmem:[#allocation4 + $0x370] sm:$0xff]  ;;  %v1163_v29 = vld [vmem:[#allocation6 + $0x3a8] sm:$0xff] }
 0x338   :  { %v1162_v57 = vld [vmem:[#allocation6 + $0x3a0] sm:$0xff] }
 0x33a   :  { %4507 = vmatpush1.bf16.msra.mxu1 %v4506_v16  ;;  %v728_v16 = vld [vmem:[#allocation4 + $0x318] sm:$0xff] }
 0x33b   :  { %4509 = vmatprep.subr.bf16.mxu1 %v4508_v43  ;;  %v1107_v43 = vld [vmem:[#allocation6 + $0x1e8] sm:$0xff]  ;;  %v4528_v37 = vpack.c.bf16 %v728_v16, %v726_v17  ;;  %v748_v16 = vld [vmem:[#allocation4 + $0x3b8] sm:$0xff] }
 0x33c   :  { %v612_v21 = vpop.f32.mrb[2].mxu0  ;;  %v4652_v19 = vpack.c.bf16 %v1107_v43, %v1103_v4  ;;  %v746_v17 = vld [vmem:[#allocation4 + $0x3a8] sm:$0xff] }
 0x33d   :  { %v6353_v46 = vmul.f32 %v6344_v9, %v612_v21  ;;  %v614_v51 = vpop.f32.mrb[3].mxu0  ;;  %v1143_v4 = vld [vmem:[#allocation6 + $0x308] sm:$0xff] }
 0x33e   :  { %v6356_v58 = vmul.f32 %v6344_v9, %v614_v51  ;;  %4511 = vmatpush1.bf16.msra.mxu1 %v4510_v10  ;;  %v1087_v9 = vld [vmem:[#allocation6 + $0x148] sm:$0xff]  ;;  %v732_v10 = vld [vmem:[#allocation4 + $0x338] sm:$0xff] }
 0x33f   :  { %4513 = vmatprep.subr.bf16.mxu1 %v4512_v45  ;;  %v4644_v35 = vpack.c.bf16 %v1091_v7, %v1087_v9  ;;  %v1115_v45 = vld [vmem:[#allocation6 + $0x228] sm:$0xff]  ;;  %v4532_v22 = vpack.c.bf16 %v732_v10, %v730_v11  ;;  %v736_v51 = vld [vmem:[#allocation4 + $0x358] sm:$0xff] }
 0x340   :  { %v4656_v21 = vpack.c.bf16 %v1115_v45, %v1111_v38  ;;  %v1127_v9 = vld [vmem:[#allocation6 + $0x288] sm:$0xff]  ;;  %v752_v10 = vld [vmem:[#allocation4 + $0x3d8] sm:$0xff] }
 0x341   :  { %4645 = vmatprep.subr.bf16.mxu0 %v4644_v35  ;;  %v1131_v7 = vld [vmem:[#allocation6 + $0x2a8] sm:$0xff] }
 0x342   :  { %4515 = vmatpush1.bf16.msra.mxu1 %v4514_v63  ;;  %4647 = vmatpush1.bf16.msra.mxu0 %v4646_v6  ;;  %v4534_v63 = vpack.c.bf16 %v731_v41, %v729_v0  ;;  %v4664_v35 = vpack.c.bf16 %v1131_v7, %v1127_v9  ;;  %v4666_v6 = vpack.c.bf16 %v1130_v55, %v1126_v49  ;;  %v1147_v43 = vld [vmem:[#allocation6 + $0x328] sm:$0xff]  ;;  %v749_v0 = vld [vmem:[#allocation4 + $0x3c0] sm:$0xff]  ;;  %v751_v41 = vld [vmem:[#allocation4 + $0x3d0] sm:$0xff] }
 0x343   :  { %4517 = vmatprep.subr.bf16.mxu1 %v4516_v14  ;;  %4649 = vmatprep.subr.bf16.mxu0 %v4648_v24  ;;  %v4536_v14 = vpack.c.bf16 %v736_v51, %v734_v27  ;;  %v4668_v24 = vpack.c.bf16 %v1139_v62, %v1135_v54  ;;  %v750_v11 = vld [vmem:[#allocation4 + $0x3c8] sm:$0xff]  ;;  %v756_v51 = vld [vmem:[#allocation4 + $0x3f8] sm:$0xff]  ;;  %v757_v7 = vld [vmem:[#allocation4 + $0x400] sm:$0xff] }
 0x344   :  { %v1151_v38 = vld [vmem:[#allocation6 + $0x348] sm:$0xff]  ;;  %v759_v49 = vld [vmem:[#allocation4 + $0x410] sm:$0xff]  ;;  %v761_v55 = vld [vmem:[#allocation4 + $0x420] sm:$0xff] }
 0x345   :  { %v1155_v45 = vld [vmem:[#allocation6 + $0x368] sm:$0xff]  ;;  %v765_v62 = vld [vmem:[#allocation4 + $0x440] sm:$0xff] }
 0x346   :  { %4519 = vmatpush1.bf16.msra.mxu1 %v4518_v34  ;;  %4651 = vmatpush1.bf16.msra.mxu0 %v4650_v18  ;;  %v4538_v34 = vpack.c.bf16 %v735_v40, %v733_v32  ;;  %v4670_v18 = vpack.c.bf16 %v1138_v8, %v1134_v59  ;;  %v754_v27 = vld [vmem:[#allocation4 + $0x3e8] sm:$0xff]  ;;  %v753_v32 = vld [vmem:[#allocation4 + $0x3e0] sm:$0xff]  ;;  %v755_v40 = vld [vmem:[#allocation4 + $0x3f0] sm:$0xff] }
 0x347   :  { %4521 = vmatprep.subr.bf16.mxu1 %v4520_v56  ;;  %4653 = vmatprep.subr.bf16.mxu0 %v4652_v19  ;;  %v4540_v56 = vpack.c.bf16 %v740_v48, %v738_v30  ;;  %v4672_v19 = vpack.c.bf16 %v1147_v43, %v1143_v4  ;;  %v758_v30 = vld [vmem:[#allocation4 + $0x408] sm:$0xff]  ;;  %v760_v48 = vld [vmem:[#allocation4 + $0x418] sm:$0xff]  ;;  %v767_v59 = vld [vmem:[#allocation4 + $0x450] sm:$0xff] }
 0x348   :  { %v4560_v9 = vpack.c.bf16 %v760_v48, %v758_v30  ;;  %v769_v8 = vld [vmem:[#allocation4 + $0x460] sm:$0xff]  ;;  %v775_v4 = vld [vmem:[#allocation4 + $0x490] sm:$0xff]  ;;  %v778_v43 = vld [vmem:[#allocation4 + $0x4a8] sm:$0xff] }
 0x349   :  { %v800_v30 = vld [vmem:[#allocation4 + $0x558] sm:$0xff] }
 0x34a   :  { %4523 = vmatpush1.bf16.msra.mxu1 %v4522_v25  ;;  %4655 = vmatpush1.bf16.msra.mxu0 %v4654_v13  ;;  %v4542_v25 = vpack.c.bf16 %v739_v20, %v737_v44  ;;  %v4674_v13 = vpack.c.bf16 %v1146_v42, %v1142_v26  ;;  %v764_v44 = vld [vmem:[#allocation4 + $0x438] sm:$0xff]  ;;  %v4562_v20 = vpack.c.bf16 %v759_v49, %v757_v7  ;;  %v782_v42 = vld [vmem:[#allocation4 + $0x4c8] sm:$0xff] }
 0x34b   :  { %4525 = vmatprep.subr.bf16.mxu1 %v4524_v1  ;;  %4657 = vmatprep.subr.bf16.mxu0 %v4656_v21  ;;  %v4544_v1 = vpack.c.bf16 %v744_v5, %v742_v3  ;;  %v4676_v21 = vpack.c.bf16 %v1155_v45, %v1151_v38  ;;  %v763_v3 = vld [vmem:[#allocation4 + $0x430] sm:$0xff]  ;;  %v766_v5 = vld [vmem:[#allocation4 + $0x448] sm:$0xff]  ;;  %v780_v26 = vld [vmem:[#allocation4 + $0x4b8] sm:$0xff] }
 0x34c   :  { %v783_v38 = vld [vmem:[#allocation4 + $0x4d0] sm:$0xff]  ;;  %v786_v45 = vld [vmem:[#allocation4 + $0x4e8] sm:$0xff]  ;;  %v804_v49 = vld [vmem:[#allocation4 + $0x578] sm:$0xff] }
 0x34d   :  { %v802_v7 = vld [vmem:[#allocation4 + $0x568] sm:$0xff] }
 0x34e   :  { %4527 = vmatpush1.bf16.msra.mxu1 %v4526_v60  ;;  %4659 = vmatpush1.bf16.msra.mxu0 %v4658_v52  ;;  %v4546_v60 = vpack.c.bf16 %v743_v61, %v741_v2  ;;  %v4678_v52 = vpack.c.bf16 %v1154_v31, %v1150_v12  ;;  %v772_v2 = vld [vmem:[#allocation4 + $0x478] sm:$0xff]  ;;  %v4570_v61 = vpack.c.bf16 %v767_v59, %v765_v62  ;;  %v790_v31 = vld [vmem:[#allocation4 + $0x508] sm:$0xff] }
 0x34f   :  { %4529 = vmatprep.subr.bf16.mxu1 %v4528_v37  ;;  %4661 = vmatprep.subr.bf16.mxu0 %v4660_v23  ;;  %v4548_v37 = vpack.c.bf16 %v748_v16, %v746_v17  ;;  %v4680_v23 = vpack.c.bf16 %v1163_v29, %v1159_v28  ;;  %v771_v17 = vld [vmem:[#allocation4 + $0x470] sm:$0xff]  ;;  %v774_v16 = vld [vmem:[#allocation4 + $0x488] sm:$0xff]  ;;  %v788_v12 = vld [vmem:[#allocation4 + $0x4f8] sm:$0xff] }
 0x350   :  { %v791_v28 = vld [vmem:[#allocation4 + $0x510] sm:$0xff]  ;;  %v794_v29 = vld [vmem:[#allocation4 + $0x528] sm:$0xff]  ;;  %v812_v59 = vld [vmem:[#allocation4 + $0x5b8] sm:$0xff] }
 0x351   :  { %v810_v62 = vld [vmem:[#allocation4 + $0x5a8] sm:$0xff] }
 0x352   :  { %4531 = vmatpush1.bf16.msra.mxu1 %v4530_v33  ;;  %4663 = vmatpush1.bf16.msra.mxu0 %v4662_v50  ;;  %v4550_v33 = vpack.c.bf16 %v747_v15, %v745_v36  ;;  %v4682_v50 = vpack.c.bf16 %v1162_v57, %v1158_v53  ;;  %v4580_v36 = vpack.c.bf16 %v780_v26, %v778_v43  ;;  %v777_v15 = vld [vmem:[#allocation4 + $0x4a0] sm:$0xff]  ;;  %v796_v53 = vld [vmem:[#allocation4 + $0x538] sm:$0xff]  ;;  %v798_v57 = vld [vmem:[#allocation4 + $0x548] sm:$0xff] }
 0x353   :  { %4533 = vmatprep.subr.bf16.mxu1 %v4532_v22  ;;  %4665 = vmatprep.subr.bf16.mxu0 %v4664_v35  ;;  %v4552_v22 = vpack.c.bf16 %v752_v10, %v750_v11  ;;  %v784_v11 = vld [vmem:[#allocation4 + $0x4d8] sm:$0xff] }
 0x356   :  { %4535 = vmatpush1.bf16.msra.mxu1 %v4534_v63  ;;  %4667 = vmatpush1.bf16.msra.mxu0 %v4666_v6  ;;  %v4554_v63 = vpack.c.bf16 %v751_v41, %v749_v0  ;;  %v768_v6 = vld [vmem:[#allocation4 + $0x458] sm:$0xff]  ;;  %v4588_v0 = vpack.c.bf16 %v788_v12, %v786_v45  ;;  %v785_v41 = vld [vmem:[#allocation4 + $0x4e0] sm:$0xff] }
 0x357   :  { %4537 = vmatprep.subr.bf16.mxu1 %v4536_v14  ;;  %4669 = vmatprep.subr.bf16.mxu0 %v4668_v24  ;;  %v4556_v14 = vpack.c.bf16 %v756_v51, %v754_v27  ;;  %v4568_v54 = vpack.c.bf16 %v768_v6, %v766_v5  ;;  %v792_v27 = vld [vmem:[#allocation4 + $0x518] sm:$0xff] }
 0x35a   :  { %4539 = vmatpush1.bf16.msra.mxu1 %v4538_v34  ;;  %4671 = vmatpush1.bf16.msra.mxu0 %v4670_v18  ;;  %v4558_v34 = vpack.c.bf16 %v755_v40, %v753_v32  ;;  %v776_v18 = vld [vmem:[#allocation4 + $0x498] sm:$0xff]  ;;  %v4596_v32 = vpack.c.bf16 %v796_v53, %v794_v29  ;;  %v793_v40 = vld [vmem:[#allocation4 + $0x520] sm:$0xff] }
 0x35b   :  { %4541 = vmatprep.subr.bf16.mxu1 %v4540_v56  ;;  %4673 = vmatprep.subr.bf16.mxu0 %v4672_v19  ;;  %v762_v56 = vld [vmem:[#allocation4 + $0x428] sm:$0xff]  ;;  %v779_v19 = vld [vmem:[#allocation4 + $0x4b0] sm:$0xff] }
 0x35c   :  { %v4564_v35 = vpack.c.bf16 %v764_v44, %v762_v56  ;;  %v4582_v10 = vpack.c.bf16 %v779_v19, %v777_v15  ;;  %v4604_v44 = vpack.c.bf16 %v804_v49, %v802_v7  ;;  %v1341_v15 = vld [vmem:[#allocation7 + $0x18] sm:$0xff]  ;;  %v1380_v49 = vld [vmem:[#allocation7 + $0x150] sm:$0xff] }
 0x35d   :  { %v1345_v19 = vld [vmem:[#allocation7 + $0x38] sm:$0xff] }
 0x35e   :  { %4543 = vmatpush1.bf16.msra.mxu1 %v4542_v25  ;;  %4675 = vmatpush1.bf16.msra.mxu0 %v4674_v13  ;;  %v4566_v25 = vpack.c.bf16 %v763_v3, %v761_v55  ;;  %v4584_v13 = vpack.c.bf16 %v784_v11, %v782_v42  ;;  %v806_v55 = vld [vmem:[#allocation4 + $0x588] sm:$0xff]  ;;  %v808_v3 = vld [vmem:[#allocation4 + $0x598] sm:$0xff]  ;;  %v4816_v11 = vpack.c.bf16 %v1345_v19, %v1341_v15  ;;  %v1420_v19 = vld [vmem:[#allocation7 + $0x290] sm:$0xff] }
 0x35f   :  { %4545 = vmatprep.subr.bf16.mxu1 %v4544_v1  ;;  %4677 = vmatprep.subr.bf16.mxu0 %v4676_v21  ;;  %v770_v1 = vld [vmem:[#allocation4 + $0x468] sm:$0xff]  ;;  %v787_v21 = vld [vmem:[#allocation4 + $0x4f0] sm:$0xff]  ;;  %v4608_v6 = vpack.c.bf16 %v808_v3, %v806_v55 }
 0x360   :  { %v4572_v24 = vpack.c.bf16 %v772_v2, %v770_v1  ;;  %v4590_v51 = vpack.c.bf16 %v787_v21, %v785_v41  ;;  %v4612_v2 = vpack.c.bf16 %v812_v59, %v810_v62  ;;  %v1357_v41 = vld [vmem:[#allocation7 + $0x98] sm:$0xff]  ;;  %v1388_v3 = vld [vmem:[#allocation7 + $0x190] sm:$0xff] }
 0x361   :  { %v1361_v21 = vld [vmem:[#allocation7 + $0xb8] sm:$0xff]  ;;  %v1396_v59 = vld [vmem:[#allocation7 + $0x1d0] sm:$0xff] }
 0x362   :  { %4547 = vmatpush1.bf16.msra.mxu1 %v4546_v60  ;;  %4679 = vmatpush1.bf16.msra.mxu0 %v4678_v52  ;;  %v4576_v60 = vpack.c.bf16 %v776_v18, %v774_v16  ;;  %v4592_v52 = vpack.c.bf16 %v792_v27, %v790_v31  ;;  %v4824_v27 = vpack.c.bf16 %v1361_v21, %v1357_v41  ;;  %v1436_v21 = vld [vmem:[#allocation7 + $0x310] sm:$0xff] }
 0x363   :  { %4549 = vmatprep.subr.bf16.mxu1 %v4548_v37  ;;  %4681 = vmatprep.subr.bf16.mxu0 %v4680_v23  ;;  %v795_v23 = vld [vmem:[#allocation4 + $0x530] sm:$0xff] }
 0x364   :  { %v4598_v48 = vpack.c.bf16 %v795_v23, %v793_v40  ;;  %v1373_v40 = vld [vmem:[#allocation7 + $0x118] sm:$0xff] }
 0x365   :  { %v1377_v23 = vld [vmem:[#allocation7 + $0x138] sm:$0xff] }
 0x366   :  { %4551 = vmatpush1.bf16.msra.mxu1 %v4550_v33  ;;  %4683 = vmatpush1.bf16.msra.mxu0 %v4682_v50  ;;  %v781_v33 = vld [vmem:[#allocation4 + $0x4c0] sm:$0xff]  ;;  %v4600_v50 = vpack.c.bf16 %v800_v30, %v798_v57  ;;  %v1372_v30 = vld [vmem:[#allocation7 + $0x110] sm:$0xff] }
 0x367   :  { %4553 = vmatprep.subr.bf16.mxu1 %v4552_v22  ;;  %v4586_v22 = vpack.c.bf16 %v783_v38, %v781_v33  ;;  %v1349_v33 = vld [vmem:[#allocation7 + $0x58] sm:$0xff] }
 0x368   :  { %v1353_v38 = vld [vmem:[#allocation7 + $0x78] sm:$0xff] }
 0x369   :  { %v4820_v12 = vpack.c.bf16 %v1353_v38, %v1349_v33  ;;  %v1428_v38 = vld [vmem:[#allocation7 + $0x2d0] sm:$0xff] }
 0x36a   :  { %4555 = vmatpush1.bf16.msra.mxu1 %v4554_v63  ;;  %v789_v63 = vld [vmem:[#allocation4 + $0x500] sm:$0xff] }
 0x36b   :  { %4557 = vmatprep.subr.bf16.mxu1 %v4556_v14  ;;  %v4594_v14 = vpack.c.bf16 %v791_v28, %v789_v63  ;;  %v1365_v63 = vld [vmem:[#allocation7 + $0xd8] sm:$0xff] }
 0x36c   :  { %v1369_v28 = vld [vmem:[#allocation7 + $0xf8] sm:$0xff] }
 0x36d   :  { %v4828_v53 = vpack.c.bf16 %v1369_v28, %v1365_v63  ;;  %v1444_v28 = vld [vmem:[#allocation7 + $0x350] sm:$0xff] }
 0x36e   :  { %4559 = vmatpush1.bf16.msra.mxu1 %v4558_v34  ;;  %v797_v34 = vld [vmem:[#allocation4 + $0x540] sm:$0xff] }
 0x36f   :  { %4561 = vmatprep.subr.bf16.mxu1 %v4560_v9  ;;  %v799_v9 = vld [vmem:[#allocation4 + $0x550] sm:$0xff] }
 0x370   :  { %v4602_v56 = vpack.c.bf16 %v799_v9, %v797_v34  ;;  %v1385_v34 = vld [vmem:[#allocation7 + $0x178] sm:$0xff] }
 0x371   :  { %969 = vmatmul.mubr.f32.vlgmr.msra.gmra.mrb[2].mxu1 %v6347_v47  ;;  %v4574_v47 = vpack.c.bf16 %v771_v17, %v769_v8  ;;  %v814_v8 = vld [vmem:[#allocation4 + $0x5c8] sm:$0xff]  ;;  %v816_v17 = vld [vmem:[#allocation4 + $0x5d8] sm:$0xff] }
 0x372   :  { %4563 = vmatpush1.bf16.msra.mxu1 %v4562_v20  ;;  %1039 = vmatprep.mubr.f32.mxu1 %v6356_v58  ;;  %v773_v58 = vld [vmem:[#allocation4 + $0x480] sm:$0xff]  ;;  %v4616_v18 = vpack.c.bf16 %v816_v17, %v814_v8  ;;  %v1404_v17 = vld [vmem:[#allocation7 + $0x210] sm:$0xff] }
 0x373   :  { %4565 = vmatprep.subr.bf16.mxu1 %v4564_v35  ;;  %v4578_v37 = vpack.c.bf16 %v775_v4, %v773_v58  ;;  %v801_v20 = vld [vmem:[#allocation4 + $0x560] sm:$0xff]  ;;  %v803_v35 = vld [vmem:[#allocation4 + $0x570] sm:$0xff]  ;;  %v818_v58 = vld [vmem:[#allocation4 + $0x5e8] sm:$0xff] }
 0x374   :  { %v4606_v5 = vpack.c.bf16 %v803_v35, %v801_v20  ;;  %v820_v4 = vld [vmem:[#allocation4 + $0x5f8] sm:$0xff] }
 0x375   :  { %v4620_v26 = vpack.c.bf16 %v820_v4, %v818_v58  ;;  %v1393_v20 = vld [vmem:[#allocation7 + $0x1b8] sm:$0xff]  ;;  %v1412_v4 = vld [vmem:[#allocation7 + $0x250] sm:$0xff] }
 0x376   :  { %4567 = vmatpush1.bf16.msra.mxu1 %v4566_v25  ;;  %v805_v25 = vld [vmem:[#allocation4 + $0x580] sm:$0xff] }
 0x377   :  { %4569 = vmatprep.subr.bf16.mxu1 %v4568_v54  ;;  %v807_v54 = vld [vmem:[#allocation4 + $0x590] sm:$0xff] }
 0x378   :  { %v4610_v1 = vpack.c.bf16 %v807_v54, %v805_v25  ;;  %v1401_v25 = vld [vmem:[#allocation7 + $0x1f8] sm:$0xff] }
 0x37a   :  { %4571 = vmatpush1.bf16.msra.mxu1 %v4570_v61  ;;  %v809_v61 = vld [vmem:[#allocation4 + $0x5a0] sm:$0xff] }
 0x37b   :  { %4573 = vmatprep.subr.bf16.mxu1 %v4572_v24  ;;  %v811_v24 = vld [vmem:[#allocation4 + $0x5b0] sm:$0xff] }
 0x37c   :  { %v4614_v16 = vpack.c.bf16 %v811_v24, %v809_v61  ;;  %v1409_v61 = vld [vmem:[#allocation7 + $0x238] sm:$0xff] }
 0x37e   :  { %4575 = vmatpush1.bf16.msra.mxu1 %v4574_v47  ;;  %v813_v47 = vld [vmem:[#allocation4 + $0x5c0] sm:$0xff] }
 0x37f   :  { %4577 = vmatprep.subr.bf16.mxu1 %v4576_v60  ;;  %v815_v60 = vld [vmem:[#allocation4 + $0x5d0] sm:$0xff] }
 0x380   :  { %v4618_v43 = vpack.c.bf16 %v815_v60, %v813_v47  ;;  %v1417_v47 = vld [vmem:[#allocation7 + $0x278] sm:$0xff] }
 0x382   :  { %4579 = vmatpush1.bf16.msra.mxu1 %v4578_v37  ;;  %v817_v37 = vld [vmem:[#allocation4 + $0x5e0] sm:$0xff] }
 0x383   :  { %4581 = vmatprep.subr.bf16.mxu1 %v4580_v36  ;;  %v819_v36 = vld [vmem:[#allocation4 + $0x5f0] sm:$0xff] }
 0x384   :  { %v4622_v42 = vpack.c.bf16 %v819_v36, %v817_v37  ;;  %v1425_v37 = vld [vmem:[#allocation7 + $0x2b8] sm:$0xff] }
 0x386   :  { %4583 = vmatpush1.bf16.msra.mxu1 %v4582_v10  ;;  %v1340_v10 = vld [vmem:[#allocation7 + $0x10] sm:$0xff] }
 0x387   :  { %4585 = vmatprep.subr.bf16.mxu1 %v4584_v13  ;;  %v1344_v13 = vld [vmem:[#allocation7 + $0x30] sm:$0xff] }
 0x388   :  { %v4818_v45 = vpack.c.bf16 %v1344_v13, %v1340_v10  ;;  %v1433_v10 = vld [vmem:[#allocation7 + $0x2f8] sm:$0xff] }
 0x38a   :  { %4587 = vmatpush1.bf16.msra.mxu1 %v4586_v22  ;;  %v1348_v22 = vld [vmem:[#allocation7 + $0x50] sm:$0xff] }
 0x38b   :  { %4589 = vmatprep.subr.bf16.mxu1 %v4588_v0  ;;  %v1352_v0 = vld [vmem:[#allocation7 + $0x70] sm:$0xff] }
 0x38c   :  { %v4822_v31 = vpack.c.bf16 %v1352_v0, %v1348_v22  ;;  %v1441_v22 = vld [vmem:[#allocation7 + $0x338] sm:$0xff] }
 0x38e   :  { %4591 = vmatpush1.bf16.msra.mxu1 %v4590_v51  ;;  %v1356_v51 = vld [vmem:[#allocation7 + $0x90] sm:$0xff] }
 0x38f   :  { %4593 = vmatprep.subr.bf16.mxu1 %v4592_v52  ;;  %v1360_v52 = vld [vmem:[#allocation7 + $0xb0] sm:$0xff] }
 0x390   :  { %v4826_v29 = vpack.c.bf16 %v1360_v52, %v1356_v51  ;;  %v1449_v51 = vld [vmem:[#allocation7 + $0x378] sm:$0xff] }
 0x392   :  { %4595 = vmatpush1.bf16.msra.mxu1 %v4594_v14  ;;  %v1364_v14 = vld [vmem:[#allocation7 + $0xd0] sm:$0xff] }
 0x393   :  { %4597 = vmatprep.subr.bf16.mxu1 %v4596_v32  ;;  %v1368_v32 = vld [vmem:[#allocation7 + $0xf0] sm:$0xff] }
 0x394   :  { %v4830_v57 = vpack.c.bf16 %v1368_v32, %v1364_v14  ;;  %v1457_v14 = vld [vmem:[#allocation7 + $0x3b8] sm:$0xff] }
 0x396   :  { %4599 = vmatpush1.bf16.msra.mxu1 %v4598_v48  ;;  %v1376_v48 = vld [vmem:[#allocation7 + $0x130] sm:$0xff] }
 0x397   :  { %4601 = vmatprep.subr.bf16.mxu1 %v4600_v50  ;;  %v1381_v50 = vld [vmem:[#allocation7 + $0x158] sm:$0xff]  ;;  %v4834_v9 = vpack.c.bf16 %v1376_v48, %v1372_v30  ;;  %v1167_v30 = vld [vmem:[#allocation6 + $0x3c8] sm:$0xff] }
 0x398   :  { %v4836_v7 = vpack.c.bf16 %v1385_v34, %v1381_v50  ;;  %v1171_v48 = vld [vmem:[#allocation6 + $0x3e8] sm:$0xff]  ;;  %v1166_v34 = vld [vmem:[#allocation6 + $0x3c0] sm:$0xff] }
 0x399   :  { %v4684_v50 = vpack.c.bf16 %v1171_v48, %v1167_v30  ;;  %v1081_v30 = vld [vmem:[#allocation6 + $0x118] sm:$0xff] }
 0x39a   :  { %4603 = vmatpush1.bf16.msra.mxu1 %v4602_v56  ;;  %v1384_v56 = vld [vmem:[#allocation7 + $0x170] sm:$0xff] }
 0x39b   :  { %4605 = vmatprep.subr.bf16.mxu1 %v4604_v44  ;;  %v1389_v44 = vld [vmem:[#allocation7 + $0x198] sm:$0xff]  ;;  %v4838_v35 = vpack.c.bf16 %v1384_v56, %v1380_v49  ;;  %4685 = vmatprep.subr.bf16.mxu0 %v4684_v50 }
 0x39c   :  { %v4840_v55 = vpack.c.bf16 %v1393_v20, %v1389_v44  ;;  %v1465_v56 = vld [vmem:[#allocation7 + $0x3f8] sm:$0xff]  ;;  %v1460_v44 = vld [vmem:[#allocation7 + $0x3d0] sm:$0xff] }
 0x39d   :  { %v1464_v20 = vld [vmem:[#allocation7 + $0x3f0] sm:$0xff]  ;;  %v1085_v50 = vld [vmem:[#allocation6 + $0x138] sm:$0xff] }
 0x39e   :  { %4607 = vmatpush1.bf16.msra.mxu1 %v4606_v5  ;;  %v1392_v5 = vld [vmem:[#allocation7 + $0x1b0] sm:$0xff] }
 0x39f   :  { %4609 = vmatprep.subr.bf16.mxu1 %v4608_v6  ;;  %v1397_v6 = vld [vmem:[#allocation7 + $0x1d8] sm:$0xff]  ;;  %v4842_v54 = vpack.c.bf16 %v1392_v5, %v1388_v3 }
 0x3a0   :  { %v4844_v62 = vpack.c.bf16 %v1401_v25, %v1397_v6  ;;  %v1049_v3 = vld [vmem:[#allocation6 + $0x18] sm:$0xff]  ;;  %v1695_v25 = vld [vmem:[#allocation9 + $0x8] sm:$0xff] }
 0x3a1   :  { %v1053_v5 = vld [vmem:[#allocation6 + $0x38] sm:$0xff] }
 0x3a2   :  { %4611 = vmatpush1.bf16.msra.mxu1 %v4610_v1  ;;  %v1400_v1 = vld [vmem:[#allocation7 + $0x1f0] sm:$0xff]  ;;  %v4688_v6 = vpack.c.bf16 %v1053_v5, %v1049_v3  ;;  %v1089_v3 = vld [vmem:[#allocation6 + $0x158] sm:$0xff] }
 0x3a3   :  { %4613 = vmatprep.subr.bf16.mxu1 %v4612_v2  ;;  %v1405_v2 = vld [vmem:[#allocation7 + $0x218] sm:$0xff]  ;;  %v4846_v24 = vpack.c.bf16 %v1400_v1, %v1396_v59  ;;  %v821_v59 = vld [vmem:[%s7428_s5] sm:$0x3]  ;;  %v7573_v1 = vld [vmem:[#allocation14_spill] sm:$0xff] }
 0x3a4   :  { %v4848_v8 = vpack.c.bf16 %v1409_v61, %v1405_v2  ;;  %v830_v2 = vrot.slane %v821_v59, %v7573_v1  ;;  %v7574_v61 = vld [vmem:[#allocation13_spill] sm:$0xff] }
 0x3a6   :  { %4615 = vmatpush1.bf16.msra.mxu1 %v4614_v16  ;;  %v1408_v16 = vld [vmem:[#allocation7 + $0x230] sm:$0xff] }
 0x3a7   :  { %4617 = vmatprep.subr.bf16.mxu1 %v4616_v18  ;;  %v1413_v18 = vld [vmem:[#allocation7 + $0x258] sm:$0xff]  ;;  %v4850_v60 = vpack.c.bf16 %v1408_v16, %v1404_v17  ;;  %v1052_v17 = vld [vmem:[#allocation6 + $0x30] sm:$0xff] }
 0x3a8   :  { %v4852_v58 = vpack.c.bf16 %v1417_v47, %v1413_v18  ;;  %v1057_v16 = vld [vmem:[#allocation6 + $0x58] sm:$0xff] }
 0x3a9   :  { %v1061_v47 = vld [vmem:[#allocation6 + $0x78] sm:$0xff] }
 0x3aa   :  { %4619 = vmatpush1.bf16.msra.mxu1 %v4618_v43  ;;  %v1416_v43 = vld [vmem:[#allocation7 + $0x270] sm:$0xff] }
 0x3ab   :  { %4621 = vmatprep.subr.bf16.mxu1 %v4620_v26  ;;  %v1421_v26 = vld [vmem:[#allocation7 + $0x298] sm:$0xff]  ;;  %v4854_v36 = vpack.c.bf16 %v1416_v43, %v1412_v4  ;;  %v1703_v43 = vld [vmem:[#allocation9 + $0x48] sm:$0xff] }
 0x3ac   :  { %v4856_v15 = vpack.c.bf16 %v1425_v37, %v1421_v26  ;;  %v1707_v26 = vld [vmem:[#allocation9 + $0x68] sm:$0xff] }
 0x3ae   :  { %4623 = vmatpush1.bf16.msra.mxu1 %v4622_v42  ;;  %v1424_v42 = vld [vmem:[#allocation7 + $0x2b0] sm:$0xff] }
 0x3af   :  { %4817 = vmatprep.subr.bf16.mxu1 %v4816_v11  ;;  %v1429_v11 = vld [vmem:[#allocation7 + $0x2d8] sm:$0xff]  ;;  %v4858_v13 = vpack.c.bf16 %v1424_v42, %v1420_v19  ;;  %v4692_v19 = vpack.c.bf16 %v1061_v47, %v1057_v16  ;;  %v1056_v42 = vld [vmem:[#allocation6 + $0x50] sm:$0xff] }
 0x3b0   :  { %v4860_v33 = vpack.c.bf16 %v1433_v10, %v1429_v11  ;;  %v1060_v11 = vld [vmem:[#allocation6 + $0x70] sm:$0xff]  ;;  %v1065_v10 = vld [vmem:[#allocation6 + $0x98] sm:$0xff] }
 0x3b1   :  { %1040 = vmatmul.mubr.f32.vlgmr.msra.gmra.mrb[2].mxu1 %v6353_v46  ;;  %v4832_v46 = vpack.c.bf16 %v1377_v23, %v1373_v40  ;;  %v1452_v23 = vld [vmem:[#allocation7 + $0x390] sm:$0xff]  ;;  %v1097_v47 = vld [vmem:[#allocation6 + $0x198] sm:$0xff] }
 0x3b2   :  { %4819 = vmatpush1.bf16.msra.mxu1 %v4818_v45  ;;  %v1432_v45 = vld [vmem:[#allocation7 + $0x2f0] sm:$0xff] }
 0x3b3   :  { %4821 = vmatprep.subr.bf16.mxu1 %v4820_v12  ;;  %v1437_v12 = vld [vmem:[#allocation7 + $0x318] sm:$0xff]  ;;  %v4862_v0 = vpack.c.bf16 %v1432_v45, %v1428_v38  ;;  %v6377_v38 = vpack.c.bf16 %v1707_v26, %v1703_v43  ;;  %v1702_v45 = vld [vmem:[#allocation9 + $0x40] sm:$0xff]  ;;  %v1088_v16 = vld [vmem:[#allocation6 + $0x150] sm:$0xff] }
 0x3b4   :  { %v4864_v41 = vpack.c.bf16 %v1441_v22, %v1437_v12  ;;  %v1706_v12 = vld [vmem:[#allocation9 + $0x60] sm:$0xff]  ;;  %v1711_v22 = vld [vmem:[#allocation9 + $0x88] sm:$0xff] }
 0x3b5   :  { %v1734_v43 = vld [vmem:[#allocation9 + $0x140] sm:$0xff] }
 0x3b6   :  { %4823 = vmatpush1.bf16.msra.mxu1 %v4822_v31  ;;  %v1440_v31 = vld [vmem:[#allocation7 + $0x330] sm:$0xff]  ;;  %v1738_v26 = vld [vmem:[#allocation9 + $0x160] sm:$0xff] }
 0x3b7   :  { %4825 = vmatprep.subr.bf16.mxu1 %v4824_v27  ;;  %v1445_v27 = vld [vmem:[#allocation7 + $0x358] sm:$0xff]  ;;  %v4866_v52 = vpack.c.bf16 %v1440_v31, %v1436_v21  ;;  %v1064_v31 = vld [vmem:[#allocation6 + $0x90] sm:$0xff] }
 0x3b8   :  { %v4868_v63 = vpack.c.bf16 %v1449_v51, %v1445_v27  ;;  %v1068_v27 = vld [vmem:[#allocation6 + $0xb0] sm:$0xff]  ;;  %v1073_v51 = vld [vmem:[#allocation6 + $0xd8] sm:$0xff] }
 0x3ba   :  { %4827 = vmatpush1.bf16.msra.mxu1 %v4826_v29  ;;  %v1448_v29 = vld [vmem:[#allocation7 + $0x370] sm:$0xff] }
 0x3bb   :  { %4829 = vmatprep.subr.bf16.mxu1 %v4828_v53  ;;  %v1453_v53 = vld [vmem:[#allocation7 + $0x398] sm:$0xff]  ;;  %v4870_v32 = vpack.c.bf16 %v1448_v29, %v1444_v28  ;;  %v1710_v29 = vld [vmem:[#allocation9 + $0x80] sm:$0xff] }
 0x3bc   :  { %v4872_v40 = vpack.c.bf16 %v1457_v14, %v1453_v53  ;;  %v1714_v53 = vld [vmem:[#allocation9 + $0xa0] sm:$0xff]  ;;  %v1719_v14 = vld [vmem:[#allocation9 + $0xc8] sm:$0xff] }
 0x3bd   :  { %v6390_v48 = vpack.c.bf16 %v1714_v53, %v1710_v29  ;;  %v1104_v29 = vld [vmem:[#allocation6 + $0x1d0] sm:$0xff] }
 0x3be   :  { %4831 = vmatpush1.bf16.msra.mxu1 %v4830_v57  ;;  %v1456_v57 = vld [vmem:[#allocation7 + $0x3b0] sm:$0xff] }
 0x3bf   :  { %4833 = vmatprep.subr.bf16.mxu1 %v4832_v46  ;;  %v4874_v46 = vpack.c.bf16 %v1456_v57, %v1452_v23  ;;  %v1072_v57 = vld [vmem:[#allocation6 + $0xd0] sm:$0xff] }
 0x3c0   :  { %v1108_v53 = vld [vmem:[#allocation6 + $0x1f0] sm:$0xff] }
 0x3c2   :  { %4835 = vmatpush1.bf16.msra.mxu1 %v4834_v9  ;;  %v1170_v9 = vld [vmem:[#allocation6 + $0x3e0] sm:$0xff] }
 0x3c3   :  { %4837 = vmatprep.subr.bf16.mxu1 %v4836_v7  ;;  %v1461_v7 = vld [vmem:[#allocation7 + $0x3d8] sm:$0xff]  ;;  %v4686_v49 = vpack.c.bf16 %v1170_v9, %v1166_v34  ;;  %v1718_v9 = vld [vmem:[#allocation9 + $0xc0] sm:$0xff] }
 0x3c5   :  { %4687 = vmatpush1.bf16.msra.mxu0 %v4686_v49  ;;  %v1727_v49 = vld [vmem:[#allocation9 + $0x108] sm:$0xff] }
 0x3c6   :  { %4839 = vmatpush1.bf16.msra.mxu1 %v4838_v35  ;;  %v4876_v35 = vpack.c.bf16 %v1465_v56, %v1461_v7  ;;  %4689 = vmatprep.subr.bf16.mxu0 %v4688_v6  ;;  %v1722_v7 = vld [vmem:[#allocation9 + $0xe0] sm:$0xff]  ;;  %v1731_v56 = vld [vmem:[#allocation9 + $0x128] sm:$0xff]  ;;  %v1093_v6 = vld [vmem:[#allocation6 + $0x178] sm:$0xff] }
 0x3c7   :  { %4841 = vmatprep.subr.bf16.mxu1 %v4840_v55  ;;  %v4878_v55 = vpack.c.bf16 %v1464_v20, %v1460_v44  ;;  %v4704_v20 = vpack.c.bf16 %v1085_v50, %v1081_v30  ;;  %v6396_v5 = vpack.c.bf16 %v1722_v7, %v1718_v9  ;;  %v4718_v30 = vpack.c.bf16 %v1108_v53, %v1104_v29  ;;  %v1112_v50 = vld [vmem:[#allocation6 + $0x210] sm:$0xff] }
 0x3c8   :  { %v1116_v7 = vld [vmem:[#allocation6 + $0x230] sm:$0xff] }
 0x3c9   :  { %v1140_v53 = vld [vmem:[#allocation6 + $0x2f0] sm:$0xff] }
 0x3ca   :  { %4843 = vmatpush1.bf16.msra.mxu1 %v4842_v54  ;;  %v1699_v54 = vld [vmem:[#allocation9 + $0x28] sm:$0xff] }
 0x3cb   :  { %4845 = vmatprep.subr.bf16.mxu1 %v4844_v62  ;;  %v6361_v62 = vpack.c.bf16 %v1699_v54, %v1695_v25  ;;  %v6399_v25 = vpack.c.bf16 %v1731_v56, %v1727_v49  ;;  %v1726_v54 = vld [vmem:[#allocation9 + $0x100] sm:$0xff]  ;;  %v1631_v56 = vld [vmem:[%s7431_s8 + $0x8] sm:$0xff] }
 0x3cd   :  { %7572 = vst [vmem:[#allocation22_spill] sm:$0xff] %v6361_v62 }
 0x3ce   :  { %4847 = vmatpush1.bf16.msra.mxu1 %v4846_v24  ;;  %v826_v24 = vrot.slane %v821_v59, %v7574_v61  ;;  %v1730_v59 = vld [vmem:[#allocation9 + $0x120] sm:$0xff] }
 0x3cf   :  { %4849 = vmatprep.subr.bf16.mxu1 %v4848_v8  ;;  %v1048_v8 = vld [vmem:[#allocation6 + $0x10] sm:$0xff] }
 0x3d2   :  { %4851 = vmatpush1.bf16.msra.mxu1 %v4850_v60  ;;  %v1694_v60 = vld [vmem:[#allocation9] sm:$0xff] }
 0x3d3   :  { %4853 = vmatprep.subr.bf16.mxu1 %v4852_v58  ;;  %v1698_v58 = vld [vmem:[#allocation9 + $0x20] sm:$0xff] }
 0x3d6   :  { %4855 = vmatpush1.bf16.msra.mxu1 %v4854_v36  ;;  %v4690_v36 = vpack.c.bf16 %v1052_v17, %v1048_v8  ;;  %v4708_v17 = vpack.c.bf16 %v1093_v6, %v1089_v3  ;;  %v1120_v3 = vld [vmem:[#allocation6 + $0x250] sm:$0xff] }
 0x3d7   :  { %4857 = vmatprep.subr.bf16.mxu1 %v4856_v15 }
 0x3da   :  { %4859 = vmatpush1.bf16.msra.mxu1 %v4858_v13  ;;  %v6373_v13 = vpack.c.bf16 %v1698_v58, %v1694_v60  ;;  %v6402_v60 = vpack.c.bf16 %v1730_v59, %v1726_v54  ;;  %v1101_v58 = vld [vmem:[#allocation6 + $0x1b8] sm:$0xff]  ;;  %v1630_v54 = vld [vmem:[%s7431_s8] sm:$0xff] }
 0x3db   :  { %4861 = vmatprep.subr.bf16.mxu1 %v4860_v33  ;;  %v1069_v33 = vld [vmem:[#allocation6 + $0xb8] sm:$0xff]  ;;  %v1634_v59 = vld [vmem:[%s7431_s8 + $0x20] sm:$0xff] }
 0x3dc   :  { %v4696_v21 = vpack.c.bf16 %v1069_v33, %v1065_v10  ;;  %v1096_v10 = vld [vmem:[#allocation6 + $0x190] sm:$0xff] }
 0x3dd   :  { %v1100_v33 = vld [vmem:[#allocation6 + $0x1b0] sm:$0xff] }
 0x3de   :  { %4863 = vmatpush1.bf16.msra.mxu1 %v4862_v0  ;;  %v1715_v0 = vld [vmem:[#allocation9 + $0xa8] sm:$0xff] }
 0x3df   :  { %4865 = vmatprep.subr.bf16.mxu1 %v4864_v41  ;;  %v4694_v41 = vpack.c.bf16 %v1060_v11, %v1056_v42  ;;  %v6386_v28 = vpack.c.bf16 %v1715_v0, %v1711_v22  ;;  %v4712_v11 = vpack.c.bf16 %v1101_v58, %v1097_v47  ;;  %v1109_v22 = vld [vmem:[#allocation6 + $0x1f8] sm:$0xff]  ;;  %v6445_v47 = vpack.c.bf16 %v1634_v59, %v1630_v54 }
 0x3e0   :  { %v1153_v54 = vld [vmem:[#allocation6 + $0x358] sm:$0xff] }
 0x3e1   :  { %7575 = vst [vmem:[#allocation20_spill] sm:$0xff] %v6445_v47  ;;  %v1157_v59 = vld [vmem:[#allocation6 + $0x378] sm:$0xff] }
 0x3e2   :  { %4867 = vmatpush1.bf16.msra.mxu1 %v4866_v52  ;;  %v6383_v52 = vpack.c.bf16 %v1706_v12, %v1702_v45  ;;  %v1105_v45 = vld [vmem:[#allocation6 + $0x1d8] sm:$0xff]  ;;  %v6408_v12 = vpack.c.bf16 %v1738_v26, %v1734_v43  ;;  %v1128_v43 = vld [vmem:[#allocation6 + $0x290] sm:$0xff] }
 0x3e3   :  { %4869 = vmatprep.subr.bf16.mxu1 %v4868_v63  ;;  %v1077_v63 = vld [vmem:[#allocation6 + $0xf8] sm:$0xff] }
 0x3e4   :  { %v4700_v23 = vpack.c.bf16 %v1077_v63, %v1073_v51  ;;  %v4714_v51 = vpack.c.bf16 %v1100_v33, %v1096_v10  ;;  %v4716_v63 = vpack.c.bf16 %v1109_v22, %v1105_v45  ;;  %v1647_v10 = vld [vmem:[%s7431_s8 + $0x88] sm:$0xff]  ;;  %v1137_v45 = vld [vmem:[#allocation6 + $0x2d8] sm:$0xff] }
 0x3e5   :  { %v1651_v33 = vld [vmem:[%s7431_s8 + $0xa8] sm:$0xff]  ;;  %v1141_v22 = vld [vmem:[#allocation6 + $0x2f8] sm:$0xff] }
 0x3e6   :  { %4871 = vmatpush1.bf16.msra.mxu1 %v4870_v32  ;;  %v1723_v32 = vld [vmem:[#allocation9 + $0xe8] sm:$0xff]  ;;  %v4732_v29 = vpack.c.bf16 %v1141_v22, %v1137_v45  ;;  %v1160_v45 = vld [vmem:[#allocation6 + $0x390] sm:$0xff] }
 0x3e7   :  { %4873 = vmatprep.subr.bf16.mxu1 %v4872_v40  ;;  %v4698_v40 = vpack.c.bf16 %v1068_v27, %v1064_v31  ;;  %v6393_v34 = vpack.c.bf16 %v1723_v32, %v1719_v14  ;;  %v1751_v31 = vld [vmem:[#allocation9 + $0x1c8] sm:$0xff]  ;;  %v1113_v14 = vld [vmem:[#allocation6 + $0x218] sm:$0xff] }
 0x3e8   :  { %v1755_v27 = vld [vmem:[#allocation9 + $0x1e8] sm:$0xff] }
 0x3ea   :  { %4875 = vmatpush1.bf16.msra.mxu1 %v4874_v46  ;;  %v1076_v46 = vld [vmem:[#allocation6 + $0xf0] sm:$0xff] }
 0x3eb   :  { %4877 = vmatprep.subr.bf16.mxu1 %v4876_v35  ;;  %v4702_v44 = vpack.c.bf16 %v1076_v46, %v1072_v57  ;;  %v1080_v35 = vld [vmem:[#allocation6 + $0x110] sm:$0xff]  ;;  %v1750_v57 = vld [vmem:[#allocation9 + $0x1c0] sm:$0xff] }
 0x3ec   :  { %v1754_v46 = vld [vmem:[#allocation9 + $0x1e0] sm:$0xff] }
 0x3ed   :  { %v6420_v49 = vpack.c.bf16 %v1754_v46, %v1750_v57  ;;  %v1145_v57 = vld [vmem:[#allocation6 + $0x318] sm:$0xff] }
 0x3ee   :  { %4879 = vmatpush1.bf16.msra.mxu1 %v4878_v55  ;;  %v1084_v55 = vld [vmem:[#allocation6 + $0x130] sm:$0xff]  ;;  %v1149_v46 = vld [vmem:[#allocation6 + $0x338] sm:$0xff] }
 0x3ef   :  { %4945 = vmatprep.subr.bf16.mxu1 %v6361_v62  ;;  %v4706_v8 = vpack.c.bf16 %v1084_v55, %v1080_v35  ;;  %v1125_v35 = vld [vmem:[#allocation6 + $0x278] sm:$0xff]  ;;  %v4722_v55 = vpack.c.bf16 %v1116_v7, %v1112_v50 }
 0x484   :  { %v1041_v18 = vpop.f32.mrb[2].mxu1 }
 0x485   :  { %v1043_v4 = vpop.f32.mrb[3].mxu1  ;;  %v6371_v15 = vadd.f32 %v1041_v18, %v826_v24  ;;  %v1739_v24 = vld [vmem:[#allocation9 + $0x168] sm:$0xff]  ;;  %v1092_v18 = vld [vmem:[#allocation6 + $0x170] sm:$0xff] }
 0x486   :  { %v6369_v37 = vadd.f32 %v1043_v4, %v830_v2  ;;  %v1735_v2 = vld [vmem:[#allocation9 + $0x148] sm:$0xff]  ;;  %v4710_v42 = vpack.c.bf16 %v1092_v18, %v1088_v16  ;;  %v1129_v16 = vld [vmem:[#allocation6 + $0x298] sm:$0xff] }
 0x487   :  { %v6405_v4 = vpack.c.bf16 %v1739_v24, %v1735_v2  ;;  %v1124_v24 = vld [vmem:[#allocation6 + $0x270] sm:$0xff]  ;;  %v1133_v18 = vld [vmem:[#allocation6 + $0x2b8] sm:$0xff] }
 0x488   :  { %1260 = vmatprep.mubr.f32.mxu0 %v6369_v37  ;;  %1623 = vmatprep.mubr.f32.mxu1 %v6369_v37  ;;  %v4726_v58 = vpack.c.bf16 %v1124_v24, %v1120_v3  ;;  %v1667_v3 = vld [vmem:[%s7431_s8 + $0x128] sm:$0xff] }
 0x489   :  { %1261 = vmatmul.mubr.f32.vlgmr.msra.gmra.mrb[4].mxu0 %v6371_v15  ;;  %1624 = vmatmul.mubr.f32.vlgmr.msra.gmra.mrb[4].mxu1 %v6371_v15 }
 0x48a   :  { %4691 = vmatpush1.bf16.msra.mxu0 %v4690_v36  ;;  %1331 = vmatprep.mubr.f32.mxu0 %v6369_v37  ;;  %v1743_v36 = vld [vmem:[#allocation9 + $0x188] sm:$0xff] }
 0x48b   :  { %4693 = vmatprep.subr.bf16.mxu0 %v4692_v19  ;;  %4947 = vmatpush1.bf16.msra.mxu1 %v6373_v13  ;;  %v1747_v19 = vld [vmem:[#allocation9 + $0x1a8] sm:$0xff] }
 0x48c   :  { %4949 = vmatprep.subr.bf16.mxu1 %v6377_v38  ;;  %1992 = vmatprep.mubr.f32.mxu1 %v7471_v39  ;;  %v6411_v0 = vpack.c.bf16 %v1747_v19, %v1743_v36  ;;  %v1638_v36 = vld [vmem:[%s7431_s8 + $0x40] sm:$0xff] }
 0x48d   :  { %v1642_v19 = vld [vmem:[%s7431_s8 + $0x60] sm:$0xff] }
 0x48e   :  { %4695 = vmatpush1.bf16.msra.mxu0 %v4694_v41  ;;  %v1742_v41 = vld [vmem:[#allocation9 + $0x180] sm:$0xff] }
 0x48f   :  { %4697 = vmatprep.subr.bf16.mxu0 %v4696_v21  ;;  %4951 = vmatpush1.bf16.msra.mxu1 %v6383_v52  ;;  %v1746_v21 = vld [vmem:[#allocation9 + $0x1a0] sm:$0xff] }
 0x490   :  { %4953 = vmatprep.subr.bf16.mxu1 %v6386_v28  ;;  %v6414_v32 = vpack.c.bf16 %v1746_v21, %v1742_v41  ;;  %v6465_v41 = vpack.c.bf16 %v1642_v19, %v1638_v36  ;;  %v1671_v36 = vld [vmem:[%s7431_s8 + $0x148] sm:$0xff] }
 0x491   :  { %v1675_v19 = vld [vmem:[%s7431_s8 + $0x168] sm:$0xff] }
 0x492   :  { %4699 = vmatpush1.bf16.msra.mxu0 %v4698_v40  ;;  %v1117_v40 = vld [vmem:[#allocation6 + $0x238] sm:$0xff]  ;;  %7577 = vst [vmem:[#allocation18_spill] sm:$0xff] %v6465_v41  ;;  %v6521_v22 = vpack.c.bf16 %v1675_v19, %v1671_v36  ;;  %v1338_v36 = vld [vmem:[#allocation7] sm:$0xff] }
 0x493   :  { %4701 = vmatprep.subr.bf16.mxu0 %v4700_v23  ;;  %4955 = vmatpush1.bf16.msra.mxu1 %v6390_v48  ;;  %v6417_v23 = vpack.c.bf16 %v1755_v27, %v1751_v31  ;;  %v4720_v9 = vpack.c.bf16 %v1117_v40, %v1113_v14  ;;  %v1136_v31 = vld [vmem:[#allocation6 + $0x2d0] sm:$0xff]  ;;  %v6467_v27 = vpack.c.bf16 %v1651_v33, %v1647_v10  ;;  %v1655_v14 = vld [vmem:[%s7431_s8 + $0xc8] sm:$0xff]  ;;  %v1342_v19 = vld [vmem:[#allocation7 + $0x20] sm:$0xff] }
 0x494   :  { %4957 = vmatprep.subr.bf16.mxu1 %v6393_v34  ;;  %v1659_v40 = vld [vmem:[%s7431_s8 + $0xe8] sm:$0xff]  ;;  %v4734_v50 = vpack.c.bf16 %v1140_v53, %v1136_v31  ;;  %7584 = vst [vmem:[#allocation26_spill] sm:$0xff] %v6521_v22  ;;  %v1674_v31 = vld [vmem:[%s7431_s8 + $0x160] sm:$0xff] }
 0x495   :  { %7578 = vst [vmem:[#allocation17_spill] sm:$0xff] %v6467_v27  ;;  %v6485_v7 = vpack.c.bf16 %v1659_v40, %v1655_v14  ;;  %v1683_v53 = vld [vmem:[%s7431_s8 + $0x1a8] sm:$0xff]  ;;  %v1169_v14 = vld [vmem:[#allocation6 + $0x3d8] sm:$0xff] }
 0x496   :  { %4703 = vmatpush1.bf16.msra.mxu0 %v4702_v44  ;;  %v1635_v44 = vld [vmem:[%s7431_s8 + $0x28] sm:$0xff]  ;;  %v1173_v40 = vld [vmem:[#allocation6 + $0x3f8] sm:$0xff] }
 0x497   :  { %4705 = vmatprep.subr.bf16.mxu0 %v4704_v20  ;;  %4959 = vmatpush1.bf16.msra.mxu1 %v6396_v5  ;;  %v1121_v20 = vld [vmem:[#allocation6 + $0x258] sm:$0xff]  ;;  %v6429_v6 = vpack.c.bf16 %v1635_v44, %v1631_v56  ;;  %7580 = vst [vmem:[#allocation27_spill] sm:$0xff] %v6485_v7  ;;  %v1654_v56 = vld [vmem:[%s7431_s8 + $0xc0] sm:$0xff] }
 0x498   :  { %4961 = vmatprep.subr.bf16.mxu1 %v6399_v25  ;;  %v4724_v2 = vpack.c.bf16 %v1125_v35, %v1121_v20  ;;  %v1658_v44 = vld [vmem:[%s7431_s8 + $0xe0] sm:$0xff]  ;;  %v4736_v20 = vpack.c.bf16 %v1149_v46, %v1145_v57  ;;  %v1148_v35 = vld [vmem:[#allocation6 + $0x330] sm:$0xff] }
 0x49a   :  { %4707 = vmatpush1.bf16.msra.mxu0 %v4706_v8  ;;  %v1639_v8 = vld [vmem:[%s7431_s8 + $0x48] sm:$0xff] }
 0x49b   :  { %4709 = vmatprep.subr.bf16.mxu0 %v4708_v17  ;;  %4963 = vmatpush1.bf16.msra.mxu1 %v6402_v60  ;;  %v1643_v17 = vld [vmem:[%s7431_s8 + $0x68] sm:$0xff] }
 0x49c   :  { %4965 = vmatprep.subr.bf16.mxu1 %v6405_v4  ;;  %v6448_v26 = vpack.c.bf16 %v1643_v17, %v1639_v8  ;;  %v1152_v8 = vld [vmem:[#allocation6 + $0x350] sm:$0xff] }
 0x49e   :  { %4711 = vmatpush1.bf16.msra.mxu0 %v4710_v42  ;;  %7576 = vst [vmem:[#allocation23_spill] sm:$0xff] %v6448_v26  ;;  %v4728_v42 = vpack.c.bf16 %v1133_v18, %v1129_v16  ;;  %v1662_v16 = vld [vmem:[%s7431_s8 + $0x100] sm:$0xff] }
 0x49f   :  { %4713 = vmatprep.subr.bf16.mxu0 %v4712_v11  ;;  %4967 = vmatpush1.bf16.msra.mxu1 %v6408_v12  ;;  %v1132_v11 = vld [vmem:[#allocation6 + $0x2b0] sm:$0xff]  ;;  %v1666_v18 = vld [vmem:[%s7431_s8 + $0x120] sm:$0xff] }
 0x4a0   :  { %4969 = vmatprep.subr.bf16.mxu1 %v6411_v0  ;;  %v4730_v21 = vpack.c.bf16 %v1132_v11, %v1128_v43  ;;  %v1156_v43 = vld [vmem:[#allocation6 + $0x370] sm:$0xff]  ;;  %v1165_v11 = vld [vmem:[#allocation6 + $0x3b8] sm:$0xff]  ;;  %v6519_v10 = vpack.c.bf16 %v1666_v18, %v1662_v16  ;;  %v1686_v18 = vld [vmem:[%s7431_s8 + $0x1c0] sm:$0xff] }
 0x4a1   :  { %v4742_v33 = vpack.c.bf16 %v1156_v43, %v1152_v8 }
 0x4a2   :  { %4715 = vmatpush1.bf16.msra.mxu0 %v4714_v51  ;;  %v1646_v51 = vld [vmem:[%s7431_s8 + $0x80] sm:$0xff]  ;;  %7583 = vst [vmem:[#allocation24_spill] sm:$0xff] %v6519_v10 }
 0x4a3   :  { %4717 = vmatprep.subr.bf16.mxu0 %v4716_v63  ;;  %4971 = vmatpush1.bf16.msra.mxu1 %v6414_v32  ;;  %v1650_v63 = vld [vmem:[%s7431_s8 + $0xa0] sm:$0xff] }
 0x4a4   :  { %4973 = vmatprep.subr.bf16.mxu1 %v6417_v23 }
 0x4a6   :  { %4719 = vmatpush1.bf16.msra.mxu0 %v4718_v30  ;;  %v6483_v30 = vpack.c.bf16 %v1650_v63, %v1646_v51  ;;  %v1164_v63 = vld [vmem:[#allocation6 + $0x3b0] sm:$0xff] }
 0x4a7   :  { %4721 = vmatprep.subr.bf16.mxu0 %v4720_v9  ;;  %4975 = vmatpush1.bf16.msra.mxu1 %v6420_v49  ;;  %v1144_v9 = vld [vmem:[#allocation6 + $0x310] sm:$0xff]  ;;  %v4746_v46 = vpack.c.bf16 %v1164_v63, %v1160_v45  ;;  %v4754_v45 = vpack.c.bf16 %v1342_v19, %v1338_v36  ;;  %v1355_v63 = vld [vmem:[#allocation7 + $0x88] sm:$0xff] }
 0x4a8   :  { %5009 = vmatprep.subr.bf16.mxu1 %v6429_v6  ;;  %7579 = vst [vmem:[#allocation25_spill] sm:$0xff] %v6483_v30  ;;  %v4738_v24 = vpack.c.bf16 %v1148_v35, %v1144_v9  ;;  %v1172_v35 = vld [vmem:[#allocation6 + $0x3f0] sm:$0xff] }
 0x4aa   :  { %4723 = vmatpush1.bf16.msra.mxu0 %v4722_v55  ;;  %1993 = vmatmul.mubr.f32.vlgmr.msra.gmra.mrb[6].mxu1 %v7471_v39  ;;  %v1663_v55 = vld [vmem:[%s7431_s8 + $0x108] sm:$0xff] }
 0x4ab   :  { %4725 = vmatprep.subr.bf16.mxu0 %v4724_v2  ;;  %5011 = vmatpush1.bf16.msra.mxu1 %v6445_v47  ;;  %v6501_v2 = vpack.c.bf16 %v1658_v44, %v1654_v56  ;;  %v6503_v17 = vpack.c.bf16 %v1667_v3, %v1663_v55  ;;  %v1678_v56 = vld [vmem:[%s7431_s8 + $0x180] sm:$0xff]  ;;  %v1687_v55 = vld [vmem:[%s7431_s8 + $0x1c8] sm:$0xff] }
 0x4ac   :  { %5013 = vmatprep.subr.bf16.mxu1 %v6448_v26  ;;  %2174 = vmatprep.mubr.f32.mxu1 %v7471_v39  ;;  %v1682_v44 = vld [vmem:[%s7431_s8 + $0x1a0] sm:$0xff]  ;;  %v1691_v3 = vld [vmem:[%s7431_s8 + $0x1e8] sm:$0xff] }
 0x4ad   :  { %7581 = vst [vmem:[#allocation21_spill] sm:$0xff] %v6501_v2  ;;  %7582 = vst [vmem:[#allocation19_spill] sm:$0xff] %v6503_v17  ;;  %v6557_v16 = vpack.c.bf16 %v1691_v3, %v1687_v55  ;;  %v1366_v55 = vld [vmem:[#allocation7 + $0xe0] sm:$0xff]  ;;  %v1371_v3 = vld [vmem:[#allocation7 + $0x108] sm:$0xff] }
 0x4ae   :  { %4727 = vmatpush1.bf16.msra.mxu0 %v4726_v58  ;;  %v4740_v58 = vpack.c.bf16 %v1157_v59, %v1153_v54  ;;  %v1339_v54 = vld [vmem:[#allocation7 + $0x8] sm:$0xff] }
 0x4af   :  { %4729 = vmatprep.subr.bf16.mxu0 %v4728_v42  ;;  %5015 = vmatpush1.bf16.msra.mxu1 %v6465_v41  ;;  %v1161_v42 = vld [vmem:[#allocation6 + $0x398] sm:$0xff]  ;;  %v1343_v59 = vld [vmem:[#allocation7 + $0x28] sm:$0xff]  ;;  %7588 = vst [vmem:[#allocation29_spill] sm:$0xff] %v6557_v16 }
 0x4b0   :  { %5017 = vmatprep.subr.bf16.mxu1 %v6467_v27  ;;  %v4744_v51 = vpack.c.bf16 %v1165_v11, %v1161_v42  ;;  %v4752_v43 = vpack.c.bf16 %v1343_v59, %v1339_v54  ;;  %v1347_v42 = vld [vmem:[#allocation7 + $0x48] sm:$0xff] }
 0x4b1   :  { %v1351_v11 = vld [vmem:[#allocation7 + $0x68] sm:$0xff] }
 0x4b2   :  { %4731 = vmatpush1.bf16.msra.mxu0 %v4730_v21  ;;  %v1670_v21 = vld [vmem:[%s7431_s8 + $0x140] sm:$0xff]  ;;  %v1375_v54 = vld [vmem:[#allocation7 + $0x128] sm:$0xff] }
 0x4b3   :  { %4733 = vmatprep.subr.bf16.mxu0 %v4732_v29  ;;  %5019 = vmatpush1.bf16.msra.mxu1 %v6483_v30  ;;  %v1679_v29 = vld [vmem:[%s7431_s8 + $0x188] sm:$0xff]  ;;  %v6537_v57 = vpack.c.bf16 %v1674_v31, %v1670_v21  ;;  %v4756_v21 = vpack.c.bf16 %v1351_v11, %v1347_v42  ;;  %v1346_v31 = vld [vmem:[#allocation7 + $0x40] sm:$0xff] }
 0x4b4   :  { %5021 = vmatprep.subr.bf16.mxu1 %v6485_v7  ;;  %v6539_v9 = vpack.c.bf16 %v1683_v53, %v1679_v29  ;;  %v1359_v29 = vld [vmem:[#allocation7 + $0xa8] sm:$0xff]  ;;  %v1378_v42 = vld [vmem:[#allocation7 + $0x140] sm:$0xff] }
 0x4b5   :  { %7585 = vst [vmem:[#allocation28_spill] sm:$0xff] %v6537_v57  ;;  %v1382_v11 = vld [vmem:[#allocation7 + $0x160] sm:$0xff] }
 0x4b6   :  { %4735 = vmatpush1.bf16.msra.mxu0 %v4734_v50  ;;  %v1168_v50 = vld [vmem:[#allocation6 + $0x3d0] sm:$0xff]  ;;  %7586 = vst [vmem:[#allocation14_spill] sm:$0xff] %v6539_v9 }
 0x4b7   :  { %4737 = vmatprep.subr.bf16.mxu0 %v4736_v20  ;;  %5023 = vmatpush1.bf16.msra.mxu1 %v6501_v2  ;;  %v4748_v20 = vpack.c.bf16 %v1173_v40, %v1169_v14  ;;  %v4750_v8 = vpack.c.bf16 %v1172_v35, %v1168_v50  ;;  %v4760_v14 = vpack.c.bf16 %v1359_v29, %v1355_v63  ;;  %v1354_v40 = vld [vmem:[#allocation7 + $0x80] sm:$0xff]  ;;  %v1363_v50 = vld [vmem:[#allocation7 + $0xc8] sm:$0xff] }
 0x4b8   :  { %5025 = vmatprep.subr.bf16.mxu1 %v6503_v17  ;;  %v1362_v35 = vld [vmem:[#allocation7 + $0xc0] sm:$0xff] }
 0x4b9   :  { %v4766_v59 = vpack.c.bf16 %v1366_v55, %v1362_v35  ;;  %v1386_v63 = vld [vmem:[#allocation7 + $0x180] sm:$0xff] }
 0x4ba   :  { %4739 = vmatpush1.bf16.msra.mxu0 %v4738_v24  ;;  %v6555_v24 = vpack.c.bf16 %v1682_v44, %v1678_v56  ;;  %v1367_v56 = vld [vmem:[#allocation7 + $0xe8] sm:$0xff]  ;;  %v1390_v29 = vld [vmem:[#allocation7 + $0x1a0] sm:$0xff] }
 0x4bb   :  { %4741 = vmatprep.subr.bf16.mxu0 %v4740_v58  ;;  %5027 = vmatpush1.bf16.msra.mxu1 %v6519_v10  ;;  %v1690_v58 = vld [vmem:[%s7431_s8 + $0x1e0] sm:$0xff] }
 0x4bc   :  { %5029 = vmatprep.subr.bf16.mxu1 %v6521_v22  ;;  %7587 = vst [vmem:[#allocation13_spill] sm:$0xff] %v6555_v24 }
 0x4be   :  { %4743 = vmatpush1.bf16.msra.mxu0 %v4742_v33  ;;  %v6567_v33 = vpack.c.bf16 %v1690_v58, %v1686_v18  ;;  %v1374_v18 = vld [vmem:[#allocation7 + $0x120] sm:$0xff]  ;;  %v1379_v58 = vld [vmem:[#allocation7 + $0x148] sm:$0xff] }
 0x4bf   :  { %4745 = vmatprep.subr.bf16.mxu0 %v4744_v51  ;;  %5031 = vmatpush1.bf16.msra.mxu1 %v6537_v57  ;;  %v1350_v51 = vld [vmem:[#allocation7 + $0x60] sm:$0xff] }
 0x4c0   :  { %5033 = vmatprep.subr.bf16.mxu1 %v6539_v9  ;;  %7589 = vst [vmem:[#allocation30_spill] sm:$0xff] %v6567_v33  ;;  %v4758_v53 = vpack.c.bf16 %v1350_v51, %v1346_v31  ;;  %v4774_v31 = vpack.c.bf16 %v1382_v11, %v1378_v42 }
 0x4c2   :  { %4747 = vmatpush1.bf16.msra.mxu0 %v4746_v46  ;;  %v1358_v46 = vld [vmem:[#allocation7 + $0xa0] sm:$0xff] }
 0x4c3   :  { %4749 = vmatprep.subr.bf16.mxu0 %v4748_v20  ;;  %5035 = vmatpush1.bf16.msra.mxu1 %v6555_v24  ;;  %v4762_v44 = vpack.c.bf16 %v1358_v46, %v1354_v40  ;;  %v4764_v20 = vpack.c.bf16 %v1367_v56, %v1363_v50  ;;  %v4778_v40 = vpack.c.bf16 %v1390_v29, %v1386_v63  ;;  %v1394_v50 = vld [vmem:[#allocation7 + $0x1c0] sm:$0xff] }
 0x4c4   :  { %5037 = vmatprep.subr.bf16.mxu1 %v6557_v16  ;;  %v1398_v56 = vld [vmem:[#allocation7 + $0x1e0] sm:$0xff] }
 0x4c5   :  { %v4782_v35 = vpack.c.bf16 %v1398_v56, %v1394_v50 }
 0x4c6   :  { %4751 = vmatpush1.bf16.msra.mxu0 %v4750_v8  ;;  %v4768_v8 = vpack.c.bf16 %v1375_v54, %v1371_v3  ;;  %v1402_v3 = vld [vmem:[#allocation7 + $0x200] sm:$0xff] }
 0x4c7   :  { %4753 = vmatprep.subr.bf16.mxu0 %v4752_v43  ;;  %5039 = vmatpush1.bf16.msra.mxu1 %v6567_v33  ;;  %v1383_v43 = vld [vmem:[#allocation7 + $0x168] sm:$0xff]  ;;  %v1406_v54 = vld [vmem:[#allocation7 + $0x220] sm:$0xff] }
 0x4c8   :  { %5073 = vmatprep.subr.bf16.mxu1 %v6361_v62  ;;  %v4772_v19 = vpack.c.bf16 %v1383_v43, %v1379_v58  ;;  %v1410_v58 = vld [vmem:[#allocation7 + $0x240] sm:$0xff] }
 0x4c9   :  { %1332 = vmatmul.mubr.f32.vlgmr.msra.gmra.mrb[6].mxu0 %v6371_v15  ;;  %v1414_v43 = vld [vmem:[#allocation7 + $0x260] sm:$0xff] }
 0x4ca   :  { %4755 = vmatpush1.bf16.msra.mxu0 %v4754_v45  ;;  %1552 = vmatprep.mubr.f32.mxu0 %v6369_v37  ;;  %v1370_v37 = vld [vmem:[#allocation7 + $0x100] sm:$0xff]  ;;  %v1387_v45 = vld [vmem:[#allocation7 + $0x188] sm:$0xff]  ;;  %v4790_v42 = vpack.c.bf16 %v1414_v43, %v1410_v58 }
 0x4cb   :  { %4757 = vmatprep.subr.bf16.mxu0 %v4756_v21  ;;  %v4770_v36 = vpack.c.bf16 %v1374_v18, %v1370_v37  ;;  %v1391_v21 = vld [vmem:[#allocation7 + $0x1a8] sm:$0xff]  ;;  %v4786_v37 = vpack.c.bf16 %v1406_v54, %v1402_v3 }
 0x4cc   :  { %v4776_v51 = vpack.c.bf16 %v1391_v21, %v1387_v45  ;;  %v1418_v45 = vld [vmem:[#allocation7 + $0x280] sm:$0xff] }
 0x4cd   :  { %v1422_v21 = vld [vmem:[#allocation7 + $0x2a0] sm:$0xff] }
 0x4ce   :  { %4759 = vmatpush1.bf16.msra.mxu0 %v4758_v53  ;;  %v1395_v53 = vld [vmem:[#allocation7 + $0x1c8] sm:$0xff]  ;;  %v4794_v63 = vpack.c.bf16 %v1422_v21, %v1418_v45 }
 0x4cf   :  { %4761 = vmatprep.subr.bf16.mxu0 %v4760_v14  ;;  %v1399_v14 = vld [vmem:[#allocation7 + $0x1e8] sm:$0xff] }
 0x4d0   :  { %v4780_v46 = vpack.c.bf16 %v1399_v14, %v1395_v53  ;;  %v1426_v53 = vld [vmem:[#allocation7 + $0x2c0] sm:$0xff] }
 0x4d1   :  { %v1430_v14 = vld [vmem:[#allocation7 + $0x2e0] sm:$0xff] }
 0x4d2   :  { %4763 = vmatpush1.bf16.msra.mxu0 %v4762_v44  ;;  %v1403_v44 = vld [vmem:[#allocation7 + $0x208] sm:$0xff]  ;;  %v4798_v50 = vpack.c.bf16 %v1430_v14, %v1426_v53  ;;  %v1632_v14 = vld [vmem:[%s7431_s8 + $0x10] sm:$0xff] }
 0x4d3   :  { %4765 = vmatprep.subr.bf16.mxu0 %v4764_v20  ;;  %v1407_v20 = vld [vmem:[#allocation7 + $0x228] sm:$0xff] }
 0x4d4   :  { %v4784_v55 = vpack.c.bf16 %v1407_v20, %v1403_v44  ;;  %v1434_v44 = vld [vmem:[#allocation7 + $0x300] sm:$0xff] }
 0x4d5   :  { %v1438_v20 = vld [vmem:[#allocation7 + $0x320] sm:$0xff] }
 0x4d6   :  { %4767 = vmatpush1.bf16.msra.mxu0 %v4766_v59  ;;  %v1411_v59 = vld [vmem:[#allocation7 + $0x248] sm:$0xff]  ;;  %v4802_v3 = vpack.c.bf16 %v1438_v20, %v1434_v44  ;;  %v1640_v20 = vld [vmem:[%s7431_s8 + $0x50] sm:$0xff] }
 0x4d7   :  { %4769 = vmatprep.subr.bf16.mxu0 %v4768_v8  ;;  %v1415_v8 = vld [vmem:[#allocation7 + $0x268] sm:$0xff] }
 0x4d8   :  { %v4788_v18 = vpack.c.bf16 %v1415_v8, %v1411_v59  ;;  %v1442_v59 = vld [vmem:[#allocation7 + $0x340] sm:$0xff] }
 0x4d9   :  { %v1446_v8 = vld [vmem:[#allocation7 + $0x360] sm:$0xff] }
 0x4da   :  { %4771 = vmatpush1.bf16.msra.mxu0 %v4770_v36  ;;  %v1419_v36 = vld [vmem:[#allocation7 + $0x288] sm:$0xff]  ;;  %v4806_v58 = vpack.c.bf16 %v1446_v8, %v1442_v59  ;;  %v1648_v8 = vld [vmem:[%s7431_s8 + $0x90] sm:$0xff] }
 0x4db   :  { %4773 = vmatprep.subr.bf16.mxu0 %v4772_v19  ;;  %v1423_v19 = vld [vmem:[#allocation7 + $0x2a8] sm:$0xff] }
 0x4dc   :  { %v4792_v11 = vpack.c.bf16 %v1423_v19, %v1419_v36  ;;  %v1450_v36 = vld [vmem:[#allocation7 + $0x380] sm:$0xff] }
 0x4dd   :  { %v1454_v19 = vld [vmem:[#allocation7 + $0x3a0] sm:$0xff] }
 0x4de   :  { %4775 = vmatpush1.bf16.msra.mxu0 %v4774_v31  ;;  %v1427_v31 = vld [vmem:[#allocation7 + $0x2c8] sm:$0xff]  ;;  %v4810_v45 = vpack.c.bf16 %v1454_v19, %v1450_v36  ;;  %v1656_v19 = vld [vmem:[%s7431_s8 + $0xd0] sm:$0xff] }
 0x4df   :  { %4777 = vmatprep.subr.bf16.mxu0 %v4776_v51  ;;  %v1431_v51 = vld [vmem:[#allocation7 + $0x2e8] sm:$0xff] }
 0x4e0   :  { %v4796_v29 = vpack.c.bf16 %v1431_v51, %v1427_v31  ;;  %v1458_v31 = vld [vmem:[#allocation7 + $0x3c0] sm:$0xff] }
 0x4e1   :  { %v1462_v51 = vld [vmem:[#allocation7 + $0x3e0] sm:$0xff] }
 0x4e2   :  { %4779 = vmatpush1.bf16.msra.mxu0 %v4778_v40  ;;  %v1435_v40 = vld [vmem:[#allocation7 + $0x308] sm:$0xff] }
 0x4e3   :  { %4781 = vmatprep.subr.bf16.mxu0 %v4780_v46  ;;  %v1439_v46 = vld [vmem:[#allocation7 + $0x328] sm:$0xff] }
 0x4e4   :  { %v4800_v56 = vpack.c.bf16 %v1439_v46, %v1435_v40  ;;  %v1636_v40 = vld [vmem:[%s7431_s8 + $0x30] sm:$0xff]  ;;  %v1641_v46 = vld [vmem:[%s7431_s8 + $0x58] sm:$0xff] }
 0x4e6   :  { %4783 = vmatpush1.bf16.msra.mxu0 %v4782_v35  ;;  %v1443_v35 = vld [vmem:[#allocation7 + $0x348] sm:$0xff] }
 0x4e7   :  { %4785 = vmatprep.subr.bf16.mxu0 %v4784_v55  ;;  %v1447_v55 = vld [vmem:[#allocation7 + $0x368] sm:$0xff] }
 0x4e8   :  { %v4804_v54 = vpack.c.bf16 %v1447_v55, %v1443_v35  ;;  %v1644_v35 = vld [vmem:[%s7431_s8 + $0x70] sm:$0xff]  ;;  %v1649_v55 = vld [vmem:[%s7431_s8 + $0x98] sm:$0xff] }
 0x4ea   :  { %4787 = vmatpush1.bf16.msra.mxu0 %v4786_v37  ;;  %v1451_v37 = vld [vmem:[#allocation7 + $0x388] sm:$0xff] }
 0x4eb   :  { %4789 = vmatprep.subr.bf16.mxu0 %v4788_v18  ;;  %v1455_v18 = vld [vmem:[#allocation7 + $0x3a8] sm:$0xff] }
 0x4ec   :  { %v4808_v43 = vpack.c.bf16 %v1455_v18, %v1451_v37  ;;  %v1652_v37 = vld [vmem:[%s7431_s8 + $0xb0] sm:$0xff]  ;;  %v1657_v18 = vld [vmem:[%s7431_s8 + $0xd8] sm:$0xff] }
 0x4ee   :  { %4791 = vmatpush1.bf16.msra.mxu0 %v4790_v42  ;;  %v1459_v42 = vld [vmem:[#allocation7 + $0x3c8] sm:$0xff] }
 0x4ef   :  { %4793 = vmatprep.subr.bf16.mxu0 %v4792_v11  ;;  %v1463_v11 = vld [vmem:[#allocation7 + $0x3e8] sm:$0xff] }
 0x4f0   :  { %v4812_v21 = vpack.c.bf16 %v1463_v11, %v1459_v42  ;;  %v1660_v42 = vld [vmem:[%s7431_s8 + $0xf0] sm:$0xff]  ;;  %v1665_v11 = vld [vmem:[%s7431_s8 + $0x118] sm:$0xff] }
 0x4f2   :  { %4795 = vmatpush1.bf16.msra.mxu0 %v4794_v63  ;;  %v4814_v63 = vpack.c.bf16 %v1462_v51, %v1458_v31  ;;  %v1664_v51 = vld [vmem:[%s7431_s8 + $0x110] sm:$0xff] }
 0x4f3   :  { %4797 = vmatprep.subr.bf16.mxu0 %v4796_v29  ;;  %v1637_v29 = vld [vmem:[%s7431_s8 + $0x38] sm:$0xff] }
 0x4f6   :  { %4799 = vmatpush1.bf16.msra.mxu0 %v4798_v50  ;;  %v1645_v50 = vld [vmem:[%s7431_s8 + $0x78] sm:$0xff] }
 0x4f7   :  { %4801 = vmatprep.subr.bf16.mxu0 %v4800_v56  ;;  %v6611_v56 = vpack.c.bf16 %v1636_v40, %v1632_v14  ;;  %v6614_v44 = vpack.c.bf16 %v1645_v50, %v1641_v46  ;;  %v1672_v46 = vld [vmem:[%s7431_s8 + $0x150] sm:$0xff] }
 0x4f8   :  { %v1676_v50 = vld [vmem:[%s7431_s8 + $0x170] sm:$0xff] }
 0x4f9   :  { %7590 = vst [vmem:[#allocation31_spill] sm:$0xff] %v6611_v56  ;;  %7591 = vst [vmem:[#allocation32_spill] sm:$0xff] %v6614_v44 }
 0x4fa   :  { %4803 = vmatpush1.bf16.msra.mxu0 %v4802_v3  ;;  %v1653_v3 = vld [vmem:[%s7431_s8 + $0xb8] sm:$0xff] }
 0x4fb   :  { %4805 = vmatprep.subr.bf16.mxu0 %v4804_v54  ;;  %v6630_v54 = vpack.c.bf16 %v1644_v35, %v1640_v20  ;;  %v6634_v59 = vpack.c.bf16 %v1653_v3, %v1649_v55  ;;  %v1681_v20 = vld [vmem:[%s7431_s8 + $0x198] sm:$0xff]  ;;  %v6703_v55 = vpack.c.bf16 %v1676_v50, %v1672_v46  ;;  %v1696_v46 = vld [vmem:[#allocation9 + $0x10] sm:$0xff] }
 0x4fc   :  { %v1685_v35 = vld [vmem:[%s7431_s8 + $0x1b8] sm:$0xff]  ;;  %v1700_v50 = vld [vmem:[#allocation9 + $0x30] sm:$0xff] }
 0x4fd   :  { %7592 = vst [vmem:[#allocation33_spill] sm:$0xff] %v6630_v54  ;;  %7593 = vst [vmem:[#allocation34_spill] sm:$0xff] %v6634_v59  ;;  %v6706_v3 = vpack.c.bf16 %v1685_v35, %v1681_v20  ;;  %v1705_v20 = vld [vmem:[#allocation9 + $0x58] sm:$0xff] }
 0x4fe   :  { %4807 = vmatpush1.bf16.msra.mxu0 %v4806_v58  ;;  %v1661_v58 = vld [vmem:[%s7431_s8 + $0xf8] sm:$0xff]  ;;  %7600 = vst [vmem:[#allocation41_spill] sm:$0xff] %v6703_v55 }
 0x4ff   :  { %4809 = vmatprep.subr.bf16.mxu0 %v4808_v43  ;;  %v6649_v43 = vpack.c.bf16 %v1652_v37, %v1648_v8  ;;  %v6652_v36 = vpack.c.bf16 %v1661_v58, %v1657_v18  ;;  %7601 = vst [vmem:[#allocation42_spill] sm:$0xff] %v6706_v3  ;;  %v1680_v8 = vld [vmem:[%s7431_s8 + $0x190] sm:$0xff]  ;;  %v1689_v18 = vld [vmem:[%s7431_s8 + $0x1d8] sm:$0xff] }
 0x500   :  { %v1684_v37 = vld [vmem:[%s7431_s8 + $0x1b0] sm:$0xff]  ;;  %v1693_v58 = vld [vmem:[%s7431_s8 + $0x1f8] sm:$0xff] }
 0x501   :  { %7594 = vst [vmem:[#allocation35_spill] sm:$0xff] %v6649_v43  ;;  %7595 = vst [vmem:[#allocation36_spill] sm:$0xff] %v6652_v36  ;;  %v1709_v35 = vld [vmem:[#allocation9 + $0x78] sm:$0xff] }
 0x502   :  { %4811 = vmatpush1.bf16.msra.mxu0 %v4810_v45  ;;  %v1669_v45 = vld [vmem:[%s7431_s8 + $0x138] sm:$0xff] }
 0x503   :  { %4813 = vmatprep.subr.bf16.mxu0 %v4812_v21  ;;  %v6667_v21 = vpack.c.bf16 %v1660_v42, %v1656_v19  ;;  %v6670_v31 = vpack.c.bf16 %v1669_v45, %v1665_v11  ;;  %v6721_v19 = vpack.c.bf16 %v1684_v37, %v1680_v8  ;;  %v6724_v42 = vpack.c.bf16 %v1693_v58, %v1689_v18  ;;  %v1688_v11 = vld [vmem:[%s7431_s8 + $0x1d0] sm:$0xff] }
 0x504   :  { %v1692_v45 = vld [vmem:[%s7431_s8 + $0x1f0] sm:$0xff]  ;;  %v6739_v8 = vpack.c.bf16 %v1700_v50, %v1696_v46  ;;  %v6742_v37 = vpack.c.bf16 %v1709_v35, %v1705_v20  ;;  %v1721_v20 = vld [vmem:[#allocation9 + $0xd8] sm:$0xff] }
 0x505   :  { %7596 = vst [vmem:[#allocation37_spill] sm:$0xff] %v6667_v21  ;;  %7597 = vst [vmem:[#allocation38_spill] sm:$0xff] %v6670_v31  ;;  %v1704_v18 = vld [vmem:[#allocation9 + $0x50] sm:$0xff]  ;;  %v1725_v35 = vld [vmem:[#allocation9 + $0xf8] sm:$0xff] }
 0x506   :  { %4815 = vmatpush1.bf16.msra.mxu0 %v4814_v63  ;;  %v1668_v63 = vld [vmem:[%s7431_s8 + $0x130] sm:$0xff]  ;;  %7602 = vst [vmem:[#allocation43_spill] sm:$0xff] %v6721_v19  ;;  %7603 = vst [vmem:[#allocation44_spill] sm:$0xff] %v6724_v42 }
 0x507   :  { %4881 = vmatprep.subr.bf16.mxu0 %v6429_v6  ;;  %v6685_v14 = vpack.c.bf16 %v1668_v63, %v1664_v51  ;;  %v1697_v51 = vld [vmem:[#allocation9 + $0x18] sm:$0xff]  ;;  %v1708_v58 = vld [vmem:[#allocation9 + $0x70] sm:$0xff] }
 0x508   :  { %v1701_v63 = vld [vmem:[#allocation9 + $0x38] sm:$0xff]  ;;  %v1712_v46 = vld [vmem:[#allocation9 + $0x90] sm:$0xff] }
 0x509   :  { %1553 = vmatmul.mubr.f32.vlgmr.msra.gmra.mrb[8].mxu0 %v6371_v15  ;;  %v1633_v15 = vld [vmem:[%s7431_s8 + $0x18] sm:$0xff]  ;;  %7598 = vst [vmem:[#allocation39_spill] sm:$0xff] %v6685_v14  ;;  %v1716_v50 = vld [vmem:[#allocation9 + $0xb0] sm:$0xff] }
 0x50a   :  { %4883 = vmatpush1.bf16.msra.mxu0 %v6445_v47  ;;  %1822 = vmatprep.mubr.f32.mxu0 %v7471_v39  ;;  %v6596_v53 = vpack.c.bf16 %v1637_v29, %v1633_v15  ;;  %v1673_v15 = vld [vmem:[%s7431_s8 + $0x158] sm:$0xff]  ;;  %v6753_v62 = vpack.c.bf16 %v1716_v50, %v1712_v46 }
 0x50b   :  { %4885 = vmatprep.subr.bf16.mxu0 %v6448_v26  ;;  %v1677_v29 = vld [vmem:[%s7431_s8 + $0x178] sm:$0xff] }
 0x50c   :  { %v6688_v40 = vpack.c.bf16 %v1677_v29, %v1673_v15  ;;  %v6733_v15 = vpack.c.bf16 %v1692_v45, %v1688_v11  ;;  %v6736_v29 = vpack.c.bf16 %v1701_v63, %v1697_v51  ;;  %v1713_v11 = vld [vmem:[#allocation9 + $0x98] sm:$0xff]  ;;  %v6746_v51 = vpack.c.bf16 %v1708_v58, %v1704_v18  ;;  %v1720_v18 = vld [vmem:[#allocation9 + $0xd0] sm:$0xff] }
 0x50d   :  { %v1717_v45 = vld [vmem:[#allocation9 + $0xb8] sm:$0xff]  ;;  %v1724_v58 = vld [vmem:[#allocation9 + $0xf0] sm:$0xff] }
 0x50e   :  { %4887 = vmatpush1.bf16.msra.mxu0 %v6465_v41  ;;  %7599 = vst [vmem:[#allocation40_spill] sm:$0xff] %v6688_v40  ;;  %7604 = vst [vmem:[#allocation45_spill] sm:$0xff] %v6733_v15  ;;  %v6750_v63 = vpack.c.bf16 %v1717_v45, %v1713_v11  ;;  %v6759_v11 = vpack.c.bf16 %v1724_v58, %v1720_v18  ;;  %v1737_v46 = vld [vmem:[#allocation9 + $0x158] sm:$0xff] }
 0x50f   :  { %4889 = vmatprep.subr.bf16.mxu0 %v6467_v27  ;;  %7605 = vst [vmem:[#allocation46_spill] sm:$0xff] %v6736_v29  ;;  %v1741_v50 = vld [vmem:[#allocation9 + $0x178] sm:$0xff]  ;;  %v7606_v27 = vmov 0.0  }
 0x510   :  { %v1745_v18 = vld [vmem:[#allocation9 + $0x198] sm:$0xff] }
 0x511   :  { %v1749_v58 = vld [vmem:[#allocation9 + $0x1b8] sm:$0xff] }
 0x512   :  { %4891 = vmatpush1.bf16.msra.mxu0 %v6483_v30 }
 0x513   :  { %4893 = vmatprep.subr.bf16.mxu0 %v6485_v7 }
 0x516   :  { %4895 = vmatpush1.bf16.msra.mxu0 %v6501_v2  ;;  %v1753_v2 = vld [vmem:[#allocation9 + $0x1d8] sm:$0xff] }
 0x517   :  { %4897 = vmatprep.subr.bf16.mxu0 %v6503_v17  ;;  %v1748_v17 = vld [vmem:[#allocation9 + $0x1b0] sm:$0xff] }
 0x51a   :  { %4899 = vmatpush1.bf16.msra.mxu0 %v6519_v10  ;;  %v1744_v10 = vld [vmem:[#allocation9 + $0x190] sm:$0xff] }
 0x51b   :  { %4901 = vmatprep.subr.bf16.mxu0 %v6521_v22  ;;  %v1740_v22 = vld [vmem:[#allocation9 + $0x170] sm:$0xff]  ;;  %v6781_v30 = vpack.c.bf16 %v1748_v17, %v1744_v10 }
 0x51e   :  { %4903 = vmatpush1.bf16.msra.mxu0 %v6537_v57  ;;  %v1736_v57 = vld [vmem:[#allocation9 + $0x150] sm:$0xff] }
 0x51f   :  { %4905 = vmatprep.subr.bf16.mxu0 %v6539_v9  ;;  %v1732_v9 = vld [vmem:[#allocation9 + $0x130] sm:$0xff] }
 0x522   :  { %4907 = vmatpush1.bf16.msra.mxu0 %v6555_v24  ;;  %v1728_v24 = vld [vmem:[#allocation9 + $0x110] sm:$0xff] }
 0x523   :  { %4909 = vmatprep.subr.bf16.mxu0 %v6557_v16  ;;  %v1729_v16 = vld [vmem:[#allocation9 + $0x118] sm:$0xff] }
 0x526   :  { %4911 = vmatpush1.bf16.msra.mxu0 %v6567_v33  ;;  %v6756_v33 = vpack.c.bf16 %v1725_v35, %v1721_v20  ;;  %v6765_v20 = vpack.c.bf16 %v1732_v9, %v1728_v24  ;;  %v6768_v35 = vpack.c.bf16 %v1741_v50, %v1737_v46  ;;  %v1757_v46 = vld [vmem:[#allocation9 + $0x1f8] sm:$0xff] }
 0x527   :  { %4913 = vmatprep.subr.bf16.mxu0 %v6596_v53 }
 0x529   :  { %1823 = vmatmul.mubr.f32.vlgmr.msra.gmra.mrb[10].mxu0 %v7471_v39 }
 0x52a   :  { %4915 = vmatpush1.bf16.msra.mxu0 %v6611_v56  ;;  %1893 = vmatprep.mubr.f32.mxu0 %v7471_v39 }
 0x52b   :  { %4917 = vmatprep.subr.bf16.mxu0 %v6614_v44 }
 0x52e   :  { %4919 = vmatpush1.bf16.msra.mxu0 %v6630_v54 }
 0x52f   :  { %4921 = vmatprep.subr.bf16.mxu0 %v6634_v59 }
 0x532   :  { %4923 = vmatpush1.bf16.msra.mxu0 %v6649_v43 }
 0x533   :  { %4925 = vmatprep.subr.bf16.mxu0 %v6652_v36 }
 0x536   :  { %4927 = vmatpush1.bf16.msra.mxu0 %v6667_v21 }
 0x537   :  { %4929 = vmatprep.subr.bf16.mxu0 %v6670_v31 }
 0x53a   :  { %4931 = vmatpush1.bf16.msra.mxu0 %v6685_v14 }
 0x53b   :  { %4933 = vmatprep.subr.bf16.mxu0 %v6688_v40 }
 0x53e   :  { %4935 = vmatpush1.bf16.msra.mxu0 %v6703_v55 }
 0x53f   :  { %4937 = vmatprep.subr.bf16.mxu0 %v6706_v3 }
 0x542   :  { %4939 = vmatpush1.bf16.msra.mxu0 %v6721_v19 }
 0x543   :  { %4941 = vmatprep.subr.bf16.mxu0 %v6724_v42 }
 0x546   :  { %4943 = vmatpush1.bf16.msra.mxu0 %v6733_v15 }
 0x547   :  { %4977 = vmatprep.subr.bf16.mxu0 %v6736_v29 }
 0x549   :  { %1894 = vmatmul.mubr.f32.vlgmr.msra.gmra.mrb[12].mxu0 %v7471_v39 }
 0x54a   :  { %4979 = vmatpush1.bf16.msra.mxu0 %v6739_v8  ;;  %2063 = vmatprep.mubr.f32.mxu0 %v7471_v39  ;;  %v1733_v39 = vld [vmem:[#allocation9 + $0x138] sm:$0xff] }
 0x54b   :  { %4981 = vmatprep.subr.bf16.mxu0 %v6742_v37  ;;  %v6762_v45 = vpack.c.bf16 %v1733_v39, %v1729_v16  ;;  %v6771_v39 = vpack.c.bf16 %v1740_v22, %v1736_v57  ;;  %v6774_v16 = vpack.c.bf16 %v1749_v58, %v1745_v18  ;;  %v6784_v22 = vpack.c.bf16 %v1757_v46, %v1753_v2  ;;  %v1752_v57 = vld [vmem:[#allocation9 + $0x1d0] sm:$0xff] }
 0x54c   :  { %v1756_v18 = vld [vmem:[#allocation9 + $0x1f0] sm:$0xff] }
 0x54d   :  { %v6787_v58 = vpack.c.bf16 %v1756_v18, %v1752_v57 }
 0x54e   :  { %4983 = vmatpush1.bf16.msra.mxu0 %v6746_v51 }
 0x54f   :  { %4985 = vmatprep.subr.bf16.mxu0 %v6750_v63 }
 0x552   :  { %4987 = vmatpush1.bf16.msra.mxu0 %v6753_v62 }
 0x553   :  { %4989 = vmatprep.subr.bf16.mxu0 %v6756_v33 }
 0x556   :  { %4991 = vmatpush1.bf16.msra.mxu0 %v6759_v11 }
 0x557   :  { %4993 = vmatprep.subr.bf16.mxu0 %v6762_v45 }
 0x55a   :  { %4995 = vmatpush1.bf16.msra.mxu0 %v6765_v20 }
 0x55b   :  { %4997 = vmatprep.subr.bf16.mxu0 %v6768_v35 }
 0x55c   :  { %v1262_v9 = vpop.f32.mrb[4].mxu0  ;;  %v6776_v24 = vpop.f32.mrb[4].mxu1 }
 0x55d   :  { %v1264_v50 = vpop.f32.mrb[5].mxu0  ;;  %v6778_v7 = vpop.f32.mrb[5].mxu1 }
 0x55e   :  { %4999 = vmatpush1.bf16.msra.mxu0 %v6771_v39 }
 0x55f   :  { %5001 = vmatprep.subr.bf16.mxu0 %v6774_v16 }
 0x562   :  { %5003 = vmatpush1.bf16.msra.mxu0 %v6781_v30 }
 0x563   :  { %5005 = vmatprep.subr.bf16.mxu0 %v6784_v22 }
 0x566   :  { %5007 = vmatpush1.bf16.msra.mxu0 %v6787_v58 }
 0x567   :  { %5041 = vmatprep.subr.bf16.mxu0 %v6596_v53 }
 0x569   :  { %2064 = vmatmul.mubr.f32.vlgmr.msra.gmra.mrb[14].mxu0 %v7606_v27 }
 0x56a   :  { %5043 = vmatpush1.bf16.msra.mxu0 %v6611_v56  ;;  %2245 = vmatprep.mubr.f32.mxu0 %v7606_v27 }
 0x56b   :  { %5045 = vmatprep.subr.bf16.mxu0 %v6614_v44  ;;  %v7608_v44 = vld [vmem:[#allocation16_spill] sm:$0xff] }
 0x56e   :  { %5047 = vmatpush1.bf16.msra.mxu0 %v6630_v54  ;;  %v7607_v54 = vld [vmem:[#allocation15_spill] sm:$0xff] }
 0x56f   :  { %5049 = vmatprep.subr.bf16.mxu0 %v6634_v59 }
 0x572   :  { %5051 = vmatpush1.bf16.msra.mxu0 %v6649_v43 }
 0x573   :  { %5053 = vmatprep.subr.bf16.mxu0 %v6652_v36 }
 0x576   :  { %5055 = vmatpush1.bf16.msra.mxu0 %v6667_v21 }
 0x577   :  { %5057 = vmatprep.subr.bf16.mxu0 %v6670_v31 }
 0x57a   :  { %5059 = vmatpush1.bf16.msra.mxu0 %v6685_v14 }
 0x57b   :  { %5061 = vmatprep.subr.bf16.mxu0 %v6688_v40  ;;  %v1174_v40 = vld [vmem:[%s7433_s10] sm:$0xf] }
 0x57c   :  { %v1187_v41 = vrot.slane %v1174_v40, %v7607_v54  ;;  %v1191_v26 = vrot.slane %v1174_v40, %v7608_v44 }
 0x57d   :  { %v1994_v2 = vpop.f32.mrb[6].mxu1 }
 0x57e   :  { %v1996_v17 = vpop.f32.mrb[7].mxu1  ;;  %5063 = vmatpush1.bf16.msra.mxu0 %v6703_v55 }
 0x57f   :  { %5065 = vmatprep.subr.bf16.mxu0 %v6706_v3  ;;  %v1183_v3 = vrot.slane %v1174_v40, %v7573_v1 }
 0x581   :  { %v6815_v31 = vadd.f32 %v1264_v50, %v1183_v3  ;;  %v1466_v3 = vld [vmem:[%s7434_s11] sm:$0xf] }
 0x582   :  { %5067 = vmatpush1.bf16.msra.mxu0 %v6721_v19  ;;  %v1179_v19 = vrot.slane %v1174_v40, %v7574_v61  ;;  %v2074_v40 = vrot.slane %v1994_v2, 2 }
 0x583   :  { %5069 = vmatprep.subr.bf16.mxu0 %v6724_v42 }
 0x584   :  { %v6817_v42 = vadd.f32 %v1262_v9, %v1179_v19 }
 0x586   :  { %5071 = vmatpush1.bf16.msra.mxu0 %v6733_v15 }
 0x587   :  { %5105 = vmatprep.subr.bf16.mxu0 %v6736_v29 }
 0x59c   :  { %v1333_v10 = vpop.f32.mrb[6].mxu0 }
 0x59d   :  { %v1335_v46 = vpop.f32.mrb[7].mxu0  ;;  %v6826_v19 = vadd.f32 %v1333_v10, %v1187_v41 }
 0x59f   :  { %7609 = vst [vmem:[#allocation15_spill] sm:$0xff] %v6826_v19 }
 0x5dc   :  { %v1554_v57 = vpop.f32.mrb[8].mxu0 }
 0x5dd   :  { %v1556_v18 = vpop.f32.mrb[9].mxu0 }
 0x5fc   :  { %v1824_v14 = vpop.f32.mrb[10].mxu0 }
 0x5fd   :  { %v1826_v55 = vpop.f32.mrb[11].mxu0  ;;  %v1900_v15 = vadd.f32 %v1824_v14, %v6817_v42  ;;  %v1471_v14 = vrot.slane %v1466_v3, %v7574_v61 }
 0x5fe   :  { %v1901_v29 = vadd.f32 %v1826_v55, %v6815_v31  ;;  %v6828_v55 = vadd.f32 %v1335_v46, %v1191_v26  ;;  %v2075_v26 = vrot.slane %v1996_v17, 2 }
 0x5ff   :  { %v3941_v36 = vmul.f32 -1.442695, %v1900_v15 }
 0x600   :  { %v3942_v21 = vmul.f32 -1.442695, %v1901_v29 }
 0x602   :  { %5610 = vpow2.f32 %v3942_v21 }
 0x603   :  { %5612 = vpow2.f32 %v3941_v36  ;;  %v1475_v36 = vrot.slane %v1466_v3, %v7573_v1 }
 0x605   :  { %v6836_v9 = vadd.f32 %v1556_v18, %v1475_v36 }
 0x607   :  { %v2083_v1 = vadd.f32 %v2075_v26, %v6836_v9 }
 0x60c   :  { %v5611_v43 = vpop.eup %5610 }
 0x60d   :  { %v5613_v59 = vpop.eup %5612  ;;  %v1913_v56 = vadd.f32 1.0, %v5611_v43  ;;  %v6834_v43 = vadd.f32 %v1554_v57, %v1471_v14 }
 0x60e   :  { %v1907_v47 = vadd.f32 1.0, %v5613_v59 }
 0x60f   :  { %5614 = vrcp.f32 %v1913_v56  ;;  %v2082_v61 = vadd.f32 %v2074_v40, %v6834_v43  ;;  %v1483_v40 = vrot.slane %v1466_v3, %v7608_v44 }
 0x610   :  { %5616 = vrcp.f32 %v1907_v47  ;;  %v3945_v47 = vmul.f32 -1.442695, %v2083_v1 }
 0x611   :  { %v3944_v10 = vmul.f32 -1.442695, %v2082_v61  ;;  %v6855_v44 = vadd.f32 %v6778_v7, %v1483_v40 }
 0x619   :  { %v5615_v56 = vpop.eup %5614 }
 0x61a   :  { %v5617_v50 = vpop.eup %5616 }
 0x61c   :  { %v1895_v21 = vpop.f32.mrb[12].mxu0 }
 0x61d   :  { %v1902_v15 = vadd.f32 %v1895_v21, %v6826_v19  ;;  %v1897_v29 = vpop.f32.mrb[13].mxu0  ;;  %v1923_v21 = vmul.f32 0.0, %v5615_v56 }
 0x61e   :  { %v1903_v59 = vadd.f32 %v1897_v29, %v6828_v55 }
 0x61f   :  { %5618 = vtanh.f32 %v1902_v15 }
 0x620   :  { %v3943_v41 = vmul.f32 -1.442695, %v1903_v59  ;;  %v1479_v59 = vrot.slane %v1466_v3, %v7607_v54 }
 0x622   :  { %5620 = vpow2.f32 %v3943_v41  ;;  %v6850_v56 = vadd.f32 %v6776_v24, %v1479_v59 }
 0x623   :  { %5622 = vpow2.f32 %v3944_v10 }
 0x624   :  { %5624 = vpow2.f32 %v3945_v47 }
 0x629   :  { %v5619_v46 = vpop.eup %5618 }
 0x62a   :  { %v1924_v29 = vmul.f32 %v5619_v46, %v5617_v50 }
 0x62c   :  { %v5621_v15 = vpop.eup %5620  ;;  %v6840_v57 = vadd.f32 %v1924_v29, %v1923_v21 }
 0x62d   :  { %v1920_v2 = vadd.f32 1.0, %v5621_v15  ;;  %v5623_v17 = vpop.eup %5622 }
 0x62e   :  { %5626 = vtanh.f32 %v6840_v57  ;;  %v5625_v18 = vpop.eup %5624  ;;  %v2089_v61 = vadd.f32 1.0, %v5623_v17 }
 0x62f   :  { %5628 = vrcp.f32 %v1920_v2  ;;  %v2095_v26 = vadd.f32 1.0, %v5625_v18 }
 0x631   :  { %5630 = vrcp.f32 %v2095_v26  ;;  %v7612_v26 = vld [vmem:[#allocation20_spill] sm:$0xff] }
 0x632   :  { %5632 = vrcp.f32 %v2089_v61  ;;  %v7613_v61 = vld [vmem:[#allocation31_spill] sm:$0xff] }
 0x638   :  { %v5627_v14 = vpop.eup %5626 }
 0x639   :  { %v5629_v36 = vpop.eup %5628 }
 0x63a   :  { %v6845_v41 = vmul.f32 %v5629_v36, %v5627_v14 }
 0x63b   :  { %v5631_v46 = vpop.eup %5630 }
 0x63c   :  { %7610 = vst [vmem:[#allocation16_spill] sm:$0xff] %v6845_v41  ;;  %v2065_v1 = vpop.f32.mrb[14].mxu0  ;;  %2175 = vmatmul.mubr.f32.vlgmr.msra.gmra.mrb[8].mxu1 %v6845_v41  ;;  %2246 = vmatmul.mubr.f32.vlgmr.msra.gmra.mrb[16].mxu0 %v6845_v41  ;;  %v5633_v47 = vpop.eup %5632  ;;  %v2105_v29 = vmul.f32 0.0, %v5631_v46  ;;  %v7621_v46 = vld [vmem:[#allocation35_spill] sm:$0xff]  ;;  %v7632_v41 = vld [vmem:[#allocation28_spill] sm:$0xff] }
 0x63d   :  { %v2076_v50 = vrot.slane %v2065_v1, 2  ;;  %v2067_v10 = vpop.f32.mrb[15].mxu0  ;;  %5075 = vmatpush1.bf16.msra.mxu1 %v6373_v13  ;;  %5107 = vmatpush1.bf16.msra.mxu0 %v6739_v8  ;;  %v7614_v1 = vld [vmem:[#allocation23_spill] sm:$0xff] }
 0x63e   :  { %v2077_v54 = vrot.slane %v2067_v10, 2  ;;  %5077 = vmatprep.subr.bf16.mxu1 %v6377_v38  ;;  %5109 = vmatprep.subr.bf16.mxu0 %v6742_v37  ;;  %v7616_v10 = vld [vmem:[#allocation18_spill] sm:$0xff] }
 0x63f   :  { %v2084_v3 = vadd.f32 %v2076_v50, %v6850_v56  ;;  %2362 = vmatprep.mubr.f32.mxu1 %v7606_v27  ;;  %2433 = vmatprep.mubr.f32.mxu0 %v7606_v27  ;;  %v7615_v50 = vld [vmem:[#allocation32_spill] sm:$0xff] }
 0x640   :  { %v2085_v24 = vadd.f32 %v2077_v54, %v6855_v44  ;;  %v7617_v54 = vld [vmem:[#allocation33_spill] sm:$0xff] }
 0x641   :  { %5634 = vtanh.f32 %v2084_v3  ;;  %5079 = vmatpush1.bf16.msra.mxu1 %v6383_v52  ;;  %5111 = vmatpush1.bf16.msra.mxu0 %v6746_v51  ;;  %v7618_v3 = vld [vmem:[#allocation17_spill] sm:$0xff] }
 0x642   :  { %v3946_v7 = vmul.f32 -1.442695, %v2085_v24  ;;  %5081 = vmatprep.subr.bf16.mxu1 %v6386_v28  ;;  %5113 = vmatprep.subr.bf16.mxu0 %v6750_v63  ;;  %v7619_v24 = vld [vmem:[#allocation34_spill] sm:$0xff] }
 0x644   :  { %5636 = vpow2.f32 %v3946_v7  ;;  %v7620_v7 = vld [vmem:[#allocation25_spill] sm:$0xff] }
 0x645   :  { %5083 = vmatpush1.bf16.msra.mxu1 %v6390_v48  ;;  %5115 = vmatpush1.bf16.msra.mxu0 %v6753_v62 }
 0x646   :  { %5085 = vmatprep.subr.bf16.mxu1 %v6393_v34  ;;  %5117 = vmatprep.subr.bf16.mxu0 %v6756_v33 }
 0x649   :  { %5087 = vmatpush1.bf16.msra.mxu1 %v6396_v5  ;;  %5119 = vmatpush1.bf16.msra.mxu0 %v6759_v11 }
 0x64a   :  { %5089 = vmatprep.subr.bf16.mxu1 %v6399_v25  ;;  %5121 = vmatprep.subr.bf16.mxu0 %v6762_v45 }
 0x64b   :  { %v5635_v21 = vpop.eup %5634 }
 0x64c   :  { %v2106_v15 = vmul.f32 %v5635_v21, %v5633_v47  ;;  %v7622_v47 = vld [vmem:[#allocation27_spill] sm:$0xff]  ;;  %v7623_v21 = vld [vmem:[#allocation36_spill] sm:$0xff] }
 0x64d   :  { %5091 = vmatpush1.bf16.msra.mxu1 %v6402_v60  ;;  %5123 = vmatpush1.bf16.msra.mxu0 %v6765_v20 }
 0x64e   :  { %v5637_v2 = vpop.eup %5636  ;;  %v6877_v17 = vadd.f32 %v2106_v15, %v2105_v29  ;;  %5093 = vmatprep.subr.bf16.mxu1 %v6405_v4  ;;  %5125 = vmatprep.subr.bf16.mxu0 %v6768_v35  ;;  %v7624_v29 = vld [vmem:[#allocation21_spill] sm:$0xff] }
 0x64f   :  { %v2102_v18 = vadd.f32 1.0, %v5637_v2  ;;  %v7625_v15 = vld [vmem:[#allocation37_spill] sm:$0xff]  ;;  %v7626_v2 = vld [vmem:[#allocation19_spill] sm:$0xff] }
 0x650   :  { %5638 = vtanh.f32 %v6877_v17 }
 0x651   :  { %5640 = vrcp.f32 %v2102_v18  ;;  %5095 = vmatpush1.bf16.msra.mxu1 %v6408_v12  ;;  %5127 = vmatpush1.bf16.msra.mxu0 %v6771_v39  ;;  %v7627_v18 = vld [vmem:[#allocation38_spill] sm:$0xff] }
 0x652   :  { %5097 = vmatprep.subr.bf16.mxu1 %v6411_v0  ;;  %5129 = vmatprep.subr.bf16.mxu0 %v6774_v16 }
 0x655   :  { %5099 = vmatpush1.bf16.msra.mxu1 %v6414_v32  ;;  %5131 = vmatpush1.bf16.msra.mxu0 %v6781_v30 }
 0x656   :  { %5101 = vmatprep.subr.bf16.mxu1 %v6417_v23  ;;  %5133 = vmatprep.subr.bf16.mxu0 %v6784_v22 }
 0x659   :  { %5103 = vmatpush1.bf16.msra.mxu1 %v6420_v49  ;;  %5135 = vmatpush1.bf16.msra.mxu0 %v6787_v58 }
 0x65a   :  { %v5639_v14 = vpop.eup %5638  ;;  %5137 = vmatprep.subr.bf16.mxu1 %v6429_v6  ;;  %5169 = vmatprep.subr.bf16.mxu0 %v6596_v53 }
 0x65b   :  { %v5641_v36 = vpop.eup %5640 }
 0x65c   :  { %v2109_v59 = vmul.f32 %v5641_v36, %v5639_v14  ;;  %v7628_v14 = vld [vmem:[#allocation24_spill] sm:$0xff]  ;;  %v7629_v36 = vld [vmem:[#allocation39_spill] sm:$0xff] }
 0x65e   :  { %v6894_v40 = vrot.slane %v2109_v59, 6  ;;  %v7630_v59 = vld [vmem:[#allocation26_spill] sm:$0xff] }
 0x660   :  { %7611 = vst [vmem:[#allocation47_spill] sm:$0xff] %v6894_v40  ;;  %2363 = vmatmul.mubr.f32.vlgmr.msra.gmra.mrb[10].mxu1 %v6894_v40  ;;  %2434 = vmatmul.mubr.f32.vlgmr.msra.gmra.mrb[18].mxu0 %v6894_v40  ;;  %v7631_v40 = vld [vmem:[#allocation40_spill] sm:$0xff] }
 0x661   :  { %5139 = vmatpush1.bf16.msra.mxu1 %v7612_v26  ;;  %5171 = vmatpush1.bf16.msra.mxu0 %v7613_v61 }
 0x662   :  { %5141 = vmatprep.subr.bf16.mxu1 %v7614_v1  ;;  %5173 = vmatprep.subr.bf16.mxu0 %v7615_v50 }
 0x663   :  { %2550 = vmatprep.mubr.f32.mxu1 %v7606_v27  ;;  %2621 = vmatprep.mubr.f32.mxu0 %v7606_v27 }
 0x665   :  { %5143 = vmatpush1.bf16.msra.mxu1 %v7616_v10  ;;  %5175 = vmatpush1.bf16.msra.mxu0 %v7617_v54 }
 0x666   :  { %5145 = vmatprep.subr.bf16.mxu1 %v7618_v3  ;;  %5177 = vmatprep.subr.bf16.mxu0 %v7619_v24 }
 0x669   :  { %5147 = vmatpush1.bf16.msra.mxu1 %v7620_v7  ;;  %5179 = vmatpush1.bf16.msra.mxu0 %v7621_v46 }
 0x66a   :  { %5149 = vmatprep.subr.bf16.mxu1 %v7622_v47  ;;  %5181 = vmatprep.subr.bf16.mxu0 %v7623_v21  ;;  %v7633_v47 = vld [vmem:[#allocation41_spill] sm:$0xff]  ;;  %v7634_v21 = vld [vmem:[#allocation14_spill] sm:$0xff] }
 0x66d   :  { %5151 = vmatpush1.bf16.msra.mxu1 %v7624_v29  ;;  %5183 = vmatpush1.bf16.msra.mxu0 %v7625_v15  ;;  %v7635_v29 = vld [vmem:[#allocation42_spill] sm:$0xff]  ;;  %v7636_v15 = vld [vmem:[#allocation13_spill] sm:$0xff] }
 0x66e   :  { %5153 = vmatprep.subr.bf16.mxu1 %v7626_v2  ;;  %5185 = vmatprep.subr.bf16.mxu0 %v7627_v18  ;;  %v7637_v2 = vld [vmem:[#allocation43_spill] sm:$0xff]  ;;  %v7638_v18 = vld [vmem:[#allocation29_spill] sm:$0xff] }
 0x671   :  { %5155 = vmatpush1.bf16.msra.mxu1 %v7628_v14  ;;  %5187 = vmatpush1.bf16.msra.mxu0 %v7629_v36  ;;  %v7639_v14 = vld [vmem:[#allocation44_spill] sm:$0xff]  ;;  %v7640_v36 = vld [vmem:[#allocation30_spill] sm:$0xff] }
 0x672   :  { %5157 = vmatprep.subr.bf16.mxu1 %v7630_v59  ;;  %5189 = vmatprep.subr.bf16.mxu0 %v7631_v40  ;;  %v7641_v59 = vld [vmem:[#allocation45_spill] sm:$0xff]  ;;  %v7642_v40 = vld [vmem:[#allocation22_spill] sm:$0xff] }
 0x675   :  { %5159 = vmatpush1.bf16.msra.mxu1 %v7632_v41  ;;  %5191 = vmatpush1.bf16.msra.mxu0 %v7633_v47  ;;  %v7643_v41 = vld [vmem:[#allocation46_spill] sm:$0xff] }
 0x676   :  { %5161 = vmatprep.subr.bf16.mxu1 %v7634_v21  ;;  %5193 = vmatprep.subr.bf16.mxu0 %v7635_v29 }
 0x679   :  { %5163 = vmatpush1.bf16.msra.mxu1 %v7636_v15  ;;  %5195 = vmatpush1.bf16.msra.mxu0 %v7637_v2 }
 0x67a   :  { %5165 = vmatprep.subr.bf16.mxu1 %v7638_v18  ;;  %5197 = vmatprep.subr.bf16.mxu0 %v7639_v14 }
 0x67d   :  { %5167 = vmatpush1.bf16.msra.mxu1 %v7640_v36  ;;  %5199 = vmatpush1.bf16.msra.mxu0 %v7641_v59 }
 0x67e   :  { %5201 = vmatprep.subr.bf16.mxu1 %v7642_v40  ;;  %5233 = vmatprep.subr.bf16.mxu0 %v7643_v41 }
 0x70f   :  { %v2176_v47 = vpop.f32.mrb[8].mxu1  ;;  %v2247_v21 = vpop.f32.mrb[16].mxu0 }
 0x710   :  { %v2256_v46 = vrot.slane %v2176_v47, 6  ;;  %v2178_v29 = vpop.f32.mrb[9].mxu1  ;;  %v2249_v7 = vpop.f32.mrb[17].mxu0  ;;  %v2258_v40 = vrot.slane %v2247_v21, 6 }
 0x711   :  { %v2257_v15 = vrot.slane %v2178_v29, 6  ;;  %v2259_v3 = vrot.slane %v2249_v7, 6 }
 0x712   :  { %v2264_v2 = vadd.f32 %v2256_v46, %v6817_v42  ;;  %v2266_v41 = vadd.f32 %v2258_v40, %v6826_v19 }
 0x713   :  { %v2265_v18 = vadd.f32 %v2257_v15, %v6815_v31  ;;  %v2267_v59 = vadd.f32 %v2259_v3, %v6828_v55 }
 0x714   :  { %v3947_v24 = vmul.f32 -1.442695, %v2264_v2 }
 0x715   :  { %v3948_v14 = vmul.f32 -1.442695, %v2265_v18  ;;  %v3949_v36 = vmul.f32 -1.442695, %v2267_v59 }
 0x716   :  { %5642 = vpow2.f32 %v3947_v24  ;;  %v2288_v24 = vrot.slane %v6840_v57, 6 }
 0x717   :  { %5644 = vpow2.f32 %v3948_v14 }
 0x718   :  { %5646 = vpow2.f32 %v3949_v36 }
 0x719   :  { %5648 = vtanh.f32 %v2266_v41 }
 0x720   :  { %v5643_v54 = vpop.eup %5642 }
 0x721   :  { %v5645_v47 = vpop.eup %5644  ;;  %v2271_v10 = vadd.f32 1.0, %v5643_v54 }
 0x722   :  { %v2277_v29 = vadd.f32 1.0, %v5645_v47  ;;  %v5647_v46 = vpop.eup %5646 }
 0x723   :  { %5650 = vrcp.f32 %v2271_v10  ;;  %v5649_v15 = vpop.eup %5648  ;;  %v2284_v3 = vadd.f32 1.0, %v5647_v46 }
 0x724   :  { %5652 = vrcp.f32 %v2277_v29 }
 0x725   :  { %5654 = vrcp.f32 %v2284_v3 }
 0x72d   :  { %v5651_v2 = vpop.eup %5650 }
 0x72e   :  { %v5653_v7 = vpop.eup %5652  ;;  %v2291_v18 = vmul.f32 %v5651_v2, %v5649_v15 }
 0x72f   :  { %v2290_v21 = vmul.f32 %v5653_v7, %v2288_v24  ;;  %v5655_v46 = vpop.eup %5654 }
 0x731   :  { %v6937_v14 = vadd.f32 %v2291_v18, %v2290_v21 }
 0x733   :  { %v2364_v40 = vpop.f32.mrb[10].mxu1  ;;  %v2435_v59 = vpop.f32.mrb[18].mxu0  ;;  %5656 = vtanh.f32 %v6937_v14 }
 0x734   :  { %v2444_v41 = vrot.slane %v2364_v40, 4  ;;  %v2366_v54 = vpop.f32.mrb[11].mxu1  ;;  %v2437_v10 = vpop.f32.mrb[19].mxu0  ;;  %v2446_v7 = vrot.slane %v2435_v59, 4 }
 0x735   :  { %v2445_v36 = vrot.slane %v2366_v54, 4  ;;  %v2447_v15 = vrot.slane %v2437_v10, 4 }
 0x736   :  { %v2452_v47 = vadd.f32 %v2444_v41, %v6834_v43  ;;  %v2454_v40 = vadd.f32 %v2446_v7, %v6850_v56 }
 0x737   :  { %v2453_v29 = vadd.f32 %v2445_v36, %v6836_v9  ;;  %v2455_v24 = vadd.f32 %v2447_v15, %v6855_v44 }
 0x738   :  { %v3950_v57 = vmul.f32 -1.442695, %v2452_v47 }
 0x739   :  { %v3951_v19 = vmul.f32 -1.442695, %v2453_v29  ;;  %v3952_v21 = vmul.f32 -1.442695, %v2455_v24  ;;  %v2476_v29 = vrot.slane %v6877_v17, 2 }
 0x73a   :  { %5658 = vpow2.f32 %v3950_v57 }
 0x73b   :  { %5660 = vpow2.f32 %v3951_v19 }
 0x73c   :  { %5662 = vpow2.f32 %v3952_v21 }
 0x73d   :  { %v5657_v2 = vpop.eup %5656  ;;  %5664 = vtanh.f32 %v2454_v40  ;;  %v7646_v40 = vld [vmem:[#allocation17_spill] sm:$0xff] }
 0x73e   :  { %v2294_v18 = vmul.f32 %v5657_v2, %v5655_v46 }
 0x740   :  { %v6943_v3 = vrot.slane %v2294_v18, 2 }
 0x742   :  { %2551 = vmatmul.mubr.f32.vlgmr.msra.gmra.mrb[12].mxu1 %v6943_v3  ;;  %2622 = vmatmul.mubr.f32.vlgmr.msra.gmra.mrb[20].mxu0 %v6943_v3 }
 0x743   :  { %5203 = vmatpush1.bf16.msra.mxu1 %v6373_v13  ;;  %5235 = vmatpush1.bf16.msra.mxu0 %v6739_v8 }
 0x744   :  { %v5659_v19 = vpop.eup %5658  ;;  %5205 = vmatprep.subr.bf16.mxu1 %v6377_v38  ;;  %5237 = vmatprep.subr.bf16.mxu0 %v6742_v37 }
 0x745   :  { %v5661_v59 = vpop.eup %5660  ;;  %v2459_v41 = vadd.f32 1.0, %v5659_v19  ;;  %2738 = vmatprep.mubr.f32.mxu1 %v7606_v27  ;;  %2809 = vmatprep.mubr.f32.mxu0 %v7606_v27  ;;  %v7647_v19 = vld [vmem:[#allocation34_spill] sm:$0xff] }
 0x746   :  { %v2465_v54 = vadd.f32 1.0, %v5661_v59  ;;  %v5663_v10 = vpop.eup %5662  ;;  %v7648_v59 = vld [vmem:[#allocation25_spill] sm:$0xff] }
 0x747   :  { %5666 = vrcp.f32 %v2459_v41  ;;  %5207 = vmatpush1.bf16.msra.mxu1 %v6383_v52  ;;  %5239 = vmatpush1.bf16.msra.mxu0 %v6746_v51  ;;  %v5665_v36 = vpop.eup %5664  ;;  %v2472_v46 = vadd.f32 1.0, %v5663_v10  ;;  %v7653_v41 = vld [vmem:[#allocation37_spill] sm:$0xff]  ;;  %v7655_v10 = vld [vmem:[#allocation38_spill] sm:$0xff] }
 0x748   :  { %5668 = vrcp.f32 %v2465_v54  ;;  %5209 = vmatprep.subr.bf16.mxu1 %v6386_v28  ;;  %5241 = vmatprep.subr.bf16.mxu0 %v6750_v63  ;;  %v7654_v54 = vld [vmem:[#allocation19_spill] sm:$0xff] }
 0x749   :  { %5670 = vrcp.f32 %v2472_v46  ;;  %v7661_v46 = vld [vmem:[#allocation41_spill] sm:$0xff] }
 0x74b   :  { %5211 = vmatpush1.bf16.msra.mxu1 %v6390_v48  ;;  %5243 = vmatpush1.bf16.msra.mxu0 %v6753_v62 }
 0x74c   :  { %5213 = vmatprep.subr.bf16.mxu1 %v6393_v34  ;;  %5245 = vmatprep.subr.bf16.mxu0 %v6756_v33 }
 0x74f   :  { %5215 = vmatpush1.bf16.msra.mxu1 %v6396_v5  ;;  %5247 = vmatpush1.bf16.msra.mxu0 %v6759_v11 }
 0x750   :  { %5217 = vmatprep.subr.bf16.mxu1 %v6399_v25  ;;  %5249 = vmatprep.subr.bf16.mxu0 %v6762_v45 }
 0x751   :  { %v5667_v47 = vpop.eup %5666 }
 0x752   :  { %v5669_v57 = vpop.eup %5668  ;;  %v2479_v15 = vmul.f32 %v5667_v47, %v5665_v36  ;;  %v7656_v36 = vld [vmem:[#allocation24_spill] sm:$0xff]  ;;  %v7657_v47 = vld [vmem:[#allocation39_spill] sm:$0xff] }
 0x753   :  { %v2478_v2 = vmul.f32 %v5669_v57, %v2476_v29  ;;  %5219 = vmatpush1.bf16.msra.mxu1 %v6402_v60  ;;  %5251 = vmatpush1.bf16.msra.mxu0 %v6765_v20  ;;  %v5671_v17 = vpop.eup %5670  ;;  %v7658_v29 = vld [vmem:[#allocation26_spill] sm:$0xff]  ;;  %v7659_v57 = vld [vmem:[#allocation40_spill] sm:$0xff] }
 0x754   :  { %5221 = vmatprep.subr.bf16.mxu1 %v6405_v4  ;;  %5253 = vmatprep.subr.bf16.mxu0 %v6768_v35 }
 0x755   :  { %v6971_v24 = vadd.f32 %v2479_v15, %v2478_v2  ;;  %v7660_v15 = vld [vmem:[#allocation28_spill] sm:$0xff]  ;;  %v7662_v2 = vld [vmem:[#allocation14_spill] sm:$0xff] }
 0x757   :  { %5223 = vmatpush1.bf16.msra.mxu1 %v6408_v12  ;;  %5255 = vmatpush1.bf16.msra.mxu0 %v6771_v39  ;;  %5672 = vtanh.f32 %v6971_v24 }
 0x758   :  { %5225 = vmatprep.subr.bf16.mxu1 %v6411_v0  ;;  %5257 = vmatprep.subr.bf16.mxu0 %v6774_v16 }
 0x75b   :  { %5227 = vmatpush1.bf16.msra.mxu1 %v6414_v32  ;;  %5259 = vmatpush1.bf16.msra.mxu0 %v6781_v30 }
 0x75c   :  { %5229 = vmatprep.subr.bf16.mxu1 %v6417_v23  ;;  %5261 = vmatprep.subr.bf16.mxu0 %v6784_v22 }
 0x75f   :  { %5231 = vmatpush1.bf16.msra.mxu1 %v6420_v49  ;;  %5263 = vmatpush1.bf16.msra.mxu0 %v6787_v58 }
 0x760   :  { %5265 = vmatprep.subr.bf16.mxu1 %v6429_v6  ;;  %5297 = vmatprep.subr.bf16.mxu0 %v6596_v53  ;;  %v7644_v6 = vld [vmem:[#allocation18_spill] sm:$0xff]  ;;  %v7645_v53 = vld [vmem:[#allocation33_spill] sm:$0xff] }
 0x761   :  { %v5673_v7 = vpop.eup %5672 }
 0x762   :  { %v2482_v18 = vmul.f32 %v5673_v7, %v5671_v17  ;;  %v7663_v17 = vld [vmem:[#allocation42_spill] sm:$0xff]  ;;  %v7664_v7 = vld [vmem:[#allocation13_spill] sm:$0xff] }
 0x764   :  { %v6986_v21 = vrot.slane %v2482_v18, 4  ;;  %v7665_v18 = vld [vmem:[#allocation43_spill] sm:$0xff] }
 0x766   :  { %2739 = vmatmul.mubr.f32.vlgmr.msra.gmra.mrb[14].mxu1 %v6986_v21  ;;  %2810 = vmatmul.mubr.f32.vlgmr.msra.gmra.mrb[22].mxu0 %v6986_v21 }
 0x767   :  { %5267 = vmatpush1.bf16.msra.mxu1 %v7612_v26  ;;  %5299 = vmatpush1.bf16.msra.mxu0 %v7613_v61  ;;  %v7649_v26 = vld [vmem:[#allocation35_spill] sm:$0xff] }
 0x768   :  { %5269 = vmatprep.subr.bf16.mxu1 %v7614_v1  ;;  %5301 = vmatprep.subr.bf16.mxu0 %v7615_v50  ;;  %v7650_v61 = vld [vmem:[#allocation27_spill] sm:$0xff]  ;;  %v7651_v1 = vld [vmem:[#allocation36_spill] sm:$0xff]  ;;  %v7652_v50 = vld [vmem:[#allocation21_spill] sm:$0xff] }
 0x769   :  { %2926 = vmatprep.mubr.f32.mxu1 %v7606_v27  ;;  %2997 = vmatprep.mubr.f32.mxu0 %v7606_v27 }
 0x76b   :  { %5271 = vmatpush1.bf16.msra.mxu1 %v7644_v6  ;;  %5303 = vmatpush1.bf16.msra.mxu0 %v7645_v53  ;;  %v7666_v6 = vld [vmem:[#allocation29_spill] sm:$0xff]  ;;  %v7667_v53 = vld [vmem:[#allocation44_spill] sm:$0xff] }
 0x76c   :  { %5273 = vmatprep.subr.bf16.mxu1 %v7646_v40  ;;  %5305 = vmatprep.subr.bf16.mxu0 %v7647_v19  ;;  %v7668_v40 = vld [vmem:[#allocation30_spill] sm:$0xff]  ;;  %v7669_v19 = vld [vmem:[#allocation45_spill] sm:$0xff] }
 0x76f   :  { %5275 = vmatpush1.bf16.msra.mxu1 %v7648_v59  ;;  %5307 = vmatpush1.bf16.msra.mxu0 %v7649_v26  ;;  %v7670_v59 = vld [vmem:[#allocation46_spill] sm:$0xff] }
 0x770   :  { %5277 = vmatprep.subr.bf16.mxu1 %v7650_v61  ;;  %5309 = vmatprep.subr.bf16.mxu0 %v7651_v1  ;;  %v7671_v26 = vld [vmem:[#allocation22_spill] sm:$0xff] }
 0x773   :  { %5279 = vmatpush1.bf16.msra.mxu1 %v7652_v50  ;;  %5311 = vmatpush1.bf16.msra.mxu0 %v7653_v41 }
 0x774   :  { %5281 = vmatprep.subr.bf16.mxu1 %v7654_v54  ;;  %5313 = vmatprep.subr.bf16.mxu0 %v7655_v10 }
 0x777   :  { %5283 = vmatpush1.bf16.msra.mxu1 %v7656_v36  ;;  %5315 = vmatpush1.bf16.msra.mxu0 %v7657_v47 }
 0x778   :  { %5285 = vmatprep.subr.bf16.mxu1 %v7658_v29  ;;  %5317 = vmatprep.subr.bf16.mxu0 %v7659_v57 }
 0x77b   :  { %5287 = vmatpush1.bf16.msra.mxu1 %v7660_v15  ;;  %5319 = vmatpush1.bf16.msra.mxu0 %v7661_v46 }
 0x77c   :  { %5289 = vmatprep.subr.bf16.mxu1 %v7662_v2  ;;  %5321 = vmatprep.subr.bf16.mxu0 %v7663_v17 }
 0x77f   :  { %5291 = vmatpush1.bf16.msra.mxu1 %v7664_v7  ;;  %5323 = vmatpush1.bf16.msra.mxu0 %v7665_v18  ;;  %v7672_v7 = vld [vmem:[#allocation15_spill] sm:$0xff] }
 0x780   :  { %5293 = vmatprep.subr.bf16.mxu1 %v7666_v6  ;;  %5325 = vmatprep.subr.bf16.mxu0 %v7667_v53 }
 0x783   :  { %5295 = vmatpush1.bf16.msra.mxu1 %v7668_v40  ;;  %5327 = vmatpush1.bf16.msra.mxu0 %v7669_v19 }
 0x784   :  { %5361 = vmatprep.subr.bf16.mxu0 %v7670_v59  ;;  %5329 = vmatprep.subr.bf16.mxu1 %v7671_v26 }
 0x815   :  { %v2552_v61 = vpop.f32.mrb[12].mxu1  ;;  %v2623_v1 = vpop.f32.mrb[20].mxu0 }
 0x816   :  { %v2632_v50 = vrot.slane %v2552_v61, 4  ;;  %v2554_v41 = vpop.f32.mrb[13].mxu1  ;;  %v2625_v54 = vpop.f32.mrb[21].mxu0  ;;  %v2634_v2 = vrot.slane %v2623_v1, 4 }
 0x817   :  { %v2633_v10 = vrot.slane %v2554_v41, 4  ;;  %v2635_v15 = vrot.slane %v2625_v54, 4 }
 0x818   :  { %v2640_v36 = vadd.f32 %v2632_v50, %v6817_v42  ;;  %v2642_v18 = vadd.f32 %v2634_v2, %v7672_v7  ;;  %v2664_v50 = vrot.slane %v6937_v14, 6 }
 0x819   :  { %v2641_v47 = vadd.f32 %v2633_v10, %v6815_v31  ;;  %v2643_v46 = vadd.f32 %v2635_v15, %v6828_v55 }
 0x81a   :  { %v3953_v29 = vmul.f32 -1.442695, %v2640_v36 }
 0x81b   :  { %v3954_v57 = vmul.f32 -1.442695, %v2641_v47  ;;  %v3955_v17 = vmul.f32 -1.442695, %v2643_v46 }
 0x81c   :  { %5674 = vpow2.f32 %v3953_v29 }
 0x81d   :  { %5676 = vpow2.f32 %v3954_v57 }
 0x81e   :  { %5678 = vpow2.f32 %v3955_v17 }
 0x81f   :  { %5680 = vtanh.f32 %v2642_v18 }
 0x826   :  { %v5675_v6 = vpop.eup %5674 }
 0x827   :  { %v5677_v53 = vpop.eup %5676  ;;  %v2647_v40 = vadd.f32 1.0, %v5675_v6 }
 0x828   :  { %v2653_v19 = vadd.f32 1.0, %v5677_v53  ;;  %v5679_v59 = vpop.eup %5678 }
 0x829   :  { %5682 = vrcp.f32 %v2647_v40  ;;  %v5681_v26 = vpop.eup %5680  ;;  %v2660_v10 = vadd.f32 1.0, %v5679_v59 }
 0x82a   :  { %5684 = vrcp.f32 %v2653_v19 }
 0x82b   :  { %5686 = vrcp.f32 %v2660_v10 }
 0x833   :  { %v5683_v61 = vpop.eup %5682 }
 0x834   :  { %v5685_v41 = vpop.eup %5684  ;;  %v2667_v54 = vmul.f32 %v5683_v61, %v5681_v26 }
 0x835   :  { %v2666_v1 = vmul.f32 %v5685_v41, %v2664_v50  ;;  %v5687_v40 = vpop.eup %5686 }
 0x837   :  { %v7029_v36 = vadd.f32 %v2667_v54, %v2666_v1 }
 0x839   :  { %v2740_v47 = vpop.f32.mrb[14].mxu1  ;;  %v2811_v29 = vpop.f32.mrb[22].mxu0  ;;  %5688 = vtanh.f32 %v7029_v36 }
 0x83a   :  { %v2820_v57 = vrot.slane %v2740_v47, 6  ;;  %v2742_v15 = vpop.f32.mrb[15].mxu1  ;;  %v2813_v46 = vpop.f32.mrb[23].mxu0  ;;  %v2822_v26 = vrot.slane %v2811_v29, 6 }
 0x83b   :  { %v2821_v2 = vrot.slane %v2742_v15, 6  ;;  %v2823_v53 = vrot.slane %v2813_v46, 6  ;;  %v3235_v15 = vld [vmem:[%s7435_s12 + $0x60] sm:$0xff]  ;;  %v3236_v46 = vld [vmem:[%s7435_s12 + $0x68] sm:$0xff] }
 0x83c   :  { %v2828_v17 = vadd.f32 %v2820_v57, %v6834_v43  ;;  %v2830_v54 = vadd.f32 %v2822_v26, %v6850_v56  ;;  %v7673_v26 = vld [vmem:[#allocation16_spill] sm:$0xff] }
 0x83d   :  { %v2829_v18 = vadd.f32 %v2821_v2, %v6836_v9  ;;  %v2831_v59 = vadd.f32 %v2823_v53, %v6855_v44  ;;  %v5435_v2 = vpack.c.bf16 %v3236_v46, %v3235_v15  ;;  %v3404_v53 = vld [vmem:[%s7437_s14 + $0x8] sm:$0xff] }
 0x83e   :  { %v3956_v14 = vmul.f32 -1.442695, %v2828_v17  ;;  %v3237_v17 = vld [vmem:[%s7435_s12 + $0x70] sm:$0xff]  ;;  %v3252_v15 = vld [vmem:[%s7436_s13 + $0x68] sm:$0xff] }
 0x83f   :  { %v3957_v6 = vmul.f32 -1.442695, %v2829_v18  ;;  %v3958_v41 = vmul.f32 -1.442695, %v2831_v59  ;;  %v3238_v18 = vld [vmem:[%s7435_s12 + $0x78] sm:$0xff] }
 0x840   :  { %5690 = vpow2.f32 %v3956_v14  ;;  %v5438_v14 = vpack.c.bf16 %v3238_v18, %v3237_v17  ;;  %v3406_v59 = vld [vmem:[%s7437_s14 + $0x18] sm:$0xff] }
 0x841   :  { %5692 = vpow2.f32 %v3957_v6  ;;  %v3403_v6 = vld [vmem:[%s7437_s14] sm:$0xff]  ;;  %v3254_v17 = vld [vmem:[%s7436_s13 + $0x78] sm:$0xff] }
 0x842   :  { %5694 = vpow2.f32 %v3958_v41  ;;  %v3407_v41 = vld [vmem:[%s7437_s14 + $0x20] sm:$0xff] }
 0x843   :  { %v5689_v19 = vpop.eup %5688  ;;  %5696 = vtanh.f32 %v2830_v54  ;;  %v3408_v54 = vld [vmem:[%s7437_s14 + $0x28] sm:$0xff] }
 0x844   :  { %v2670_v61 = vmul.f32 %v5689_v19, %v5687_v40  ;;  %v5465_v40 = vpack.c.bf16 %v3404_v53, %v3403_v6  ;;  %v3405_v19 = vld [vmem:[%s7437_s14 + $0x10] sm:$0xff] }
 0x846   :  { %v7035_v50 = vrot.slane %v2670_v61, 4  ;;  %v7155_v61 = vpack.c.bf16 %v3406_v59, %v3405_v19 }
 0x848   :  { %2927 = vmatmul.mubr.f32.vlgmr.msra.gmra.mrb[16].mxu1 %v7035_v50  ;;  %2998 = vmatmul.mubr.f32.vlgmr.msra.gmra.mrb[24].mxu0 %v7035_v50 }
 0x849   :  { %5363 = vmatpush1.bf16.msra.mxu0 %v6739_v8  ;;  %5331 = vmatpush1.bf16.msra.mxu1 %v6373_v13 }
 0x84a   :  { %v5691_v10 = vpop.eup %5690  ;;  %5365 = vmatprep.subr.bf16.mxu0 %v6742_v37  ;;  %5333 = vmatprep.subr.bf16.mxu1 %v6377_v38 }
 0x84b   :  { %v5693_v1 = vpop.eup %5692  ;;  %v2835_v47 = vadd.f32 1.0, %v5691_v10  ;;  %3114 = vmatprep.mubr.f32.mxu1 %v7606_v27  ;;  %3185 = vmatprep.mubr.f32.mxu0 %v7606_v27  ;;  %v7167_v10 = vpack.c.bf16 %v3408_v54, %v3407_v41 }
 0x84c   :  { %v2841_v29 = vadd.f32 1.0, %v5693_v1  ;;  %v5695_v13 = vpop.eup %5694  ;;  %v3409_v1 = vld [vmem:[%s7437_s14 + $0x30] sm:$0xff] }
 0x84d   :  { %5698 = vrcp.f32 %v2835_v47  ;;  %5367 = vmatpush1.bf16.msra.mxu0 %v6746_v51  ;;  %5335 = vmatpush1.bf16.msra.mxu1 %v6383_v52  ;;  %v5697_v38 = vpop.eup %5696  ;;  %v3227_v51 = vld [vmem:[%s7435_s12 + $0x20] sm:$0xff]  ;;  %v3410_v47 = vld [vmem:[%s7437_s14 + $0x38] sm:$0xff] }
 0x84e   :  { %5700 = vrcp.f32 %v2841_v29  ;;  %5369 = vmatprep.subr.bf16.mxu0 %v6750_v63  ;;  %5337 = vmatprep.subr.bf16.mxu1 %v6386_v28  ;;  %v2852_v28 = vrot.slane %v6971_v24, 2  ;;  %v3228_v63 = vld [vmem:[%s7435_s12 + $0x28] sm:$0xff]  ;;  %v3234_v24 = vld [vmem:[%s7435_s12 + $0x58] sm:$0xff]  ;;  %v7177_v29 = vpack.c.bf16 %v3410_v47, %v3409_v1 }
 0x851   :  { %5371 = vmatpush1.bf16.msra.mxu0 %v6753_v62  ;;  %5339 = vmatpush1.bf16.msra.mxu1 %v6390_v48  ;;  %v2848_v48 = vadd.f32 1.0, %v5695_v13  ;;  %v3411_v13 = vld [vmem:[%s7437_s14 + $0x40] sm:$0xff] }
 0x852   :  { %5373 = vmatprep.subr.bf16.mxu0 %v6756_v33  ;;  %5341 = vmatprep.subr.bf16.mxu1 %v6393_v34 }
 0x853   :  { %5702 = vrcp.f32 %v2848_v48  ;;  %v3415_v48 = vld [vmem:[%s7437_s14 + $0x60] sm:$0xff] }
 0x855   :  { %5375 = vmatpush1.bf16.msra.mxu0 %v6759_v11  ;;  %5343 = vmatpush1.bf16.msra.mxu1 %v6396_v5  ;;  %v5423_v11 = vpack.c.bf16 %v3228_v63, %v3227_v51  ;;  %v3244_v51 = vld [vmem:[%s7436_s13 + $0x28] sm:$0xff] }
 0x856   :  { %5377 = vmatprep.subr.bf16.mxu0 %v6762_v45  ;;  %5345 = vmatprep.subr.bf16.mxu1 %v6399_v25  ;;  %v5867_v25 = vmov 0.0|0.0   ;;  %v3229_v45 = vld [vmem:[%s7435_s12 + $0x30] sm:$0xff] }
 0x857   :  { %v5699_v52 = vpop.eup %5698 }
 0x858   :  { %v5701_v62 = vpop.eup %5700  ;;  %v2855_v8 = vmul.f32 %v5699_v52, %v5697_v38  ;;  %v3412_v38 = vld [vmem:[%s7437_s14 + $0x48] sm:$0xff] }
 0x859   :  { %v2854_v37 = vmul.f32 %v5701_v62, %v2852_v28  ;;  %5379 = vmatpush1.bf16.msra.mxu0 %v6765_v20  ;;  %5347 = vmatpush1.bf16.msra.mxu1 %v6402_v60  ;;  %v3223_v60 = vld [vmem:[%s7435_s12] sm:$0xff]  ;;  %v3230_v20 = vld [vmem:[%s7435_s12 + $0x38] sm:$0xff]  ;;  %v7187_v52 = vpack.c.bf16 %v3412_v38, %v3411_v13  ;;  %v3413_v28 = vld [vmem:[%s7437_s14 + $0x50] sm:$0xff] }
 0x85a   :  { %5381 = vmatprep.subr.bf16.mxu0 %v6768_v35  ;;  %5349 = vmatprep.subr.bf16.mxu1 %v6405_v4  ;;  %v3224_v4 = vld [vmem:[%s7435_s12 + $0x8] sm:$0xff]  ;;  %v5426_v35 = vpack.c.bf16 %v3230_v20, %v3229_v45  ;;  %v3414_v62 = vld [vmem:[%s7437_s14 + $0x58] sm:$0xff] }
 0x85b   :  { %v7063_v34 = vadd.f32 %v2855_v8, %v2854_v37  ;;  %v7197_v8 = vpack.c.bf16 %v3414_v62, %v3413_v28  ;;  %v3416_v37 = vld [vmem:[%s7437_s14 + $0x68] sm:$0xff]  ;;  %v3246_v45 = vld [vmem:[%s7436_s13 + $0x38] sm:$0xff] }
 0x85d   :  { %5383 = vmatpush1.bf16.msra.mxu0 %v6771_v39  ;;  %5351 = vmatpush1.bf16.msra.mxu1 %v6408_v12  ;;  %5704 = vtanh.f32 %v7063_v34  ;;  %v5703_v5 = vpop.eup %5702  ;;  %v3231_v39 = vld [vmem:[%s7435_s12 + $0x40] sm:$0xff] }
 0x85e   :  { %5385 = vmatprep.subr.bf16.mxu0 %v6774_v16  ;;  %5353 = vmatprep.subr.bf16.mxu1 %v6411_v0  ;;  %v3232_v16 = vld [vmem:[%s7435_s12 + $0x48] sm:$0xff] }
 0x861   :  { %5387 = vmatpush1.bf16.msra.mxu0 %v6781_v30  ;;  %5355 = vmatpush1.bf16.msra.mxu1 %v6414_v32  ;;  %v5417_v32 = vpack.c.bf16 %v3224_v4, %v3223_v60  ;;  %v3226_v30 = vld [vmem:[%s7435_s12 + $0x18] sm:$0xff]  ;;  %v3417_v60 = vld [vmem:[%s7437_s14 + $0x70] sm:$0xff] }
 0x862   :  { %5389 = vmatprep.subr.bf16.mxu0 %v6784_v22  ;;  %5357 = vmatprep.subr.bf16.mxu1 %v6417_v23  ;;  %v5429_v22 = vpack.c.bf16 %v3232_v16, %v3231_v39  ;;  %v3418_v4 = vld [vmem:[%s7437_s14 + $0x78] sm:$0xff]  ;;  %v3248_v39 = vld [vmem:[%s7436_s13 + $0x48] sm:$0xff] }
 0x865   :  { %5391 = vmatpush1.bf16.msra.mxu0 %v6787_v58  ;;  %5359 = vmatpush1.bf16.msra.mxu1 %v6420_v49  ;;  %v3225_v49 = vld [vmem:[%s7435_s12 + $0x10] sm:$0xff] }
 0x866   :  { %5416 = vmatprep.subr.bf16.mxu0 %v5867_v25  ;;  %5392 = vmatprep.subr.bf16.mxu1 %v5867_v25  ;;  %v5420_v33 = vpack.c.bf16 %v3226_v30, %v3225_v49  ;;  %v3233_v58 = vld [vmem:[%s7435_s12 + $0x50] sm:$0xff]  ;;  %v3242_v49 = vld [vmem:[%s7436_s13 + $0x18] sm:$0xff] }
 0x867   :  { %v5705_v12 = vpop.eup %5704  ;;  %v5432_v57 = vpack.c.bf16 %v3234_v24, %v3233_v58  ;;  %v3250_v58 = vld [vmem:[%s7436_s13 + $0x58] sm:$0xff] }
 0x868   :  { %v2858_v0 = vmul.f32 %v5705_v12, %v5703_v5  ;;  %v7207_v5 = vpack.c.bf16 %v3416_v37, %v3415_v48  ;;  %v7217_v12 = vpack.c.bf16 %v3418_v4, %v3417_v60  ;;  %v3040_v48 = vrot.slane %v7029_v36, 6 }
 0x86a   :  { %v7084_v23 = vrot.slane %v2858_v0, 2  ;;  %v3240_v0 = vld [vmem:[%s7436_s13 + $0x8] sm:$0xff] }
 0x86c   :  { %3115 = vmatmul.mubr.f32.vlgmr.msra.gmra.mrb[18].mxu1 %v7084_v23  ;;  %3186 = vmatmul.mubr.f32.vlgmr.msra.gmra.mrb[26].mxu0 %v7084_v23 }
 0x86d   :  { %5418 = vmatpush3.bf16.msra.mxu0 %v5417_v32  ;;  %4171 = vmatprep.mubr.msk.f32.mxu0 %vm5868_vm9, %v7606_v27 }
 0x86e   :  { %5419 = vmatprep.subr.bf16.mxu0 %v5867_v25  ;;  %4136 = vmatprep.mubr.msk.f32.mxu1 %vm5868_vm9, %v7606_v27 }
 0x871   :  { %5421 = vmatpush3.bf16.msra.mxu0 %v5420_v33  ;;  %v3243_v33 = vld [vmem:[%s7436_s13 + $0x20] sm:$0xff] }
 0x872   :  { %5422 = vmatprep.subr.bf16.mxu0 %v5867_v25  ;;  %v5399_v63 = vpack.c.bf16 %v3244_v51, %v3243_v33 }
 0x875   :  { %5424 = vmatpush3.bf16.msra.mxu0 %v5423_v11  ;;  %v3245_v11 = vld [vmem:[%s7436_s13 + $0x30] sm:$0xff] }
 0x876   :  { %5425 = vmatprep.subr.bf16.mxu0 %v5867_v25  ;;  %v5402_v20 = vpack.c.bf16 %v3246_v45, %v3245_v11 }
 0x879   :  { %5427 = vmatpush3.bf16.msra.mxu0 %v5426_v35  ;;  %v3247_v35 = vld [vmem:[%s7436_s13 + $0x40] sm:$0xff] }
 0x87a   :  { %5428 = vmatprep.subr.bf16.mxu0 %v5867_v25  ;;  %v5405_v16 = vpack.c.bf16 %v3248_v39, %v3247_v35 }
 0x87d   :  { %5430 = vmatpush3.bf16.msra.mxu0 %v5429_v22  ;;  %v3249_v22 = vld [vmem:[%s7436_s13 + $0x50] sm:$0xff] }
 0x87e   :  { %5431 = vmatprep.subr.bf16.mxu0 %v5867_v25  ;;  %v5408_v24 = vpack.c.bf16 %v3250_v58, %v3249_v22 }
 0x881   :  { %5433 = vmatpush3.bf16.msra.mxu0 %v5432_v57  ;;  %v3251_v57 = vld [vmem:[%s7436_s13 + $0x60] sm:$0xff] }
 0x882   :  { %5434 = vmatprep.subr.bf16.mxu0 %v5867_v25  ;;  %v5411_v46 = vpack.c.bf16 %v3252_v15, %v3251_v57 }
 0x885   :  { %5436 = vmatpush3.bf16.msra.mxu0 %v5435_v2  ;;  %v3253_v2 = vld [vmem:[%s7436_s13 + $0x70] sm:$0xff] }
 0x886   :  { %5437 = vmatprep.subr.bf16.mxu0 %v5867_v25  ;;  %v5414_v18 = vpack.c.bf16 %v3254_v17, %v3253_v2 }
 0x889   :  { %5439 = vmatpush3.bf16.msra.mxu0 %v5438_v14 }
 0x88a   :  { %5464 = vmatprep.subr.bf16.mxu0 %v5867_v25 }
 0x88c   :  { %4172 = vmatmul.mubr.f32.vlgmr.msra.gmra.mrb[28].mxu0 %v7673_v26 }
 0x88d   :  { %5466 = vmatpush3.bf16.msra.mxu0 %v5465_v40  ;;  %4241 = vmatprep.mubr.msk.f32.mxu0 %vm5868_vm9, %v7606_v27 }
 0x88e   :  { %5467 = vmatprep.subr.bf16.mxu0 %v5867_v25 }
 0x891   :  { %5469 = vmatpush3.bf16.msra.mxu0 %v7155_v61 }
 0x892   :  { %5470 = vmatprep.subr.bf16.mxu0 %v5867_v25 }
 0x895   :  { %5472 = vmatpush3.bf16.msra.mxu0 %v7167_v10 }
 0x896   :  { %5473 = vmatprep.subr.bf16.mxu0 %v5867_v25 }
 0x899   :  { %5475 = vmatpush3.bf16.msra.mxu0 %v7177_v29 }
 0x89a   :  { %5476 = vmatprep.subr.bf16.mxu0 %v5867_v25 }
 0x89d   :  { %5478 = vmatpush3.bf16.msra.mxu0 %v7187_v52 }
 0x89e   :  { %5479 = vmatprep.subr.bf16.mxu0 %v5867_v25 }
 0x8a1   :  { %5481 = vmatpush3.bf16.msra.mxu0 %v7197_v8 }
 0x8a2   :  { %5482 = vmatprep.subr.bf16.mxu0 %v5867_v25 }
 0x8a5   :  { %5484 = vmatpush3.bf16.msra.mxu0 %v7207_v5 }
 0x8a6   :  { %5485 = vmatprep.subr.bf16.mxu0 %v5867_v25 }
 0x8a9   :  { %5487 = vmatpush3.bf16.msra.mxu0 %v7217_v12 }
 0x8aa   :  { %5512 = vmatprep.subr.bf16.mxu0 %v5867_v25 }
 0x8ac   :  { %4242 = vmatmul.mubr.f32.vlgmr.msra.gmra.mrb[30].mxu0 %v6943_v3  ;;  %v3239_v3 = vld [vmem:[%s7436_s13] sm:$0xff] }
 0x8ad   :  { %5514 = vmatpush3.bf16.msra.mxu0 %v5465_v40  ;;  %4311 = vmatprep.mubr.msk.f32.mxu0 %vm5868_vm9, %v7606_v27  ;;  %v5393_v32 = vpack.c.bf16 %v3240_v0, %v3239_v3 }
 0x8ae   :  { %5515 = vmatprep.subr.bf16.mxu0 %v5867_v25 }
 0x8af   :  { %5394 = vmatpush3.bf16.msra.mxu1 %v5393_v32 }
 0x8b0   :  { %5395 = vmatprep.subr.bf16.mxu1 %v5867_v25 }
 0x8b1   :  { %5517 = vmatpush3.bf16.msra.mxu0 %v7155_v61 }
 0x8b2   :  { %5518 = vmatprep.subr.bf16.mxu0 %v5867_v25 }
 0x8b5   :  { %5520 = vmatpush3.bf16.msra.mxu0 %v7167_v10 }
 0x8b6   :  { %5521 = vmatprep.subr.bf16.mxu0 %v5867_v25 }
 0x8b9   :  { %5523 = vmatpush3.bf16.msra.mxu0 %v7177_v29 }
 0x8ba   :  { %5524 = vmatprep.subr.bf16.mxu0 %v5867_v25 }
 0x8bd   :  { %5526 = vmatpush3.bf16.msra.mxu0 %v7187_v52 }
 0x8be   :  { %5527 = vmatprep.subr.bf16.mxu0 %v5867_v25 }
 0x8c1   :  { %5529 = vmatpush3.bf16.msra.mxu0 %v7197_v8 }
 0x8c2   :  { %5530 = vmatprep.subr.bf16.mxu0 %v5867_v25 }
 0x8c5   :  { %5532 = vmatpush3.bf16.msra.mxu0 %v7207_v5 }
 0x8c6   :  { %5533 = vmatprep.subr.bf16.mxu0 %v5867_v25 }
 0x8c9   :  { %5535 = vmatpush3.bf16.msra.mxu0 %v7217_v12 }
 0x8ca   :  { %5560 = vmatprep.subr.bf16.mxu0 %v5867_v25 }
 0x8cc   :  { %4312 = vmatmul.mubr.f32.vlgmr.msra.gmra.mrb[32].mxu0 %v7035_v50  ;;  %v3241_v50 = vld [vmem:[%s7436_s13 + $0x10] sm:$0xff] }
 0x8cd   :  { %5562 = vmatpush3.bf16.msra.mxu0 %v5465_v40  ;;  %4381 = vmatprep.mubr.msk.f32.mxu0 %vm5868_vm9, %v7606_v27  ;;  %v5396_v30 = vpack.c.bf16 %v3242_v49, %v3241_v50 }
 0x8ce   :  { %5563 = vmatprep.subr.bf16.mxu0 %v5867_v25 }
 0x8cf   :  { %5397 = vmatpush3.bf16.msra.mxu1 %v5396_v30 }
 0x8d0   :  { %5398 = vmatprep.subr.bf16.mxu1 %v5867_v25 }
 0x8d1   :  { %5565 = vmatpush3.bf16.msra.mxu0 %v7155_v61 }
 0x8d2   :  { %5566 = vmatprep.subr.bf16.mxu0 %v5867_v25 }
 0x8d3   :  { %5400 = vmatpush3.bf16.msra.mxu1 %v5399_v63 }
 0x8d4   :  { %5401 = vmatprep.subr.bf16.mxu1 %v5867_v25 }
 0x8d5   :  { %5568 = vmatpush3.bf16.msra.mxu0 %v7167_v10 }
 0x8d6   :  { %5569 = vmatprep.subr.bf16.mxu0 %v5867_v25 }
 0x8d7   :  { %5403 = vmatpush3.bf16.msra.mxu1 %v5402_v20 }
 0x8d8   :  { %5404 = vmatprep.subr.bf16.mxu1 %v5867_v25 }
 0x8d9   :  { %5571 = vmatpush3.bf16.msra.mxu0 %v7177_v29 }
 0x8da   :  { %5572 = vmatprep.subr.bf16.mxu0 %v5867_v25 }
 0x8db   :  { %5406 = vmatpush3.bf16.msra.mxu1 %v5405_v16 }
 0x8dc   :  { %5407 = vmatprep.subr.bf16.mxu1 %v5867_v25 }
 0x8dd   :  { %5574 = vmatpush3.bf16.msra.mxu0 %v7187_v52 }
 0x8de   :  { %5575 = vmatprep.subr.bf16.mxu0 %v5867_v25 }
 0x8df   :  { %5409 = vmatpush3.bf16.msra.mxu1 %v5408_v24 }
 0x8e0   :  { %5410 = vmatprep.subr.bf16.mxu1 %v5867_v25 }
 0x8e1   :  { %5577 = vmatpush3.bf16.msra.mxu0 %v7197_v8 }
 0x8e2   :  { %5578 = vmatprep.subr.bf16.mxu0 %v5867_v25 }
 0x8e3   :  { %5412 = vmatpush3.bf16.msra.mxu1 %v5411_v46 }
 0x8e4   :  { %5413 = vmatprep.subr.bf16.mxu1 %v5867_v25 }
 0x8e5   :  { %5580 = vmatpush3.bf16.msra.mxu0 %v7207_v5 }
 0x8e6   :  { %5581 = vmatprep.subr.bf16.mxu0 %v5867_v25 }
 0x8e7   :  { %5415 = vmatpush3.bf16.msra.mxu1 %v5414_v18  ;;  %v3419_v18 = vld [vmem:[%s7438_s15] sm:$0xff] }
 0x8e8   :  { %5440 = vmatprep.subr.bf16.mxu1 %v5867_v25 }
 0x8e9   :  { %5583 = vmatpush3.bf16.msra.mxu0 %v7217_v12 }
 0x91b   :  { %v2928_v14 = vpop.f32.mrb[16].mxu1  ;;  %v2999_v6 = vpop.f32.mrb[24].mxu0 }
 0x91c   :  { %v3008_v53 = vrot.slane %v2928_v14, 2  ;;  %v2930_v40 = vpop.f32.mrb[17].mxu1  ;;  %v3001_v19 = vpop.f32.mrb[25].mxu0  ;;  %v3010_v47 = vrot.slane %v2999_v6, 2  ;;  %v3420_v14 = vld [vmem:[%s7438_s15 + $0x8] sm:$0xff] }
 0x91d   :  { %v3009_v59 = vrot.slane %v2930_v40, 2  ;;  %v3011_v10 = vrot.slane %v3001_v19, 2  ;;  %v3421_v19 = vld [vmem:[%s7438_s15 + $0x10] sm:$0xff] }
 0x91e   :  { %v3016_v26 = vadd.f32 %v3008_v53, %v6817_v42  ;;  %v3018_v13 = vadd.f32 %v3010_v47, %v7672_v7  ;;  %v7331_v53 = vpack.c.bf16 %v3420_v14, %v3419_v18 }
 0x91f   :  { %v3017_v61 = vadd.f32 %v3009_v59, %v6815_v31  ;;  %v3019_v1 = vadd.f32 %v3011_v10, %v6828_v55  ;;  %v3422_v59 = vld [vmem:[%s7438_s15 + $0x18] sm:$0xff]  ;;  %v3425_v10 = vld [vmem:[%s7438_s15 + $0x30] sm:$0xff] }
 0x920   :  { %v3959_v41 = vmul.f32 -1.442695, %v3016_v26  ;;  %v5444_v26 = vpack.c.bf16 %v3422_v59, %v3421_v19 }
 0x921   :  { %v3960_v54 = vmul.f32 -1.442695, %v3017_v61  ;;  %v3961_v29 = vmul.f32 -1.442695, %v3019_v1  ;;  %v3423_v61 = vld [vmem:[%s7438_s15 + $0x20] sm:$0xff]  ;;  %v3426_v1 = vld [vmem:[%s7438_s15 + $0x38] sm:$0xff] }
 0x922   :  { %5706 = vpow2.f32 %v3959_v41  ;;  %v3424_v41 = vld [vmem:[%s7438_s15 + $0x28] sm:$0xff]  ;;  %v5450_v47 = vpack.c.bf16 %v3426_v1, %v3425_v10 }
 0x923   :  { %5708 = vpow2.f32 %v3960_v54  ;;  %v5447_v54 = vpack.c.bf16 %v3424_v41, %v3423_v61 }
 0x924   :  { %5710 = vpow2.f32 %v3961_v29  ;;  %v3427_v29 = vld [vmem:[%s7438_s15 + $0x40] sm:$0xff] }
 0x925   :  { %5712 = vtanh.f32 %v3018_v13  ;;  %v3428_v13 = vld [vmem:[%s7438_s15 + $0x48] sm:$0xff] }
 0x92c   :  { %v5707_v38 = vpop.eup %5706 }
 0x92d   :  { %v5709_v52 = vpop.eup %5708  ;;  %v3023_v28 = vadd.f32 1.0, %v5707_v38  ;;  %v5453_v38 = vpack.c.bf16 %v3428_v13, %v3427_v29 }
 0x92e   :  { %v3029_v62 = vadd.f32 1.0, %v5709_v52  ;;  %v5711_v31 = vpop.eup %5710  ;;  %v3429_v52 = vld [vmem:[%s7438_s15 + $0x50] sm:$0xff] }
 0x92f   :  { %5714 = vrcp.f32 %v3023_v28  ;;  %v5713_v42 = vpop.eup %5712  ;;  %v3036_v55 = vadd.f32 1.0, %v5711_v31  ;;  %v3430_v28 = vld [vmem:[%s7438_s15 + $0x58] sm:$0xff] }
 0x930   :  { %5716 = vrcp.f32 %v3029_v62  ;;  %v5456_v31 = vpack.c.bf16 %v3430_v28, %v3429_v52 }
 0x931   :  { %5718 = vrcp.f32 %v3036_v55  ;;  %v3434_v55 = vld [vmem:[%s7438_s15 + $0x78] sm:$0xff] }
 0x939   :  { %v5715_v8 = vpop.eup %5714 }
 0x93a   :  { %v5717_v37 = vpop.eup %5716  ;;  %v3043_v5 = vmul.f32 %v5715_v8, %v5713_v42  ;;  %v3431_v8 = vld [vmem:[%s7438_s15 + $0x60] sm:$0xff] }
 0x93b   :  { %v3042_v60 = vmul.f32 %v5717_v37, %v3040_v48  ;;  %v5719_v33 = vpop.eup %5718  ;;  %v3432_v48 = vld [vmem:[%s7438_s15 + $0x68] sm:$0xff] }
 0x93c   :  { %v5459_v37 = vpack.c.bf16 %v3432_v48, %v3431_v8 }
 0x93d   :  { %v3044_v4 = vadd.f32 %v3043_v5, %v3042_v60  ;;  %v3433_v5 = vld [vmem:[%s7438_s15 + $0x70] sm:$0xff] }
 0x93e   :  { %v5462_v60 = vpack.c.bf16 %v3434_v55, %v3433_v5 }
 0x93f   :  { %v3116_v7 = vpop.f32.mrb[18].mxu1  ;;  %v3187_v12 = vpop.f32.mrb[26].mxu0  ;;  %5720 = vtanh.f32 %v3044_v4 }
 0x940   :  { %v3192_v3 = vadd.f32 %v3116_v7, %v6834_v43  ;;  %v3118_v0 = vpop.f32.mrb[19].mxu1  ;;  %v3189_v32 = vpop.f32.mrb[27].mxu0  ;;  %v3194_v45 = vadd.f32 %v3187_v12, %v6850_v56 }
 0x941   :  { %v3193_v50 = vadd.f32 %v3118_v0, %v6836_v9  ;;  %v3195_v36 = vadd.f32 %v3189_v32, %v6855_v44  ;;  %v3216_v44 = vrot.slane %v7063_v34, 2  ;;  %v3965_v32 = vld [vmem:[%s7439_s16] ss:$0 sm:$0xff] }
 0x942   :  { %v3962_v49 = vmul.f32 -1.442695, %v3192_v3 }
 0x943   :  { %v3963_v30 = vmul.f32 -1.442695, %v3193_v50  ;;  %v3964_v11 = vmul.f32 -1.442695, %v3195_v36 }
 0x944   :  { %5722 = vpow2.f32 %v3962_v49 }
 0x945   :  { %5724 = vpow2.f32 %v3963_v30 }
 0x946   :  { %5726 = vpow2.f32 %v3964_v11 }
 0x947   :  { %5728 = vtanh.f32 %v3194_v45 }
 0x949   :  { %v5721_v51 = vpop.eup %5720 }
 0x94a   :  { %v3046_v63 = vmul.f32 %v5721_v51, %v5719_v33 }
 0x94c   :  { %v3856_v20 = vrot.slane %v3046_v63, 6 }
 0x94e   :  { %v5723_v35 = vpop.eup %5722  ;;  %4382 = vmatmul.mubr.f32.vlgmr.msra.gmra.mrb[34].mxu0 %v3856_v20 }
 0x94f   :  { %v5725_v43 = vpop.eup %5724  ;;  %v3199_v39 = vadd.f32 1.0, %v5723_v35 }
 0x950   :  { %v3205_v9 = vadd.f32 1.0, %v5725_v43  ;;  %v5727_v16 = vpop.eup %5726 }
 0x951   :  { %5730 = vrcp.f32 %v3199_v39  ;;  %v5729_v22 = vpop.eup %5728  ;;  %v3212_v15 = vadd.f32 1.0, %v5727_v16 }
 0x952   :  { %5732 = vrcp.f32 %v3205_v9 }
 0x953   :  { %5734 = vrcp.f32 %v3212_v15 }
 0x95b   :  { %v5731_v58 = vpop.eup %5730 }
 0x95c   :  { %v5733_v24 = vpop.eup %5732  ;;  %v3219_v57 = vmul.f32 %v5731_v58, %v5729_v22 }
 0x95d   :  { %v3218_v46 = vmul.f32 %v5733_v24, %v3216_v44  ;;  %v5735_v6 = vpop.eup %5734 }
 0x95f   :  { %v3220_v56 = vadd.f32 %v3219_v57, %v3218_v46  ;;  %v7323_v2 = vpop.f32.mrb[28].mxu0 }
 0x960   :  { %v4173_v17 = vpop.f32.mrb[29].mxu0 }
 0x961   :  { %5736 = vtanh.f32 %v3220_v56 }
 0x96b   :  { %v5737_v34 = vpop.eup %5736 }
 0x96c   :  { %v3222_v40 = vmul.f32 %v5737_v34, %v5735_v6 }
 0x96e   :  { %4137 = vmatmul.mubr.f32.vlgmr.msra.gmra.mrb[20].mxu1 %v3222_v40 }
 0x96f   :  { %5442 = vmatpush3.bf16.msra.mxu1 %v7331_v53  ;;  %4206 = vmatprep.mubr.msk.f32.mxu1 %vm5868_vm9, %v7606_v27 }
 0x970   :  { %5443 = vmatprep.subr.bf16.mxu1 %v5867_v25 }
 0x973   :  { %5445 = vmatpush3.bf16.msra.mxu1 %v5444_v26 }
 0x974   :  { %5446 = vmatprep.subr.bf16.mxu1 %v5867_v25 }
 0x977   :  { %5448 = vmatpush3.bf16.msra.mxu1 %v5447_v54 }
 0x978   :  { %5449 = vmatprep.subr.bf16.mxu1 %v5867_v25 }
 0x97b   :  { %5451 = vmatpush3.bf16.msra.mxu1 %v5450_v47 }
 0x97c   :  { %5452 = vmatprep.subr.bf16.mxu1 %v5867_v25 }
 0x97f   :  { %5454 = vmatpush3.bf16.msra.mxu1 %v5453_v38  ;;  %v3571_v62 = vpop.f32.mrb[30].mxu0 }
 0x980   :  { %v4243_v42 = vpop.f32.mrb[31].mxu0  ;;  %5455 = vmatprep.subr.bf16.mxu1 %v5867_v25 }
 0x983   :  { %5457 = vmatpush3.bf16.msra.mxu1 %v5456_v31 }
 0x984   :  { %5458 = vmatprep.subr.bf16.mxu1 %v5867_v25 }
 0x987   :  { %5460 = vmatpush3.bf16.msra.mxu1 %v5459_v37 }
 0x988   :  { %5461 = vmatprep.subr.bf16.mxu1 %v5867_v25 }
 0x98b   :  { %5463 = vmatpush3.bf16.msra.mxu1 %v5462_v60 }
 0x98c   :  { %5488 = vmatprep.subr.bf16.mxu1 %v5867_v25 }
 0x98e   :  { %4207 = vmatmul.mubr.f32.vlgmr.msra.gmra.mrb[22].mxu1 %v7084_v23 }
 0x98f   :  { %5490 = vmatpush3.bf16.msra.mxu1 %v7331_v53  ;;  %4276 = vmatprep.mubr.msk.f32.mxu1 %vm5868_vm9, %v7606_v27 }
 0x990   :  { %5491 = vmatprep.subr.bf16.mxu1 %v5867_v25 }
 0x993   :  { %5493 = vmatpush3.bf16.msra.mxu1 %v5444_v26 }
 0x994   :  { %5494 = vmatprep.subr.bf16.mxu1 %v5867_v25 }
 0x997   :  { %5496 = vmatpush3.bf16.msra.mxu1 %v5447_v54 }
 0x998   :  { %5497 = vmatprep.subr.bf16.mxu1 %v5867_v25 }
 0x99b   :  { %5499 = vmatpush3.bf16.msra.mxu1 %v5450_v47 }
 0x99c   :  { %5500 = vmatprep.subr.bf16.mxu1 %v5867_v25 }
 0x99f   :  { %5502 = vmatpush3.bf16.msra.mxu1 %v5453_v38  ;;  %v3746_v4 = vpop.f32.mrb[32].mxu0 }
 0x9a0   :  { %v4313_v7 = vpop.f32.mrb[33].mxu0  ;;  %5503 = vmatprep.subr.bf16.mxu1 %v5867_v25 }
 0x9a3   :  { %5505 = vmatpush3.bf16.msra.mxu1 %v5456_v31 }
 0x9a4   :  { %5506 = vmatprep.subr.bf16.mxu1 %v5867_v25 }
 0x9a7   :  { %5508 = vmatpush3.bf16.msra.mxu1 %v5459_v37 }
 0x9a8   :  { %5509 = vmatprep.subr.bf16.mxu1 %v5867_v25 }
 0x9ab   :  { %5511 = vmatpush3.bf16.msra.mxu1 %v5462_v60 }
 0x9ac   :  { %5536 = vmatprep.subr.bf16.mxu1 %v5867_v25 }
 0x9ae   :  { %4277 = vmatmul.mubr.f32.vlgmr.msra.gmra.mrb[24].mxu1 %v6986_v21 }
 0x9af   :  { %5538 = vmatpush3.bf16.msra.mxu1 %v7331_v53  ;;  %4346 = vmatprep.mubr.msk.f32.mxu1 %vm5868_vm9, %v7606_v27  ;;  %v7674_v27 = vld [vmem:[#allocation47_spill] sm:$0xff] }
 0x9b0   :  { %5539 = vmatprep.subr.bf16.mxu1 %v5867_v25 }
 0x9b3   :  { %5541 = vmatpush3.bf16.msra.mxu1 %v5444_v26 }
 0x9b4   :  { %5542 = vmatprep.subr.bf16.mxu1 %v5867_v25 }
 0x9b7   :  { %5544 = vmatpush3.bf16.msra.mxu1 %v5447_v54 }
 0x9b8   :  { %5545 = vmatprep.subr.bf16.mxu1 %v5867_v25 }
 0x9bb   :  { %5547 = vmatpush3.bf16.msra.mxu1 %v5450_v47 }
 0x9bc   :  { %5548 = vmatprep.subr.bf16.mxu1 %v5867_v25 }
 0x9bf   :  { %5550 = vmatpush3.bf16.msra.mxu1 %v5453_v38 }
 0x9c0   :  { %5551 = vmatprep.subr.bf16.mxu1 %v5867_v25 }
 0x9c3   :  { %5553 = vmatpush3.bf16.msra.mxu1 %v5456_v31 }
 0x9c4   :  { %5554 = vmatprep.subr.bf16.mxu1 %v5867_v25 }
 0x9c7   :  { %5556 = vmatpush3.bf16.msra.mxu1 %v5459_v37 }
 0x9c8   :  { %5557 = vmatprep.subr.bf16.mxu1 %v5867_v25 }
 0x9cb   :  { %5559 = vmatpush3.bf16.msra.mxu1 %v5462_v60 }
 0x9ce   :  { %4347 = vmatmul.mubr.f32.vlgmr.msra.gmra.mrb[26].mxu1 %v7674_v27 }
 0xa21   :  { %v3924_v21 = vpop.f32.mrb[34].mxu0 }
 0xa22   :  { %v4383_v23 = vpop.f32.mrb[35].mxu0 }
 0xa41   :  { %v3321_v12 = vpop.f32.mrb[20].mxu1 }
 0xa42   :  { %v3392_v3 = vadd.f32 %v7323_v2, %v3321_v12  ;;  %v4138_v0 = vpop.f32.mrb[21].mxu1 }
 0xa44   :  { %v3402_v49 = vadd.f32 %v3965_v32, %v3392_v3 }
 0xa61   :  { %v3501_v50 = vpop.f32.mrb[22].mxu1 }
 0xa62   :  { %v3572_v30 = vadd.f32 %v3571_v62, %v3501_v50  ;;  %v4208_v36 = vpop.f32.mrb[23].mxu1 }
 0xa64   :  { %v3575_v33 = vadd.f32 %v3572_v30, %v3402_v49 }
 0xa66   :  { %3577 = vst.msk [vmem:[%s7675_s26] sm:$0x3] %vm3576_vm10, %v3575_v33 }
 0xa81   :  { %v3676_v25 = vpop.f32.mrb[24].mxu1 }
 0xa82   :  { %v3747_v51 = vadd.f32 %v3746_v4, %v3676_v25  ;;  %v4278_v63 = vpop.f32.mrb[25].mxu1 }
 0xa84   :  { %v3750_v11 = vadd.f32 %v3747_v51, %v3402_v49 }
 0xa86   :  { %3966 = vst.msk [vmem:[%s7675_s26 + $0x2] sm:$0x3] %vm3576_vm10, %v3750_v11 }
 0xaa1   :  { %v3851_v45 = vpop.f32.mrb[26].mxu1 }
 0xaa2   :  { %v3925_v20 = vadd.f32 %v3924_v21, %v3851_v45  ;;  %v4348_v35 = vpop.f32.mrb[27].mxu1 }
 0xaa4   :  { %v3928_v43 = vadd.f32 %v3925_v20, %v3402_v49 }
 0xaa6   :  { %3967 = vst.msk [vmem:[%s7675_s26 + $0x4] sm:$0x3] %vm3576_vm10, %v3928_v43 }
 0xaa7   :  { %3935 = vsyncpa [#allocation3], 1 }
 0xaa8   :  { %3936 = vsyncpa [#allocation5], 1 }
 0xaa9   :  { %3937 = vsyncpa [#allocation8], 1 }

</bundles_post_ra>
